<compile_context>
chip_gen: v7x
topology: tpu7x:2x2x1
jax: 0.10.0
libtpu: 0.0.40
codegen_flags: <defaults>
</compile_context>

<pallas_src>
import functools

import jax
import jax.numpy as jnp
from jax import lax
from jax.experimental import pallas as pl
from jax.experimental.pallas import tpu as pltpu


def _linear_attention_kernel(x_ref, w_qkv_ref, g1_ref, mem_k_ref, mem_v_ref,
                             w_out_ref, b_out_ref, g2_ref, mask_ref, o_ref,
                             *, heads, dim_head, batch_block, eps=1e-12):
    n = x_ref.shape[2]
    hidden = heads * dim_head
    attn_scale = dim_head ** (-0.5)

    # ---- per-grid-step constants, shared by every image in the batch block --
    w_qkv_t = w_qkv_ref[...]            # (C, 3*hidden) bf16, lane-dense
    w_out = w_out_ref[...]              # (C, hidden)   bf16
    g1 = g1_ref[...]                    # (C, 1) f32, already scaled by sqrt(C)
    g2 = g2_ref[...]                    # (C, 1) f32, already scaled by sqrt(C)
    b_out = b_out_ref[...]              # (C, 1) f32
    mk = mem_k_ref[...]                 # (hidden, M) f32 memory keys
    mv_bf = mem_v_ref[...]              # (hidden, M) bf16 memory values
    mask = mask_ref[...]                # (hidden, hidden) f32 block-diag head mask
    mk_max = jnp.max(mk, axis=1, keepdims=True)         # hoisted over the block

    for bi in range(batch_block):       # short static loop; Bt images per step
        x = x_ref[bi]                                    # (C, N) f32

        # ---- RMSNorm over channels (per pixel); rsqrt -> EUP ----------------
        ss = jnp.sum(x * x, axis=0, keepdims=True)       # (1, N)
        xn = (x * lax.rsqrt(jnp.maximum(ss, eps * eps)) * g1).astype(jnp.bfloat16)

        # ---- to_qkv: 1x1 conv == (C,3h)^T-contraction @ (C,N); f32 accumulate
        qkv = lax.dot_general(w_qkv_t, xn, (((0,), (0,)), ((), ())),
                              preferred_element_type=jnp.float32)   # (3h, N)
        q_all = qkv[:hidden]
        k_all = qkv[hidden:2 * hidden]
        v_bf = qkv[2 * hidden:].astype(jnp.bfloat16)     # cast at production

        # ---- q: softmax over head-channel axis; scale folded into reciprocal
        q3 = q_all.reshape(heads, dim_head, n)
        qm = jnp.max(q3, axis=1, keepdims=True)          # f32 stats
        qe = jnp.exp(q3 - qm)
        q_inv = pl.reciprocal(jnp.sum(qe, axis=1, keepdims=True),
                              approx=True) * attn_scale  # (heads, 1, N)
        q_sm_bf = (qe * q_inv).reshape(hidden, n).astype(jnp.bfloat16)

        # ---- k: softmax over tokens n = mem ++ pixels, without the concat ---
        km = jnp.maximum(jnp.max(k_all, axis=1, keepdims=True), mk_max)
        ke = jnp.exp(k_all - km)                         # (hidden, N)
        mke = jnp.exp(mk - km)                           # (hidden, M)
        inv_d = pl.reciprocal(jnp.sum(ke, axis=1, keepdims=True)
                              + jnp.sum(mke, axis=1, keepdims=True), approx=True)
        k_sm_bf = (ke * inv_d).astype(jnp.bfloat16)
        mk_sm_bf = (mke * inv_d).astype(jnp.bfloat16)

        # ---- context for all heads at once + precomputed block-diag mask ----
        nt = (((1,), (1,)), ((), ()))   # contract over the token (lane) axis
        ctx = (lax.dot_general(k_sm_bf, v_bf, nt, preferred_element_type=jnp.float32)
               + lax.dot_general(mk_sm_bf, mv_bf, nt,
                                 preferred_element_type=jnp.float32))  # (h, h)
        ctx = ctx * mask                # keep same-head (d, e) entries only

        # ---- fused output projection -----------------------------------------
        # w_fused[c, d] = sum_e w_out[c, e] * ctx[d, e]   -> tiny (C, hidden)
        w_fused = lax.dot_general(w_out, ctx.astype(jnp.bfloat16), nt,
                                  preferred_element_type=jnp.float32)
        # y[c, n] = sum_d w_fused[c, d] * q_sm[d, n]      == w_out @ (ctx^T @ q_sm)
        y = jnp.dot(w_fused.astype(jnp.bfloat16), q_sm_bf,
                    preferred_element_type=jnp.float32)  # (C, N)
        y = y + b_out

        # ---- final RMSNorm ----------------------------------------------------
        ss2 = jnp.sum(y * y, axis=0, keepdims=True)
        y = y * lax.rsqrt(jnp.maximum(ss2, eps * eps)) * g2

        o_ref[bi] = y.astype(o_ref.dtype)                # lane-dense store over N


def linear_attention_pallas(x_nchw, params, *, heads, dim_head, num_mem_kv,
                            batch_block=8, out_dtype=jnp.float32):
    b, c, h, w = x_nchw.shape
    n = h * w
    hidden = heads * dim_head

    # Batch block: largest divisor of B not exceeding batch_block.  Amortizes
    # the per-grid-step overhead on single-TC v5e/v6e; on v7x, as long as the
    # resulting grid length is >= 2, the "parallel" batch axis still feeds both
    # TensorCores (for B split exactly in two, each core gets B/2 images).
    bt = max(d for d in range(1, min(batch_block, b) + 1) if b % d == 0)

    # NCHW -> (B, C, N): pure reshape (no transpose); pixels on the lane axis.
    x = x_nchw.reshape(b, c, n)

    # Weights as bf16 (halves weight DMA; matmuls accumulate in f32).
    w_qkv_t = params["w_qkv"].T.astype(jnp.bfloat16)        # (C, 3*hidden) lane-dense
    w_out = params["w_out"].astype(jnp.bfloat16)            # (C, hidden)
    sqrt_c = c ** 0.5
    g1 = (params["g1"] * sqrt_c).reshape(c, 1).astype(jnp.float32)
    g2 = (params["g2"] * sqrt_c).reshape(c, 1).astype(jnp.float32)
    b_out = params["b_out"].reshape(c, 1).astype(jnp.float32)
    # mem_kv (2, heads, dim_head, M) -> (hidden, M); head-major rows match qkv rows.
    mem_k = params["mem_kv"][0].reshape(hidden, num_mem_kv).astype(jnp.float32)
    mem_v = params["mem_kv"][1].reshape(hidden, num_mem_kv).astype(jnp.bfloat16)
    # Block-diagonal head mask, precomputed once (hoisted out of the kernel body).
    head_id = jnp.arange(hidden, dtype=jnp.int32) // dim_head
    head_mask = (head_id[:, None] == head_id[None, :]).astype(jnp.float32)

    kernel = functools.partial(_linear_attention_kernel,
                               heads=heads, dim_head=dim_head, batch_block=bt)

    out = pl.pallas_call(
        kernel,
        out_shape=jax.ShapeDtypeStruct((b, c, n), out_dtype),
        grid=(b // bt,),
        in_specs=[
            pl.BlockSpec((bt, c, n), lambda i: (i, 0, 0)),
            pl.BlockSpec((c, 3 * hidden), lambda i: (0, 0)),
            pl.BlockSpec((c, 1), lambda i: (0, 0)),
            pl.BlockSpec((hidden, num_mem_kv), lambda i: (0, 0)),
            pl.BlockSpec((hidden, num_mem_kv), lambda i: (0, 0)),
            pl.BlockSpec((c, hidden), lambda i: (0, 0)),
            pl.BlockSpec((c, 1), lambda i: (0, 0)),
            pl.BlockSpec((c, 1), lambda i: (0, 0)),
            pl.BlockSpec((hidden, hidden), lambda i: (0, 0)),
        ],
        out_specs=pl.BlockSpec((bt, c, n), lambda i: (i, 0, 0)),
        compiler_params=pltpu.CompilerParams(
            dimension_semantics=("parallel",),
            # Comfortable on every generation at these sizes (well under the
            # 64 MiB physical VMEM of v7x); re-derive together with tile_n when
            # the N-tiled path for large feature maps is added.
            vmem_limit_bytes=32 * 1024 * 1024),
    )(x, w_qkv_t, g1, mem_k, mem_v, w_out, b_out, g2, head_mask)

    return out.reshape(b, c, h, w)


def linear_attention_reference(x, params, *, heads, dim_head, num_mem_kv,
                               matmul_dtype=jnp.float32):
    """Pure-JAX mirror of the PyTorch forward (NCHW).

    `matmul_dtype` mirrors the kernel's mixed-precision policy: matmul operands
    are rounded to that dtype (then computed in f32), everything else is f32.
    """
    b, c, h, w = x.shape
    hidden = heads * dim_head
    n = h * w
    eps = 1e-12
    cast = lambda t: t.astype(matmul_dtype).astype(jnp.float32)

    g1 = params["g1"].reshape(1, c, 1, 1)
    g2 = params["g2"].reshape(1, c, 1, 1)

    nrm = jnp.sqrt(jnp.sum(x * x, axis=1, keepdims=True))
    xn = x / jnp.maximum(nrm, eps) * g1 * (c ** 0.5)

    qkv = jnp.einsum("oc,bchw->bohw", cast(params["w_qkv"]), cast(xn))
    q, k, v = (qkv[:, :hidden], qkv[:, hidden:2 * hidden], qkv[:, 2 * hidden:])
    q, k, v = (t.reshape(b, heads, dim_head, n) for t in (q, k, v))

    mk = jnp.broadcast_to(params["mem_kv"][0][None], (b, heads, dim_head, num_mem_kv))
    mv = jnp.broadcast_to(params["mem_kv"][1][None], (b, heads, dim_head, num_mem_kv))
    k = jnp.concatenate([mk, k], axis=-1)
    v = jnp.concatenate([mv, v], axis=-1)

    q = jax.nn.softmax(q, axis=-2) * (dim_head ** (-0.5))
    k = jax.nn.softmax(k, axis=-1)

    context = jnp.einsum("bhdn,bhen->bhde", cast(k), cast(v))
    out = jnp.einsum("bhde,bhdn->bhen", cast(context), cast(q))
    out = out.reshape(b, hidden, h, w)

    y = jnp.einsum("oc,bchw->bohw", cast(params["w_out"]), cast(out))
    y = y + params["b_out"].reshape(1, c, 1, 1)
    nrm2 = jnp.sqrt(jnp.sum(y * y, axis=1, keepdims=True))
    return y / jnp.maximum(nrm2, eps) * g2 * (c ** 0.5)


if __name__ == "__main__":
    B, DIM, H, W = 2, 4, 16, 16
    HEADS, DIM_HEAD, NUM_MEM_KV = 4, 32, 4
    HIDDEN = HEADS * DIM_HEAD

    key = jax.random.PRNGKey(0)
    kx, k1, k2, k3, k4 = jax.random.split(key, 5)

    x = jax.random.normal(kx, (B, DIM, H, W), dtype=jnp.float32)

    params = {
        # to_qkv: Conv2d(dim, 3*hidden, 1, bias=False) weight (out, in)
        "w_qkv": jax.random.normal(k1, (3 * HIDDEN, DIM), dtype=jnp.float32) * (DIM ** -0.5),
        # mem_kv: (2, heads, dim_head, num_mem_kv)
        "mem_kv": jax.random.normal(k2, (2, HEADS, DIM_HEAD, NUM_MEM_KV), dtype=jnp.float32),
        # to_out[0]: Conv2d(hidden, dim, 1) weight (out, in) + bias
        "w_out": jax.random.normal(k3, (DIM, HIDDEN), dtype=jnp.float32) * (HIDDEN ** -0.5),
        "b_out": jax.random.normal(k4, (DIM,), dtype=jnp.float32) * (HIDDEN ** -0.5),
        # RMSNorm gains (init = ones, as in the module)
        "g1": jnp.ones((DIM,), dtype=jnp.float32),
        "g2": jnp.ones((DIM,), dtype=jnp.float32),
    }

    out = linear_attention_pallas(x, params, heads=HEADS, dim_head=DIM_HEAD,
                                  num_mem_kv=NUM_MEM_KV)
    out = jax.block_until_ready(out)
    assert out.shape == (B, DIM, H, W), out.shape

    # Check against a precision-matched (bf16 matmul operands) reference.  The
    # kernel's fused output projection rounds to bf16 at a slightly different
    # point than the step-by-step reference, so the tolerance is a bit looser
    # than pure-bf16 epsilon but still tight enough to catch any structural bug.
    ref_bf16 = jax.block_until_ready(
        linear_attention_reference(x, params, heads=HEADS, dim_head=DIM_HEAD,
                                   num_mem_kv=NUM_MEM_KV, matmul_dtype=jnp.bfloat16))
    err_bf16 = float(jnp.max(jnp.abs(out - ref_bf16)))
    assert jnp.allclose(out, ref_bf16, rtol=5e-2, atol=5e-2), err_bf16

    # Loose sanity check against the full-f32 reference (kernel uses bf16 MXU inputs).
    ref_f32 = jax.block_until_ready(
        linear_attention_reference(x, params, heads=HEADS, dim_head=DIM_HEAD,
                                   num_mem_kv=NUM_MEM_KV, matmul_dtype=jnp.float32))
    err_f32 = float(jnp.max(jnp.abs(out - ref_f32)))
    assert jnp.allclose(out, ref_f32, rtol=1e-1, atol=1e-1), err_f32

    print("KERNEL_OK")
</pallas_src>

<mosaic_0001>
module attributes {stable_mosaic.version = 11 : i64} {
  func.func @_linear_attention_kernel(%arg0: i32, %arg1: memref<2x4x256xf32, #tpu.memory_space<vmem>>, %arg2: memref<4x384xbf16, #tpu.memory_space<vmem>>, %arg3: memref<4x1xf32, #tpu.memory_space<vmem>>, %arg4: memref<128x4xf32, #tpu.memory_space<vmem>>, %arg5: memref<128x4xbf16, #tpu.memory_space<vmem>>, %arg6: memref<4x128xbf16, #tpu.memory_space<vmem>>, %arg7: memref<4x1xf32, #tpu.memory_space<vmem>>, %arg8: memref<4x1xf32, #tpu.memory_space<vmem>>, %arg9: memref<128x128xf32, #tpu.memory_space<vmem>>, %arg10: memref<2x4x256xf32, #tpu.memory_space<vmem>>) attributes {dimension_semantics = [#tpu.dimension_semantics<parallel>], iteration_bounds = array<i64: 1>, scalar_prefetch = 0 : i64, scratch_operands = 0 : i64, tpu.core_type = #tpu.core_type<tc>, window_params = [{transform_indices = @transform_0, window_bounds = array<i64: 2, 4, 256>}, {pipeline_mode = #tpu.pipeline_mode<synchronous>, transform_indices = @transform_1, window_bounds = array<i64: 4, 384>}, {pipeline_mode = #tpu.pipeline_mode<synchronous>, transform_indices = @transform_2, window_bounds = array<i64: 4, 1>}, {pipeline_mode = #tpu.pipeline_mode<synchronous>, transform_indices = @transform_3, window_bounds = array<i64: 128, 4>}, {pipeline_mode = #tpu.pipeline_mode<synchronous>, transform_indices = @transform_4, window_bounds = array<i64: 128, 4>}, {pipeline_mode = #tpu.pipeline_mode<synchronous>, transform_indices = @transform_5, window_bounds = array<i64: 4, 128>}, {pipeline_mode = #tpu.pipeline_mode<synchronous>, transform_indices = @transform_6, window_bounds = array<i64: 4, 1>}, {pipeline_mode = #tpu.pipeline_mode<synchronous>, transform_indices = @transform_7, window_bounds = array<i64: 4, 1>}, {pipeline_mode = #tpu.pipeline_mode<synchronous>, transform_indices = @transform_8, window_bounds = array<i64: 128, 128>}, {transform_indices = @transform_9, window_bounds = array<i64: 2, 4, 256>}]} {
    %c0 = arith.constant 0 : index
    %c0_0 = arith.constant 0 : index
    %0 = vector.load %arg2[%c0, %c0_0] : memref<4x384xbf16, #tpu.memory_space<vmem>>, vector<4x384xbf16>
    %c0_1 = arith.constant 0 : index
    %c0_2 = arith.constant 0 : index
    %1 = vector.load %arg6[%c0_1, %c0_2] : memref<4x128xbf16, #tpu.memory_space<vmem>>, vector<4x128xbf16>
    %c0_3 = arith.constant 0 : index
    %c0_4 = arith.constant 0 : index
    %2 = vector.load %arg3[%c0_3, %c0_4] : memref<4x1xf32, #tpu.memory_space<vmem>>, vector<4x1xf32>
    %c0_5 = arith.constant 0 : index
    %c0_6 = arith.constant 0 : index
    %3 = vector.load %arg8[%c0_5, %c0_6] : memref<4x1xf32, #tpu.memory_space<vmem>>, vector<4x1xf32>
    %c0_7 = arith.constant 0 : index
    %c0_8 = arith.constant 0 : index
    %4 = vector.load %arg7[%c0_7, %c0_8] : memref<4x1xf32, #tpu.memory_space<vmem>>, vector<4x1xf32>
    %c0_9 = arith.constant 0 : index
    %c0_10 = arith.constant 0 : index
    %5 = vector.load %arg4[%c0_9, %c0_10] : memref<128x4xf32, #tpu.memory_space<vmem>>, vector<128x4xf32>
    %c0_11 = arith.constant 0 : index
    %c0_12 = arith.constant 0 : index
    %6 = vector.load %arg5[%c0_11, %c0_12] : memref<128x4xbf16, #tpu.memory_space<vmem>>, vector<128x4xbf16>
    %c0_13 = arith.constant 0 : index
    %c0_14 = arith.constant 0 : index
    %7 = vector.load %arg9[%c0_13, %c0_14] : memref<128x128xf32, #tpu.memory_space<vmem>>, vector<128x128xf32>
    %cst = arith.constant dense<0xFF800000> : vector<128xf32>
    %8 = vector.multi_reduction <maximumf>, %5, %cst [1] : vector<128x4xf32> to vector<128xf32>
    %9 = vector.shape_cast %8 : vector<128xf32> to vector<128x1xf32>
    %c0_15 = arith.constant 0 : index
    %c0_16 = arith.constant 0 : index
    %c0_17 = arith.constant 0 : index
    %10 = vector.load %arg1[%c0_15, %c0_16, %c0_17] : memref<2x4x256xf32, #tpu.memory_space<vmem>>, vector<1x4x256xf32>
    %11 = vector.shape_cast %10 : vector<1x4x256xf32> to vector<4x256xf32>
    %12 = arith.mulf %11, %11 : vector<4x256xf32>
    %cst_18 = arith.constant dense<0.000000e+00> : vector<256xf32>
    %13 = vector.multi_reduction <add>, %12, %cst_18 [0] : vector<4x256xf32> to vector<256xf32>
    %14 = vector.shape_cast %13 : vector<256xf32> to vector<1x256xf32>
    %cst_19 = arith.constant 1.000000e-24 : f32
    %15 = vector.broadcast %cst_19 : f32 to vector<1x256xf32>
    %16 = arith.maximumf %14, %15 : vector<1x256xf32>
    %17 = math.rsqrt %16 : vector<1x256xf32>
    %18 = vector.broadcast %17 : vector<1x256xf32> to vector<4x256xf32>
    %19 = arith.mulf %11, %18 : vector<4x256xf32>
    %20 = vector.broadcast %2 : vector<4x1xf32> to vector<4x256xf32>
    %21 = arith.mulf %19, %20 : vector<4x256xf32>
    %22 = arith.truncf %21 : vector<4x256xf32> to vector<4x256xbf16>
    %cst_20 = arith.constant dense<0.000000e+00> : vector<384x256xf32>
    %23 = tpu.matmul %0, %22, %cst_20 {dimension_numbers = #tpu.dot_dimension_numbers<[0], [0], [1], [1], [0, 1, 1, 1], [], []>} : vector<4x384xbf16>, vector<4x256xbf16>, vector<384x256xf32> -> vector<384x256xf32>
    %24 = vector.extract_strided_slice %23 {offsets = [0, 0], sizes = [128, 256], strides = [1, 1]} : vector<384x256xf32> to vector<128x256xf32>
    %25 = vector.extract_strided_slice %23 {offsets = [128, 0], sizes = [128, 256], strides = [1, 1]} : vector<384x256xf32> to vector<128x256xf32>
    %26 = vector.extract_strided_slice %23 {offsets = [256, 0], sizes = [128, 256], strides = [1, 1]} : vector<384x256xf32> to vector<128x256xf32>
    %27 = arith.truncf %26 : vector<128x256xf32> to vector<128x256xbf16>
    %28 = vector.shape_cast %24 : vector<128x256xf32> to vector<4x32x256xf32>
    %cst_21 = arith.constant dense<0xFF800000> : vector<4x256xf32>
    %29 = vector.multi_reduction <maximumf>, %28, %cst_21 [1] : vector<4x32x256xf32> to vector<4x256xf32>
    %30 = vector.shape_cast %29 : vector<4x256xf32> to vector<4x1x256xf32>
    %31 = vector.broadcast %30 : vector<4x1x256xf32> to vector<4x32x256xf32>
    %32 = arith.subf %28, %31 : vector<4x32x256xf32>
    %33 = math.exp %32 : vector<4x32x256xf32>
    %cst_22 = arith.constant dense<0.000000e+00> : vector<4x256xf32>
    %34 = vector.multi_reduction <add>, %33, %cst_22 [1] : vector<4x32x256xf32> to vector<4x256xf32>
    %35 = vector.shape_cast %34 : vector<4x256xf32> to vector<4x1x256xf32>
    %36 = tpu.reciprocal %35 {approx = true} : vector<4x1x256xf32> -> vector<4x1x256xf32>
    %cst_23 = arith.constant 0.176776692 : f32
    %37 = vector.broadcast %cst_23 : f32 to vector<4x1x256xf32>
    %38 = arith.mulf %36, %37 : vector<4x1x256xf32>
    %39 = vector.broadcast %38 : vector<4x1x256xf32> to vector<4x32x256xf32>
    %40 = arith.mulf %33, %39 : vector<4x32x256xf32>
    %41 = vector.shape_cast %40 : vector<4x32x256xf32> to vector<128x256xf32>
    %42 = arith.truncf %41 : vector<128x256xf32> to vector<128x256xbf16>
    %cst_24 = arith.constant dense<0xFF800000> : vector<128xf32>
    %43 = vector.multi_reduction <maximumf>, %25, %cst_24 [1] : vector<128x256xf32> to vector<128xf32>
    %44 = vector.shape_cast %43 : vector<128xf32> to vector<128x1xf32>
    %45 = arith.maximumf %44, %9 : vector<128x1xf32>
    %46 = vector.broadcast %45 : vector<128x1xf32> to vector<128x256xf32>
    %47 = arith.subf %25, %46 : vector<128x256xf32>
    %48 = math.exp %47 : vector<128x256xf32>
    %49 = vector.broadcast %45 : vector<128x1xf32> to vector<128x4xf32>
    %50 = arith.subf %5, %49 : vector<128x4xf32>
    %51 = math.exp %50 : vector<128x4xf32>
    %cst_25 = arith.constant dense<0.000000e+00> : vector<128xf32>
    %52 = vector.multi_reduction <add>, %48, %cst_25 [1] : vector<128x256xf32> to vector<128xf32>
    %53 = vector.shape_cast %52 : vector<128xf32> to vector<128x1xf32>
    %cst_26 = arith.constant dense<0.000000e+00> : vector<128xf32>
    %54 = vector.multi_reduction <add>, %51, %cst_26 [1] : vector<128x4xf32> to vector<128xf32>
    %55 = vector.shape_cast %54 : vector<128xf32> to vector<128x1xf32>
    %56 = arith.addf %53, %55 : vector<128x1xf32>
    %57 = tpu.reciprocal %56 {approx = true} : vector<128x1xf32> -> vector<128x1xf32>
    %58 = vector.broadcast %57 : vector<128x1xf32> to vector<128x256xf32>
    %59 = arith.mulf %48, %58 : vector<128x256xf32>
    %60 = arith.truncf %59 : vector<128x256xf32> to vector<128x256xbf16>
    %61 = vector.broadcast %57 : vector<128x1xf32> to vector<128x4xf32>
    %62 = arith.mulf %51, %61 : vector<128x4xf32>
    %63 = arith.truncf %62 : vector<128x4xf32> to vector<128x4xbf16>
    %cst_27 = arith.constant dense<0.000000e+00> : vector<128x128xf32>
    %64 = tpu.matmul %60, %27, %cst_27 {dimension_numbers = #tpu.dot_dimension_numbers<[1], [1], [0], [0], [0, 0, 1, 0], [], []>} : vector<128x256xbf16>, vector<128x256xbf16>, vector<128x128xf32> -> vector<128x128xf32>
    %cst_28 = arith.constant dense<0.000000e+00> : vector<128x128xf32>
    %65 = tpu.matmul %63, %6, %cst_28 {dimension_numbers = #tpu.dot_dimension_numbers<[1], [1], [0], [0], [0, 0, 1, 0], [], []>} : vector<128x4xbf16>, vector<128x4xbf16>, vector<128x128xf32> -> vector<128x128xf32>
    %66 = arith.addf %64, %65 : vector<128x128xf32>
    %67 = arith.mulf %66, %7 : vector<128x128xf32>
    %68 = arith.truncf %67 : vector<128x128xf32> to vector<128x128xbf16>
    %cst_29 = arith.constant dense<0.000000e+00> : vector<4x128xf32>
    %69 = tpu.matmul %1, %68, %cst_29 {dimension_numbers = #tpu.dot_dimension_numbers<[1], [1], [0], [0], [0, 0, 1, 0], [], []>} : vector<4x128xbf16>, vector<128x128xbf16>, vector<4x128xf32> -> vector<4x128xf32>
    %70 = arith.truncf %69 : vector<4x128xf32> to vector<4x128xbf16>
    %cst_30 = arith.constant dense<0.000000e+00> : vector<4x256xf32>
    %71 = tpu.matmul %70, %42, %cst_30 {dimension_numbers = #tpu.dot_dimension_numbers<[1], [0], [0], [1], [0, 0, 1, 1], [], []>} : vector<4x128xbf16>, vector<128x256xbf16>, vector<4x256xf32> -> vector<4x256xf32>
    %72 = vector.broadcast %4 : vector<4x1xf32> to vector<4x256xf32>
    %73 = arith.addf %71, %72 : vector<4x256xf32>
    %74 = arith.mulf %73, %73 : vector<4x256xf32>
    %cst_31 = arith.constant dense<0.000000e+00> : vector<256xf32>
    %75 = vector.multi_reduction <add>, %74, %cst_31 [0] : vector<4x256xf32> to vector<256xf32>
    %76 = vector.shape_cast %75 : vector<256xf32> to vector<1x256xf32>
    %cst_32 = arith.constant 1.000000e-24 : f32
    %77 = vector.broadcast %cst_32 : f32 to vector<1x256xf32>
    %78 = arith.maximumf %76, %77 : vector<1x256xf32>
    %79 = math.rsqrt %78 : vector<1x256xf32>
    %80 = vector.broadcast %79 : vector<1x256xf32> to vector<4x256xf32>
    %81 = arith.mulf %73, %80 : vector<4x256xf32>
    %82 = vector.broadcast %3 : vector<4x1xf32> to vector<4x256xf32>
    %83 = arith.mulf %81, %82 : vector<4x256xf32>
    %c0_33 = arith.constant 0 : index
    %c0_34 = arith.constant 0 : index
    %c0_35 = arith.constant 0 : index
    %84 = vector.load %arg10[%c0_33, %c0_34, %c0_35] : memref<2x4x256xf32, #tpu.memory_space<vmem>>, vector<1x4x256xf32>
    %85 = vector.shape_cast %84 : vector<1x4x256xf32> to vector<4x256xf32>
    %86 = vector.shape_cast %83 : vector<4x256xf32> to vector<1x4x256xf32>
    tpu.vector_store %arg10[%c0_33, %c0_34, %c0_35], %86 {strides = array<i32>} : memref<2x4x256xf32, #tpu.memory_space<vmem>>, vector<1x4x256xf32>,
    %c1 = arith.constant 1 : index
    %c0_36 = arith.constant 0 : index
    %c0_37 = arith.constant 0 : index
    %87 = vector.load %arg1[%c1, %c0_36, %c0_37] : memref<2x4x256xf32, #tpu.memory_space<vmem>>, vector<1x4x256xf32>
    %88 = vector.shape_cast %87 : vector<1x4x256xf32> to vector<4x256xf32>
    %89 = arith.mulf %88, %88 : vector<4x256xf32>
    %cst_38 = arith.constant dense<0.000000e+00> : vector<256xf32>
    %90 = vector.multi_reduction <add>, %89, %cst_38 [0] : vector<4x256xf32> to vector<256xf32>
    %91 = vector.shape_cast %90 : vector<256xf32> to vector<1x256xf32>
    %cst_39 = arith.constant 1.000000e-24 : f32
    %92 = vector.broadcast %cst_39 : f32 to vector<1x256xf32>
    %93 = arith.maximumf %91, %92 : vector<1x256xf32>
    %94 = math.rsqrt %93 : vector<1x256xf32>
    %95 = vector.broadcast %94 : vector<1x256xf32> to vector<4x256xf32>
    %96 = arith.mulf %88, %95 : vector<4x256xf32>
    %97 = vector.broadcast %2 : vector<4x1xf32> to vector<4x256xf32>
    %98 = arith.mulf %96, %97 : vector<4x256xf32>
    %99 = arith.truncf %98 : vector<4x256xf32> to vector<4x256xbf16>
    %cst_40 = arith.constant dense<0.000000e+00> : vector<384x256xf32>
    %100 = tpu.matmul %0, %99, %cst_40 {dimension_numbers = #tpu.dot_dimension_numbers<[0], [0], [1], [1], [0, 1, 1, 1], [], []>} : vector<4x384xbf16>, vector<4x256xbf16>, vector<384x256xf32> -> vector<384x256xf32>
    %101 = vector.extract_strided_slice %100 {offsets = [0, 0], sizes = [128, 256], strides = [1, 1]} : vector<384x256xf32> to vector<128x256xf32>
    %102 = vector.extract_strided_slice %100 {offsets = [128, 0], sizes = [128, 256], strides = [1, 1]} : vector<384x256xf32> to vector<128x256xf32>
    %103 = vector.extract_strided_slice %100 {offsets = [256, 0], sizes = [128, 256], strides = [1, 1]} : vector<384x256xf32> to vector<128x256xf32>
    %104 = arith.truncf %103 : vector<128x256xf32> to vector<128x256xbf16>
    %105 = vector.shape_cast %101 : vector<128x256xf32> to vector<4x32x256xf32>
    %cst_41 = arith.constant dense<0xFF800000> : vector<4x256xf32>
    %106 = vector.multi_reduction <maximumf>, %105, %cst_41 [1] : vector<4x32x256xf32> to vector<4x256xf32>
    %107 = vector.shape_cast %106 : vector<4x256xf32> to vector<4x1x256xf32>
    %108 = vector.broadcast %107 : vector<4x1x256xf32> to vector<4x32x256xf32>
    %109 = arith.subf %105, %108 : vector<4x32x256xf32>
    %110 = math.exp %109 : vector<4x32x256xf32>
    %cst_42 = arith.constant dense<0.000000e+00> : vector<4x256xf32>
    %111 = vector.multi_reduction <add>, %110, %cst_42 [1] : vector<4x32x256xf32> to vector<4x256xf32>
    %112 = vector.shape_cast %111 : vector<4x256xf32> to vector<4x1x256xf32>
    %113 = tpu.reciprocal %112 {approx = true} : vector<4x1x256xf32> -> vector<4x1x256xf32>
    %cst_43 = arith.constant 0.176776692 : f32
    %114 = vector.broadcast %cst_43 : f32 to vector<4x1x256xf32>
    %115 = arith.mulf %113, %114 : vector<4x1x256xf32>
    %116 = vector.broadcast %115 : vector<4x1x256xf32> to vector<4x32x256xf32>
    %117 = arith.mulf %110, %116 : vector<4x32x256xf32>
    %118 = vector.shape_cast %117 : vector<4x32x256xf32> to vector<128x256xf32>
    %119 = arith.truncf %118 : vector<128x256xf32> to vector<128x256xbf16>
    %cst_44 = arith.constant dense<0xFF800000> : vector<128xf32>
    %120 = vector.multi_reduction <maximumf>, %102, %cst_44 [1] : vector<128x256xf32> to vector<128xf32>
    %121 = vector.shape_cast %120 : vector<128xf32> to vector<128x1xf32>
    %122 = arith.maximumf %121, %9 : vector<128x1xf32>
    %123 = vector.broadcast %122 : vector<128x1xf32> to vector<128x256xf32>
    %124 = arith.subf %102, %123 : vector<128x256xf32>
    %125 = math.exp %124 : vector<128x256xf32>
    %126 = vector.broadcast %122 : vector<128x1xf32> to vector<128x4xf32>
    %127 = arith.subf %5, %126 : vector<128x4xf32>
    %128 = math.exp %127 : vector<128x4xf32>
    %cst_45 = arith.constant dense<0.000000e+00> : vector<128xf32>
    %129 = vector.multi_reduction <add>, %125, %cst_45 [1] : vector<128x256xf32> to vector<128xf32>
    %130 = vector.shape_cast %129 : vector<128xf32> to vector<128x1xf32>
    %cst_46 = arith.constant dense<0.000000e+00> : vector<128xf32>
    %131 = vector.multi_reduction <add>, %128, %cst_46 [1] : vector<128x4xf32> to vector<128xf32>
    %132 = vector.shape_cast %131 : vector<128xf32> to vector<128x1xf32>
    %133 = arith.addf %130, %132 : vector<128x1xf32>
    %134 = tpu.reciprocal %133 {approx = true} : vector<128x1xf32> -> vector<128x1xf32>
    %135 = vector.broadcast %134 : vector<128x1xf32> to vector<128x256xf32>
    %136 = arith.mulf %125, %135 : vector<128x256xf32>
    %137 = arith.truncf %136 : vector<128x256xf32> to vector<128x256xbf16>
    %138 = vector.broadcast %134 : vector<128x1xf32> to vector<128x4xf32>
    %139 = arith.mulf %128, %138 : vector<128x4xf32>
    %140 = arith.truncf %139 : vector<128x4xf32> to vector<128x4xbf16>
    %cst_47 = arith.constant dense<0.000000e+00> : vector<128x128xf32>
    %141 = tpu.matmul %137, %104, %cst_47 {dimension_numbers = #tpu.dot_dimension_numbers<[1], [1], [0], [0], [0, 0, 1, 0], [], []>} : vector<128x256xbf16>, vector<128x256xbf16>, vector<128x128xf32> -> vector<128x128xf32>
    %cst_48 = arith.constant dense<0.000000e+00> : vector<128x128xf32>
    %142 = tpu.matmul %140, %6, %cst_48 {dimension_numbers = #tpu.dot_dimension_numbers<[1], [1], [0], [0], [0, 0, 1, 0], [], []>} : vector<128x4xbf16>, vector<128x4xbf16>, vector<128x128xf32> -> vector<128x128xf32>
    %143 = arith.addf %141, %142 : vector<128x128xf32>
    %144 = arith.mulf %143, %7 : vector<128x128xf32>
    %145 = arith.truncf %144 : vector<128x128xf32> to vector<128x128xbf16>
    %cst_49 = arith.constant dense<0.000000e+00> : vector<4x128xf32>
    %146 = tpu.matmul %1, %145, %cst_49 {dimension_numbers = #tpu.dot_dimension_numbers<[1], [1], [0], [0], [0, 0, 1, 0], [], []>} : vector<4x128xbf16>, vector<128x128xbf16>, vector<4x128xf32> -> vector<4x128xf32>
    %147 = arith.truncf %146 : vector<4x128xf32> to vector<4x128xbf16>
    %cst_50 = arith.constant dense<0.000000e+00> : vector<4x256xf32>
    %148 = tpu.matmul %147, %119, %cst_50 {dimension_numbers = #tpu.dot_dimension_numbers<[1], [0], [0], [1], [0, 0, 1, 1], [], []>} : vector<4x128xbf16>, vector<128x256xbf16>, vector<4x256xf32> -> vector<4x256xf32>
    %149 = vector.broadcast %4 : vector<4x1xf32> to vector<4x256xf32>
    %150 = arith.addf %148, %149 : vector<4x256xf32>
    %151 = arith.mulf %150, %150 : vector<4x256xf32>
    %cst_51 = arith.constant dense<0.000000e+00> : vector<256xf32>
    %152 = vector.multi_reduction <add>, %151, %cst_51 [0] : vector<4x256xf32> to vector<256xf32>
    %153 = vector.shape_cast %152 : vector<256xf32> to vector<1x256xf32>
    %cst_52 = arith.constant 1.000000e-24 : f32
    %154 = vector.broadcast %cst_52 : f32 to vector<1x256xf32>
    %155 = arith.maximumf %153, %154 : vector<1x256xf32>
    %156 = math.rsqrt %155 : vector<1x256xf32>
    %157 = vector.broadcast %156 : vector<1x256xf32> to vector<4x256xf32>
    %158 = arith.mulf %150, %157 : vector<4x256xf32>
    %159 = vector.broadcast %3 : vector<4x1xf32> to vector<4x256xf32>
    %160 = arith.mulf %158, %159 : vector<4x256xf32>
    %c1_53 = arith.constant 1 : index
    %c0_54 = arith.constant 0 : index
    %c0_55 = arith.constant 0 : index
    %161 = vector.load %arg10[%c1_53, %c0_54, %c0_55] : memref<2x4x256xf32, #tpu.memory_space<vmem>>, vector<1x4x256xf32>
    %162 = vector.shape_cast %161 : vector<1x4x256xf32> to vector<4x256xf32>
    %163 = vector.shape_cast %160 : vector<4x256xf32> to vector<1x4x256xf32>
    tpu.vector_store %arg10[%c1_53, %c0_54, %c0_55], %163 {strides = array<i32>} : memref<2x4x256xf32, #tpu.memory_space<vmem>>, vector<1x4x256xf32>,
    return
  }
  func.func @transform_0(%arg0: i32) -> (i32, i32, i32) {
    %c0_i32 = arith.constant 0 : i32
    %c0_i32_0 = arith.constant 0 : i32
    %c0_i32_1 = arith.constant 0 : i32
    return %arg0, %c0_i32, %c0_i32_0 : i32, i32, i32
  }
  func.func @transform_1(%arg0: i32) -> (i32, i32) {
    %c0_i32 = arith.constant 0 : i32
    %c0_i32_0 = arith.constant 0 : i32
    %c0_i32_1 = arith.constant 0 : i32
    return %c0_i32, %c0_i32_0 : i32, i32
  }
  func.func @transform_2(%arg0: i32) -> (i32, i32) {
    %c0_i32 = arith.constant 0 : i32
    %c0_i32_0 = arith.constant 0 : i32
    %c0_i32_1 = arith.constant 0 : i32
    return %c0_i32, %c0_i32_0 : i32, i32
  }
  func.func @transform_3(%arg0: i32) -> (i32, i32) {
    %c0_i32 = arith.constant 0 : i32
    %c0_i32_0 = arith.constant 0 : i32
    %c0_i32_1 = arith.constant 0 : i32
    return %c0_i32, %c0_i32_0 : i32, i32
  }
  func.func @transform_4(%arg0: i32) -> (i32, i32) {
    %c0_i32 = arith.constant 0 : i32
    %c0_i32_0 = arith.constant 0 : i32
    %c0_i32_1 = arith.constant 0 : i32
    return %c0_i32, %c0_i32_0 : i32, i32
  }
  func.func @transform_5(%arg0: i32) -> (i32, i32) {
    %c0_i32 = arith.constant 0 : i32
    %c0_i32_0 = arith.constant 0 : i32
    %c0_i32_1 = arith.constant 0 : i32
    return %c0_i32, %c0_i32_0 : i32, i32
  }
  func.func @transform_6(%arg0: i32) -> (i32, i32) {
    %c0_i32 = arith.constant 0 : i32
    %c0_i32_0 = arith.constant 0 : i32
    %c0_i32_1 = arith.constant 0 : i32
    return %c0_i32, %c0_i32_0 : i32, i32
  }
  func.func @transform_7(%arg0: i32) -> (i32, i32) {
    %c0_i32 = arith.constant 0 : i32
    %c0_i32_0 = arith.constant 0 : i32
    %c0_i32_1 = arith.constant 0 : i32
    return %c0_i32, %c0_i32_0 : i32, i32
  }
  func.func @transform_8(%arg0: i32) -> (i32, i32) {
    %c0_i32 = arith.constant 0 : i32
    %c0_i32_0 = arith.constant 0 : i32
    %c0_i32_1 = arith.constant 0 : i32
    return %c0_i32, %c0_i32_0 : i32, i32
  }
  func.func @transform_9(%arg0: i32) -> (i32, i32, i32) {
    %c0_i32 = arith.constant 0 : i32
    %c0_i32_0 = arith.constant 0 : i32
    %c0_i32_1 = arith.constant 0 : i32
    return %arg0, %c0_i32, %c0_i32_0 : i32, i32, i32
  }
}

</mosaic_0001>

<bundles_post_ra>
// kernel: tpu_custom_call.1
= control target key start
LH: loop header
LB: loop body
LE: loop exit
PB: predicated region body
PF: predicated region fallthrough
CT: control target
= control target key end

     0   :  { %v172_v1 = vlaneseq  ;;  %v6525_v2 = vmov 0   ;;  %v3935_v4 = vmov 1983009808   ;;  %s6514_s0 = inlined_call_operand.vmem [shape: f32[2,4,256], index: 0, kind: input, shape index: {}]   ;;  %s6515_s1 = inlined_call_operand.vmem [shape: bf16[4,384], index: 1, kind: input, shape index: {}]   ;;  %s6516_s2 = inlined_call_operand.vmem [shape: f32[4,1], index: 2, kind: input, shape index: {}]   ;;  %s6517_s3 = inlined_call_operand.vmem [shape: f32[128,4], index: 3, kind: input, shape index: {}]   ;;  %s6518_s4 = inlined_call_operand.vmem [shape: bf16[128,4], index: 4, kind: input, shape index: {}]   ;;  %s6519_s5 = inlined_call_operand.vmem [shape: bf16[4,128], index: 5, kind: input, shape index: {}]   ;;  %s6520_s6 = inlined_call_operand.vmem [shape: f32[4,1], index: 6, kind: input, shape index: {}]   ;;  %s6521_s7 = inlined_call_operand.vmem [shape: f32[4,1], index: 7, kind: input, shape index: {}]   ;;  %s6522_s8 = inlined_call_operand.vmem [shape: f32[128,128], index: 8, kind: input, shape index: {}]   ;;  %s6523_s9 = inlined_call_operand.hbm [shape: f32[2,4,256], index: 9, kind: output, shape index: {}]  }
   0x1   :  { %v36_v0 = vld [vmem:[%s6516_s2] sm:$0xf]  ;;  %3423 = vset.pattern.permute.xlu0 %v6525_v2  ;;  %362 = vmatprep.mubr.bf16.mxu0 %v6525_v2  ;;  %v186_v5 = vunpack.c.l.s4 %v3935_v4 }
   0x2   :  { %167 = vperm.xlu0 %3423, %v36_v0   ;;  %v173_v3 = vshrl.u32 %v172_v1, 7  ;;  %v4000_v7 = vld [vmem:[%s6515_s1] sm:$0x3f] }
   0x3   :  { %v187_v6 = vunpack.c.0.s8 %v186_v5 }
   0x5   :  { %v4002_v8 = vsub.s32 %v187_v6, %v173_v3 }
   0x7   :  { %v191_v9 = vrot.slane %v4000_v7, %v4002_v8 }
   0x9   :  { %v199_v10 = vcombine.high %v191_v9, %v191_v9 }
   0xa   :  { %14 = vsyncpa [#allocation3], 0  ;;  %v136_v11 = vld [vmem:[%s6514_s0] sm:$0xff]  ;;  %vm141_vm0 = vcmask 1043456   ;;  %v3936_v30 = vmov 839922192   ;;  %v184_v59 = vcombine.high %v4000_v7, %v4000_v7 }
   0xb   :  { %219 = vxpose.xlu1.c.b16.start.end [1/1] (short) %v199_v10, 128  ;;  %v137_v12 = vmul.f32 %v136_v11, %v136_v11  ;;  %v170_v31 = vunpack.c.l.s4 %v3936_v30  ;;  %vm323_vm1 = vcmask 1041408   ;;  %vm87_vm2 = vcmask 31744   ;;  %v39_v63 = vld [vmem:[%s6517_s3] sm:$0xff]  ;;  %v40_v1 = vld [vmem:[%s6517_s3 + $0x8] sm:$0xff]  ;;  %v41_v4 = vld [vmem:[%s6517_s3 + $0x10] sm:$0xff] }
   0xc   :  { %v198_v60 = vrot.slane %v184_v59, %v4002_v8  ;;  %v88_v0 = vsel %vm87_vm2, %v39_v63, -inf  ;;  %v94_v5 = vsel %vm87_vm2, %v41_v4, -inf  ;;  %v42_v6 = vld [vmem:[%s6517_s3 + $0x18] sm:$0xff]  ;;  %vm3938_vm3 = vmmov 0  }
   0xd   :  { %v139_v13 = vcombine.high %v137_v12, %v137_v12  ;;  %v142_v14 = vsel %vm141_vm0, %v137_v12, 0.0  ;;  %v171_v34 = vunpack.c.0.s8 %v170_v31  ;;  %v97_v7 = vsel %vm87_vm2, %v42_v6, -inf }
   0xe   :  { %v143_v16 = vrot.slane %v142_v14, 4 }
   0xf   :  { %v149_v15 = vsel %vm141_vm0, %v139_v13, 0.0  ;;  %v174_v36 = vsub.s32 %v171_v34, %v173_v3  ;;  %v91_v3 = vsel %vm87_vm2, %v40_v1, -inf }
  0x10   :  { %v150_v17 = vrot.slane %v149_v15, 4  ;;  %v144_v18 = vadd.f32 %v143_v16, %v142_v14 }
  0x12   :  { %v151_v19 = vadd.f32 %v150_v17, %v149_v15  ;;  %v145_v20 = vrot.slane %v144_v18, 2 }
  0x14   :  { %v152_v21 = vrot.slane %v151_v19, 2  ;;  %v146_v22 = vadd.f32 %v145_v20, %v144_v18 }
  0x16   :  { %v153_v23 = vadd.f32 %v152_v21, %v151_v19  ;;  %v147_v24 = vrot.slane %v146_v22, 1 }
  0x18   :  { %v154_v25 = vrot.slane %v153_v23, 1  ;;  %v148_v26 = vadd.f32 %v147_v24, %v146_v22 }
  0x1a   :  { %v155_v27 = vadd.f32 %v154_v25, %v153_v23  ;;  %v156_v28 = vmax.f32 %v148_v26, 1e-24 }
  0x1c   :  { %v157_v29 = vmax.f32 %v155_v27, 1e-24  ;;  %3434 = vrsqrt.f32 %v156_v28 }
  0x1e   :  { %3436 = vrsqrt.f32 %v157_v29 }
  0x20   :  { %203 = vxpose.xlu0.c.b16.start.end [1/1] (short) %v191_v9, 128 }
  0x26   :  { %v3435_v32 = vpop.eup %3434 }
  0x28   :  { %v3437_v33 = vpop.eup %3436  ;;  %235 = vxpose.xlu1.c.b16.start.end [1/1] (short) %v198_v60, 128 }
  0x29   :  { %v162_v35 = vcombine.low %v3435_v32, %v3437_v33 }
  0x2b   :  { %v164_v37 = vmul.f32 %v162_v35, %v136_v11 }
  0x2c   :  { %3424 = vset.pattern.permute.xlu1 %v6525_v2 }
  0x49   :  { %92 = vmax.xlane.f32.xlu0 %v91_v3 }
  0x4d   :  { %98 = vmax.xlane.f32.xlu0 %v97_v7 }
  0x51   :  { %89 = vmax.xlane.f32.xlu1 %v88_v0 }
  0x55   :  { %95 = vmax.xlane.f32.xlu1 %v94_v5 }
  0x71   :  { %v4056_v53 = vpop.trf.xlu1 }
  0x72   :  { %6660 = vst [vmem:[#allocation14_spill] sm:$0xff] %v4056_v53 }
  0x75   :  { %v4061_v54 = vpop.trf.xlu1 }
  0x76   :  { %6661 = vst [vmem:[#allocation15_spill] sm:$0xff] %v4061_v54 }
  0x79   :  { %v4066_v55 = vpop.trf.xlu1 }
  0x7a   :  { %6662 = vst [vmem:[#allocation16_spill] sm:$0xff] %v4066_v55 }
  0x7d   :  { %v4071_v56 = vpop.trf.xlu1 }
  0x7e   :  { %6663 = vst [vmem:[#allocation17_spill] sm:$0xff] %v4071_v56 }
  0x81   :  { %v168_v38 = vpop.permute.xlu0 %167  ;;  %v4076_v57 = vpop.trf.xlu1 }
  0x82   :  { %v4011_v39 = vrot.slane %v168_v38, %v174_v36  ;;  %6664 = vst [vmem:[#allocation18_spill] sm:$0xff] %v4076_v57 }
  0x84   :  { %6651 = vst [vmem:[#allocation5_spill] sm:$0xff] %v4011_v39  ;;  %v177_v40 = vmul.f32 %v4011_v39, %v164_v37 }
  0x85   :  { %v4081_v58 = vpop.trf.xlu1 }
  0x86   :  { %v179_v41 = vcombine.high %v177_v40, %v177_v40  ;;  %v181_v42 = vpack.c.bf16 %v177_v40, %v177_v40  ;;  %v4016_v45 = vpop.trf.xlu0  ;;  %6665 = vst [vmem:[#allocation19_spill] sm:$0xff] %v4081_v58 }
  0x87   :  { %6652 = vst [vmem:[#allocation6_spill] sm:$0xff] %v4016_v45 }
  0x88   :  { %v182_v43 = vpack.c.bf16 %v179_v41, %v179_v41  ;;  %v325_v44 = vsel %vm323_vm1, %v181_v42, 0 }
  0x89   :  { %v4089_v61 = vpop.trf.xlu1 }
  0x8a   :  { %3170 = vmatprep.subr.msk.bf16.mxu0 %vm323_vm1, %v182_v43  ;;  %v4021_v46 = vpop.trf.xlu0  ;;  %6666 = vst [vmem:[#allocation20_spill] sm:$0xff] %v4089_v61 }
  0x8b   :  { %331 = vmatpush1.bf16.msra.mxu0 %v325_v44  ;;  %6653 = vst [vmem:[#allocation7_spill] sm:$0xff] %v4021_v46 }
  0x8d   :  { %v4095_v62 = vpop.trf.xlu1 }
  0x8e   :  { %3171 = vmatmul.mubr.msk.bf16.vlgmr.msra.gmra.mrb[0].mxu0 %vm87_vm2, %v4016_v45  ;;  %v4026_v47 = vpop.trf.xlu0  ;;  %6667 = vst [vmem:[#allocation21_spill] sm:$0xff] %v4095_v62 }
  0x8f   :  { %372 = vmatprep.mubr.bf16.mxu0 %v6525_v2  ;;  %6654 = vst [vmem:[#allocation8_spill] sm:$0xff] %v4026_v47 }
  0x91   :  { %v4116_v19 = vpop.trf.xlu1 }
  0x92   :  { %v4031_v48 = vpop.trf.xlu0  ;;  %6668 = vst [vmem:[#allocation22_spill] sm:$0xff] %v4116_v19 }
  0x93   :  { %6655 = vst [vmem:[#allocation9_spill] sm:$0xff] %v4031_v48 }
  0x95   :  { %v4126_v28 = vpop.trf.xlu1 }
  0x96   :  { %3172 = vmatmul.mubr.msk.bf16.gmra.mrb[4].mxu0 %vm87_vm2, %v4021_v46  ;;  %v4036_v49 = vpop.trf.xlu0  ;;  %6669 = vst [vmem:[#allocation23_spill] sm:$0xff] %v4126_v28 }
  0x97   :  { %382 = vmatprep.mubr.bf16.mxu0 %v6525_v2  ;;  %6656 = vst [vmem:[#allocation10_spill] sm:$0xff] %v4036_v49 }
  0x99   :  { %v4143_v44 = vpop.trf.xlu1 }
  0x9a   :  { %v4041_v50 = vpop.trf.xlu0  ;;  %6670 = vst [vmem:[#allocation24_spill] sm:$0xff] %v4143_v44 }
  0x9b   :  { %6657 = vst [vmem:[#allocation11_spill] sm:$0xff] %v4041_v50 }
  0x9e   :  { %3173 = vmatmul.mubr.msk.bf16.gmra.mrb[8].mxu0 %vm87_vm2, %v4026_v47  ;;  %v4046_v51 = vpop.trf.xlu0 }
  0x9f   :  { %392 = vmatprep.mubr.bf16.mxu0 %v6525_v2  ;;  %6658 = vst [vmem:[#allocation12_spill] sm:$0xff] %v4046_v51 }
  0xa2   :  { %v4051_v52 = vpop.trf.xlu0 }
  0xa3   :  { %6659 = vst [vmem:[#allocation13_spill] sm:$0xff] %v4051_v52 }
  0xa6   :  { %3174 = vmatmul.mubr.msk.bf16.gmra.mrb[12].mxu0 %vm87_vm2, %v4031_v48 }
  0xa7   :  { %402 = vmatprep.mubr.bf16.mxu0 %v6525_v2 }
  0xae   :  { %3175 = vmatmul.mubr.msk.bf16.gmra.mrb[16].mxu0 %vm87_vm2, %v4036_v49 }
  0xaf   :  { %412 = vmatprep.mubr.bf16.mxu0 %v6525_v2 }
  0xb6   :  { %3176 = vmatmul.mubr.msk.bf16.gmra.mrb[20].mxu0 %vm87_vm2, %v4041_v50 }
  0xb7   :  { %422 = vmatprep.mubr.bf16.mxu0 %v6525_v2 }
  0xbe   :  { %3177 = vmatmul.mubr.msk.bf16.gmra.mrb[24].mxu0 %vm87_vm2, %v4046_v51 }
  0xbf   :  { %432 = vmatprep.mubr.bf16.mxu0 %v6525_v2 }
  0xc6   :  { %3178 = vmatmul.mubr.msk.bf16.gmra.mrb[28].mxu0 %vm87_vm2, %v4051_v52 }
  0xc7   :  { %442 = vmatprep.mubr.bf16.mxu0 %v6525_v2 }
  0xce   :  { %3179 = vmatmul.mubr.msk.bf16.gmra.mrb[32].mxu0 %vm87_vm2, %v4056_v53 }
  0xcf   :  { %452 = vmatprep.mubr.bf16.mxu0 %v6525_v2 }
  0xd6   :  { %3180 = vmatmul.mubr.msk.bf16.gmra.mrb[36].mxu0 %vm87_vm2, %v4061_v54 }
  0xd7   :  { %462 = vmatprep.mubr.bf16.mxu0 %v6525_v2 }
  0xde   :  { %3181 = vmatmul.mubr.msk.bf16.gmra.mrb[40].mxu0 %vm87_vm2, %v4066_v55 }
  0xdf   :  { %472 = vmatprep.mubr.bf16.mxu0 %v6525_v2 }
  0xe6   :  { %3182 = vmatmul.mubr.msk.bf16.gmra.mrb[44].mxu0 %vm87_vm2, %v4071_v56 }
  0xe7   :  { %482 = vmatprep.mubr.bf16.mxu0 %v6525_v2 }
  0xee   :  { %3183 = vmatmul.mubr.msk.bf16.gmra.mrb[48].mxu0 %vm87_vm2, %v4076_v57 }
  0xef   :  { %492 = vmatprep.mubr.bf16.mxu0 %v6525_v2 }
  0xf6   :  { %3184 = vmatmul.mubr.msk.bf16.gmra.mrb[52].mxu0 %vm87_vm2, %v4081_v58 }
  0xf7   :  { %502 = vmatprep.mubr.bf16.mxu0 %v6525_v2 }
  0xfe   :  { %3185 = vmatmul.mubr.msk.bf16.gmra.mrb[56].mxu0 %vm87_vm2, %v4089_v61 }
  0xff   :  { %512 = vmatprep.mubr.bf16.mxu0 %v6525_v2 }
 0x106   :  { %3186 = vmatmul.mubr.msk.bf16.gmra.mrb[60].mxu0 %vm87_vm2, %v4095_v62 }
 0x107   :  { %522 = vmatprep.mubr.bf16.mxu0 %v6525_v2 }
 0x10e   :  { %3187 = vmatmul.mubr.msk.bf16.gmra.mrb[64].mxu0 %vm87_vm2, %v4116_v19 }
 0x10f   :  { %532 = vmatprep.mubr.bf16.mxu0 %v6525_v2 }
 0x116   :  { %3188 = vmatmul.mubr.msk.bf16.gmra.mrb[68].mxu0 %vm87_vm2, %v4126_v28 }
 0x117   :  { %542 = vmatprep.mubr.bf16.mxu0 %v6525_v2 }
 0x11e   :  { %3189 = vmatmul.mubr.msk.bf16.gmra.mrb[72].mxu0 %vm87_vm2, %v4143_v44 }
 0x11f   :  { %552 = vmatprep.mubr.bf16.mxu0 %v6525_v2 }
 0x161   :  { %v364_v8 = vpop.f32.mrb[0].mxu0 }
 0x162   :  { %v366_v9 = vpop.f32.mrb[1].mxu0 }
 0x163   :  { %v368_v10 = vpop.f32.mrb[2].mxu0 }
 0x164   :  { %v619_v11 = vmax.f32 %v364_v8, %v368_v10  ;;  %v370_v12 = vpop.f32.mrb[3].mxu0 }
 0x165   :  { %v628_v13 = vmax.f32 %v366_v9, %v370_v12 }
 0x169   :  { %v374_v14 = vpop.f32.mrb[4].mxu0 }
 0x16a   :  { %v620_v15 = vmax.f32 %v619_v11, %v374_v14  ;;  %v376_v16 = vpop.f32.mrb[5].mxu0 }
 0x16b   :  { %v629_v17 = vmax.f32 %v628_v13, %v376_v16  ;;  %v378_v18 = vpop.f32.mrb[6].mxu0 }
 0x16c   :  { %v621_v20 = vmax.f32 %v620_v15, %v378_v18  ;;  %v4118_v21 = vpop.f32.mrb[7].mxu0 }
 0x16d   :  { %v630_v22 = vmax.f32 %v629_v17, %v4118_v21 }
 0x16e   :  { %v622_v23 = vrot.slane %v621_v20, 4 }
 0x16f   :  { %v631_v24 = vrot.slane %v630_v22, 4 }
 0x170   :  { %v623_v25 = vmax.f32 %v621_v20, %v622_v23 }
 0x171   :  { %v632_v26 = vmax.f32 %v630_v22, %v631_v24  ;;  %v4124_v27 = vpop.f32.mrb[8].mxu0  ;;  %v4161_v24 = vpop.trf.xlu1 }
 0x172   :  { %v624_v29 = vrot.slane %v623_v25, 2  ;;  %v4128_v30 = vpop.f32.mrb[9].mxu0  ;;  %6671 = vst [vmem:[#allocation25_spill] sm:$0xff] %v4161_v24  ;;  %3190 = vmatmul.mubr.msk.bf16.gmra.mrb[76].mxu0 %vm87_vm2, %v4161_v24 }
 0x173   :  { %v633_v31 = vrot.slane %v632_v26, 2  ;;  %v4130_v32 = vpop.f32.mrb[10].mxu0  ;;  %562 = vmatprep.mubr.bf16.mxu0 %v6525_v2 }
 0x174   :  { %v625_v33 = vmax.f32 %v623_v25, %v624_v29  ;;  %v637_v34 = vmax.f32 %v4124_v27, %v4130_v32  ;;  %v4134_v35 = vpop.f32.mrb[11].mxu0 }
 0x175   :  { %v634_v36 = vmax.f32 %v632_v26, %v633_v31  ;;  %v646_v37 = vmax.f32 %v4128_v30, %v4134_v35 }
 0x176   :  { %v626_v38 = vrot.slane %v625_v33, 1 }
 0x177   :  { %v635_v40 = vrot.slane %v634_v36, 1 }
 0x178   :  { %v627_v41 = vmax.f32 %v625_v33, %v626_v38 }
 0x179   :  { %v636_v42 = vmax.f32 %v634_v36, %v635_v40  ;;  %v4141_v43 = vpop.f32.mrb[12].mxu0 }
 0x17a   :  { %v691_v59 = vsub.f32 %v364_v8, %v627_v41  ;;  %v693_v60 = vsub.f32 %v368_v10, %v627_v41  ;;  %v695_v63 = vsub.f32 %v374_v14, %v627_v41  ;;  %v697_v0 = vsub.f32 %v378_v18, %v627_v41  ;;  %v4145_v1 = vpop.f32.mrb[13].mxu0 }
 0x17b   :  { %v692_v3 = vsub.f32 %v366_v9, %v636_v42  ;;  %v694_v4 = vsub.f32 %v370_v12, %v636_v42  ;;  %v696_v5 = vsub.f32 %v376_v16, %v636_v42  ;;  %v698_v6 = vsub.f32 %v4118_v21, %v636_v42  ;;  %v4148_v7 = vpop.f32.mrb[14].mxu0 }
 0x17c   :  { %v723_v11 = vmul.f32 1.442695, %v691_v59  ;;  %v727_v13 = vmul.f32 1.442695, %v693_v60  ;;  %v731_v15 = vmul.f32 1.442695, %v695_v63  ;;  %v638_v17 = vmax.f32 %v637_v34, %v4141_v43 }
 0x17d   :  { %v735_v8 = vmul.f32 1.442695, %v697_v0  ;;  %v647_v10 = vmax.f32 %v646_v37, %v4145_v1  ;;  %v725_v9 = vmul.f32 1.442695, %v692_v3  ;;  %v4156_v14 = vpop.f32.mrb[15].mxu0 }
 0x17e   :  { %3438 = vpow2.f32 %v723_v11  ;;  %v639_v12 = vmax.f32 %v638_v17, %v4148_v7  ;;  %v729_v16 = vmul.f32 1.442695, %v694_v4  ;;  %v733_v21 = vmul.f32 1.442695, %v696_v5  ;;  %v4182_v4 = vpop.trf.xlu1 }
 0x17f   :  { %3440 = vpow2.f32 %v727_v13  ;;  %v648_v18 = vmax.f32 %v647_v10, %v4156_v14  ;;  %v737_v29 = vmul.f32 1.442695, %v698_v6  ;;  %6672 = vst [vmem:[#allocation26_spill] sm:$0xff] %v4182_v4  ;;  %3191 = vmatmul.mubr.msk.bf16.gmra.mrb[80].mxu0 %vm87_vm2, %v4182_v4 }
 0x180   :  { %3442 = vpow2.f32 %v731_v15  ;;  %v640_v20 = vrot.slane %v639_v12, 4  ;;  %572 = vmatprep.mubr.bf16.mxu0 %v6525_v2 }
 0x181   :  { %3444 = vpow2.f32 %v735_v8  ;;  %v649_v22 = vrot.slane %v648_v18, 4  ;;  %v4159_v23 = vpop.f32.mrb[16].mxu0 }
 0x182   :  { %3446 = vpow2.f32 %v725_v9  ;;  %v641_v25 = vmax.f32 %v639_v12, %v640_v20  ;;  %v4163_v26 = vpop.f32.mrb[17].mxu0 }
 0x183   :  { %3448 = vpow2.f32 %v729_v16  ;;  %v650_v31 = vmax.f32 %v648_v18, %v649_v22  ;;  %v4165_v33 = vpop.f32.mrb[18].mxu0 }
 0x184   :  { %v642_v34 = vrot.slane %v641_v25, 2  ;;  %v655_v36 = vmax.f32 %v4159_v23, %v4165_v33  ;;  %v4169_v37 = vpop.f32.mrb[19].mxu0  ;;  %3450 = vpow2.f32 %v733_v21 }
 0x185   :  { %v651_v38 = vrot.slane %v650_v31, 2  ;;  %v664_v40 = vmax.f32 %v4163_v26, %v4169_v37  ;;  %3452 = vpow2.f32 %v737_v29 }
 0x186   :  { %v643_v41 = vmax.f32 %v641_v25, %v642_v34 }
 0x187   :  { %v652_v42 = vmax.f32 %v650_v31, %v651_v38 }
 0x188   :  { %v4176_v59 = vpop.eup %3438  ;;  %v644_v60 = vrot.slane %v643_v41, 1 }
 0x189   :  { %v4178_v63 = vpop.eup %3440  ;;  %v653_v0 = vrot.slane %v652_v42, 1  ;;  %v4180_v3 = vpop.f32.mrb[20].mxu0 }
 0x18a   :  { %v4184_v5 = vpop.eup %3442  ;;  %v787_v6 = vadd.f32 %v4178_v63, %v4176_v59  ;;  %v645_v11 = vmax.f32 %v643_v41, %v644_v60  ;;  %v656_v13 = vmax.f32 %v655_v36, %v4180_v3  ;;  %v4189_v15 = vpop.f32.mrb[21].mxu0 }
 0x18b   :  { %v4191_v17 = vpop.eup %3444  ;;  %v654_v8 = vmax.f32 %v652_v42, %v653_v0  ;;  %v665_v10 = vmax.f32 %v664_v40, %v4189_v15  ;;  %v4194_v9 = vpop.f32.mrb[22].mxu0 }
 0x18c   :  { %v4196_v12 = vpop.eup %3446  ;;  %v788_v16 = vadd.f32 %v4184_v5, %v787_v6  ;;  %v699_v18 = vsub.f32 %v4124_v27, %v645_v11  ;;  %v701_v20 = vsub.f32 %v4130_v32, %v645_v11  ;;  %v703_v21 = vsub.f32 %v4141_v43, %v645_v11  ;;  %v4202_v22 = vpop.f32.mrb[23].mxu0 }
 0x18d   :  { %v4206_v25 = vpop.eup %3448  ;;  %v705_v29 = vsub.f32 %v4148_v7, %v645_v11  ;;  %v700_v31 = vsub.f32 %v4128_v30, %v654_v8  ;;  %v702_v34 = vsub.f32 %v4134_v35, %v654_v8  ;;  %v704_v36 = vsub.f32 %v4145_v1, %v654_v8 }
 0x18e   :  { %v789_v27 = vadd.f32 %v4191_v17, %v788_v16  ;;  %v796_v32 = vadd.f32 %v4206_v25, %v4196_v12  ;;  %v739_v43 = vmul.f32 1.442695, %v699_v18  ;;  %v743_v38 = vmul.f32 1.442695, %v701_v20  ;;  %v4216_v40 = vpop.eup %3450  ;;  %v4225_v16 = vpop.trf.xlu1 }
 0x18f   :  { %v747_v41 = vmul.f32 1.442695, %v703_v21  ;;  %v751_v42 = vmul.f32 1.442695, %v705_v29  ;;  %v706_v7 = vsub.f32 %v4156_v14, %v654_v8  ;;  %v741_v1 = vmul.f32 1.442695, %v700_v31  ;;  %v4220_v60 = vpop.eup %3452  ;;  %3192 = vmatmul.mubr.msk.bf16.gmra.mrb[84].mxu0 %vm87_vm2, %v4225_v16 }
 0x190   :  { %v790_v30 = vrot.slane %v789_v27, 4  ;;  %v797_v35 = vadd.f32 %v4216_v40, %v796_v32  ;;  %3454 = vpow2.f32 %v739_v43  ;;  %v745_v0 = vmul.f32 1.442695, %v702_v34  ;;  %6673 = vst [vmem:[#allocation27_spill] sm:$0xff] %v4225_v16  ;;  %582 = vmatprep.mubr.bf16.mxu0 %v6525_v2 }
 0x191   :  { %3456 = vpow2.f32 %v743_v38  ;;  %v657_v6 = vmax.f32 %v656_v13, %v4194_v9  ;;  %v4223_v11 = vpop.f32.mrb[24].mxu0  ;;  %v666_v14 = vmax.f32 %v665_v10, %v4202_v22  ;;  %v749_v21 = vmul.f32 1.442695, %v704_v36 }
 0x192   :  { %v791_v18 = vadd.f32 %v790_v30, %v789_v27  ;;  %v798_v20 = vadd.f32 %v4220_v60, %v797_v35  ;;  %3458 = vpow2.f32 %v747_v41  ;;  %v4229_v8 = vpop.f32.mrb[25].mxu0  ;;  %v753_v29 = vmul.f32 1.442695, %v706_v7 }
 0x193   :  { %3460 = vpow2.f32 %v751_v42  ;;  %v658_v31 = vrot.slane %v657_v6, 4  ;;  %v4231_v32 = vpop.f32.mrb[26].mxu0  ;;  %v667_v43 = vrot.slane %v666_v14, 4 }
 0x194   :  { %v792_v34 = vrot.slane %v791_v18, 2  ;;  %v799_v13 = vrot.slane %v798_v20, 4  ;;  %3462 = vpow2.f32 %v741_v1  ;;  %v4233_v38 = vpop.f32.mrb[27].mxu0  ;;  %v673_v10 = vmax.f32 %v4223_v11, %v4231_v32 }
 0x195   :  { %3464 = vpow2.f32 %v745_v0  ;;  %v659_v27 = vmax.f32 %v657_v6, %v658_v31  ;;  %v682_v36 = vmax.f32 %v4229_v8, %v4233_v38  ;;  %v668_v7 = vmax.f32 %v666_v14, %v667_v43  ;;  %v4245_v0 = vld [vmem:[%s6517_s3 + $0x20] sm:$0xff]  ;;  %v4250_v6 = vld [vmem:[%s6517_s3 + $0x28] sm:$0xff]  ;;  %v4259_v14 = vpop.trf.xlu1 }
 0x196   :  { %v793_v41 = vadd.f32 %v792_v34, %v791_v18  ;;  %v800_v42 = vadd.f32 %v799_v13, %v798_v20  ;;  %3466 = vpow2.f32 %v749_v21  ;;  %v4257_v20 = vld [vmem:[%s6517_s3 + $0x30] sm:$0xff]  ;;  %6674 = vst [vmem:[#allocation28_spill] sm:$0xff] %v4259_v14 }
 0x197   :  { %v660_v30 = vrot.slane %v659_v27, 2  ;;  %v669_v4 = vrot.slane %v668_v7, 2  ;;  %3468 = vpow2.f32 %v753_v29  ;;  %v4269_v29 = vld [vmem:[%s6517_s3 + $0x38] sm:$0xff]  ;;  %3193 = vmatmul.mubr.msk.bf16.gmra.mrb[88].mxu0 %vm87_vm2, %v4259_v14 }
 0x198   :  { %v794_v35 = vrot.slane %v793_v41, 1  ;;  %v801_v1 = vrot.slane %v800_v42, 2  ;;  %6675 = vst [vmem:[#allocation29_spill] sm:$0xff] %v4269_v29  ;;  %v4302_v61 = vsel %vm87_vm2, %v4269_v29, -inf }
 0x199   :  { %v661_v31 = vmax.f32 %v659_v27, %v660_v30  ;;  %v4252_v18 = vpop.f32.mrb[28].mxu0  ;;  %v670_v43 = vmax.f32 %v668_v7, %v669_v4  ;;  %v4282_v4 = vsel %vm87_vm2, %v4250_v6, -inf  ;;  %v4328_v46 = vpop.trf.xlu1 }
 0x19a   :  { %v4261_v21 = vpop.eup %3454  ;;  %v795_v34 = vadd.f32 %v794_v35, %v793_v41  ;;  %v802_v13 = vadd.f32 %v801_v1, %v800_v42  ;;  %v674_v2 = vmax.f32 %v673_v10, %v4252_v18  ;;  %v4264_v16 = vpop.f32.mrb[29].mxu0  ;;  %v4278_v41 = vsel %vm87_vm2, %v4245_v0, -inf  ;;  %6677 = vst [vmem:[#allocation30_spill] sm:$0xff] %v4328_v46 }
 0x19b   :  { %v4271_v27 = vpop.eup %3456  ;;  %v662_v30 = vrot.slane %v661_v31, 1  ;;  %v683_v24 = vmax.f32 %v682_v36, %v4264_v16  ;;  %v4274_v44 = vpop.f32.mrb[30].mxu0  ;;  %v671_v7 = vrot.slane %v670_v43, 1  ;;  %v4293_v36 = vsel %vm87_vm2, %v4257_v20, -inf }
 0x19c   :  { %v4284_v10 = vpop.eup %3458  ;;  %v805_v42 = vadd.f32 %v4271_v27, %v4261_v21  ;;  %v675_v35 = vmax.f32 %v674_v2, %v4274_v44  ;;  %v4289_v1 = vpop.f32.mrb[31].mxu0  ;;  %3470 = vrcp.f32 %v795_v34  ;;  %v6676_v2 = vmov 0  }
 0x19d   :  { %v4297_v28 = vpop.eup %3460  ;;  %v663_v19 = vmax.f32 %v661_v31, %v662_v30  ;;  %v684_v62 = vmax.f32 %v683_v24, %v4289_v1  ;;  %592 = vmatprep.mubr.bf16.mxu0 %v6676_v2  ;;  %v672_v56 = vmax.f32 %v670_v43, %v671_v7  ;;  %v803_v54 = vrot.slane %v802_v13, 1 }
 0x19e   :  { %v4305_v58 = vpop.eup %3462  ;;  %v806_v57 = vadd.f32 %v4284_v10, %v805_v42  ;;  %v676_v55 = vrot.slane %v675_v35, 4 }
 0x19f   :  { %v4308_v14 = vpop.eup %3464  ;;  %v707_v31 = vsub.f32 %v4159_v23, %v663_v19  ;;  %v709_v24 = vsub.f32 %v4165_v33, %v663_v19  ;;  %v711_v34 = vsub.f32 %v4180_v3, %v663_v19  ;;  %v713_v30 = vsub.f32 %v4194_v9, %v663_v19  ;;  %3194 = vmatmul.mubr.msk.bf16.gmra.mrb[92].mxu0 %vm87_vm2, %v4328_v46 }
 0x1a0   :  { %v807_v53 = vadd.f32 %v4297_v28, %v806_v57  ;;  %v814_v52 = vadd.f32 %v4308_v14, %v4305_v58  ;;  %v708_v42 = vsub.f32 %v4163_v26, %v672_v56  ;;  %v710_v43 = vsub.f32 %v4169_v37, %v672_v56  ;;  %v4319_v7 = vpop.eup %3466  ;;  %1715 = vmatprep.mubr.bf16.mxu0 %v6676_v2 }
 0x1a1   :  { %v755_v51 = vmul.f32 1.442695, %v707_v31  ;;  %v759_v50 = vmul.f32 1.442695, %v709_v24  ;;  %v763_v23 = vmul.f32 1.442695, %v711_v34  ;;  %v712_v33 = vsub.f32 %v4189_v15, %v672_v56  ;;  %v4326_v48 = vpop.eup %3468 }
 0x1a2   :  { %v808_v49 = vrot.slane %v807_v53, 4  ;;  %v815_v3 = vadd.f32 %v4319_v7, %v814_v52  ;;  %v767_v19 = vmul.f32 1.442695, %v713_v30  ;;  %v714_v57 = vsub.f32 %v4202_v22, %v672_v56  ;;  %v4324_v9 = vpop.f32.mrb[32].mxu0 }
 0x1a3   :  { %3472 = vpow2.f32 %v755_v51  ;;  %v757_v26 = vmul.f32 1.442695, %v708_v42  ;;  %v761_v37 = vmul.f32 1.442695, %v710_v43  ;;  %v804_v47 = vadd.f32 %v803_v54, %v802_v13  ;;  %v4331_v34 = vpop.f32.mrb[33].mxu0  ;;  %v4345_v13 = vld [vmem:[%s6517_s3 + $0x40] sm:$0xff] }
 0x1a4   :  { %v809_v31 = vadd.f32 %v808_v49, %v807_v53  ;;  %v816_v24 = vadd.f32 %v4326_v48, %v815_v3  ;;  %3474 = vpow2.f32 %v759_v50  ;;  %v765_v15 = vmul.f32 1.442695, %v712_v33  ;;  %v4335_v22 = vpop.f32.mrb[34].mxu0  ;;  %6678 = vst [vmem:[#allocation31_spill] sm:$0xff] %v4345_v13 }
 0x1a5   :  { %3476 = vpow2.f32 %v763_v23  ;;  %v677_v52 = vmax.f32 %v675_v35, %v676_v55  ;;  %v685_v56 = vrot.slane %v684_v62, 4  ;;  %v923_v51 = vmax.f32 %v4324_v9, %v4331_v34  ;;  %v4340_v54 = vpop.f32.mrb[35].mxu0 }
 0x1a6   :  { %v810_v49 = vrot.slane %v809_v31, 2  ;;  %v817_v53 = vrot.slane %v816_v24, 4  ;;  %3478 = vpow2.f32 %v767_v19  ;;  %v769_v50 = vmul.f32 1.442695, %v714_v57  ;;  %v3471_v55 = vpop.eup %3470 }
 0x1a7   :  { %3480 = vpow2.f32 %v757_v26  ;;  %v678_v35 = vrot.slane %v677_v52, 2  ;;  %v686_v30 = vmax.f32 %v684_v62, %v685_v56  ;;  %924 = vmax.xlane.f32.xlu1 %v923_v51  ;;  %v926_v42 = vmax.f32 %v4335_v22, %v4340_v54  ;;  %v4367_v51 = vld [vmem:[%s6517_s3 + $0x48] sm:$0xff] }
 0x1a8   :  { %v811_v43 = vadd.f32 %v810_v49, %v809_v31  ;;  %v818_v23 = vadd.f32 %v817_v53, %v816_v24  ;;  %3482 = vpow2.f32 %v761_v37  ;;  %v867_v33 = vmul.f32 0.17677669, %v3471_v55  ;;  %6679 = vst [vmem:[#allocation32_spill] sm:$0xff] %v4367_v51  ;;  %v4372_v49 = vld [vmem:[%s6517_s3 + $0x50] sm:$0xff] }
 0x1a9   :  { %3484 = vpow2.f32 %v765_v15  ;;  %v679_v3 = vmax.f32 %v677_v52, %v678_v35  ;;  %v687_v19 = vrot.slane %v686_v30, 2  ;;  %927 = vmax.xlane.f32.xlu0 %v926_v42  ;;  %v4349_v57 = vpop.f32.mrb[36].mxu0  ;;  %v4353_v46 = vsel %vm87_vm2, %v4345_v13, -inf  ;;  %6680 = vst [vmem:[#allocation33_spill] sm:$0xff] %v4372_v49 }
 0x1aa   :  { %v812_v26 = vrot.slane %v811_v43, 1  ;;  %v819_v62 = vrot.slane %v818_v23, 2  ;;  %3486 = vpow2.f32 %v769_v50  ;;  %v4355_v56 = vpop.f32.mrb[37].mxu0  ;;  %v4358_v31 = vmul.f32 %v4176_v59, %v867_v33 }
 0x1ab   :  { %v680_v37 = vrot.slane %v679_v3, 1  ;;  %v688_v24 = vmax.f32 %v686_v30, %v687_v19  ;;  %v4360_v15 = vpop.f32.mrb[38].mxu0  ;;  %3488 = vrcp.f32 %v804_v47  ;;  %v929_v52 = vmax.f32 %v4349_v57, %v4355_v56 }
 0x1ac   :  { %v813_v59 = vadd.f32 %v812_v26, %v811_v43  ;;  %v820_v53 = vadd.f32 %v819_v62, %v818_v23  ;;  %v4374_v50 = vpop.f32.mrb[39].mxu0  ;;  %v4377_v55 = vmul.f32 %v4178_v63, %v867_v33  ;;  %v4380_v47 = vmul.f32 %v4184_v5, %v867_v33 }
 0x1ad   :  { %v4382_v35 = vpop.eup %3472  ;;  %v681_v30 = vmax.f32 %v679_v3, %v680_v37  ;;  %v689_v42 = vrot.slane %v688_v24, 1  ;;  %930 = vmax.xlane.f32.xlu1 %v929_v52  ;;  %v932_v19 = vmax.f32 %v4360_v15, %v4374_v50  ;;  %v4387_v45 = vmul.f32 %v4191_v17, %v867_v33 }
 0x1ae   :  { %v4389_v43 = vpop.eup %3474  ;;  %v4395_v5 = vsel %vm87_vm2, %v4367_v51, -inf  ;;  %v4399_v23 = vsel %vm87_vm2, %v4372_v49, -inf  ;;  %3490 = vrcp.f32 %v813_v59  ;;  %v821_v2 = vrot.slane %v820_v53, 1 }
 0x1af   :  { %v4401_v3 = vpop.eup %3476  ;;  %v823_v17 = vadd.f32 %v4389_v43, %v4382_v35  ;;  %v715_v33 = vsub.f32 %v4223_v11, %v681_v30  ;;  %v717_v26 = vsub.f32 %v4231_v32, %v681_v30  ;;  %v719_v62 = vsub.f32 %v4252_v18, %v681_v30  ;;  %933 = vmax.xlane.f32.xlu0 %v932_v19 }
 0x1b0   :  { %v4408_v37 = vpop.eup %3478  ;;  %v721_v52 = vsub.f32 %v4274_v44, %v681_v30  ;;  %v690_v63 = vmax.f32 %v688_v24, %v689_v42 }
 0x1b1   :  { %v4413_v39 = vpop.eup %3480  ;;  %v824_v49 = vadd.f32 %v4401_v3, %v823_v17  ;;  %v771_v51 = vmul.f32 1.442695, %v715_v33  ;;  %v775_v11 = vmul.f32 1.442695, %v717_v26  ;;  %v779_v13 = vmul.f32 1.442695, %v719_v62  ;;  %101 = vmax.xlane.f32.xlu1 %v4278_v41 }
 0x1b2   :  { %v4417_v32 = vpop.eup %3482  ;;  %v783_v18 = vmul.f32 1.442695, %v721_v52  ;;  %v716_v19 = vsub.f32 %v4229_v8, %v690_v63  ;;  %v718_v44 = vsub.f32 %v4233_v38, %v690_v63  ;;  %v720_v24 = vsub.f32 %v4264_v16, %v690_v63  ;;  %v4422_v30 = vpop.f32.mrb[40].mxu0 }
 0x1b3   :  { %v4424_v42 = vpop.eup %3484  ;;  %v825_v17 = vadd.f32 %v4408_v37, %v824_v49  ;;  %v832_v33 = vadd.f32 %v4417_v32, %v4413_v39  ;;  %3492 = vpow2.f32 %v771_v51  ;;  %v722_v41 = vsub.f32 %v4289_v1, %v690_v63  ;;  %104 = vmax.xlane.f32.xlu0 %v4282_v4  ;;  %v4431_v26 = vpop.f32.mrb[41].mxu0 }
 0x1b4   :  { %v4433_v8 = vpop.eup %3486  ;;  %3494 = vpow2.f32 %v775_v11  ;;  %v773_v16 = vmul.f32 1.442695, %v716_v19  ;;  %v777_v38 = vmul.f32 1.442695, %v718_v44  ;;  %v822_v62 = vadd.f32 %v821_v2, %v820_v53  ;;  %v4437_v51 = vpop.f32.mrb[42].mxu0 }
 0x1b5   :  { %v3489_v52 = vpop.eup %3488  ;;  %v826_v59 = vrot.slane %v825_v17, 4  ;;  %v833_v49 = vadd.f32 %v4424_v42, %v832_v33  ;;  %3496 = vpow2.f32 %v779_v13  ;;  %v781_v29 = vmul.f32 1.442695, %v720_v24  ;;  %107 = vmax.xlane.f32.xlu1 %v4293_v36  ;;  %v4439_v63 = vpop.f32.mrb[43].mxu0  ;;  %v4448_v36 = vld [vmem:[%s6517_s3 + $0x58] sm:$0xff] }
 0x1b6   :  { %3498 = vpow2.f32 %v783_v18  ;;  %v785_v4 = vmul.f32 1.442695, %v722_v41  ;;  %v868_v1 = vmul.f32 0.17677669, %v3489_v52  ;;  %6681 = vst [vmem:[#allocation34_spill] sm:$0xff] %v4448_v36 }
 0x1b7   :  { %v827_v19 = vadd.f32 %v826_v59, %v825_v17  ;;  %v834_v2 = vadd.f32 %v4433_v8, %v833_v49  ;;  %3500 = vpow2.f32 %v773_v16  ;;  %110 = vmax.xlane.f32.xlu0 %v4302_v61 }
 0x1b8   :  { %v3491_v53 = vpop.eup %3490  ;;  %3502 = vpow2.f32 %v777_v38  ;;  %v876_v18 = vmul.f32 %v4196_v12, %v868_v1  ;;  %v878_v44 = vmul.f32 %v4206_v25, %v868_v1  ;;  %v880_v59 = vmul.f32 %v4216_v40, %v868_v1 }
 0x1b9   :  { %v828_v24 = vrot.slane %v827_v19, 2  ;;  %v835_v17 = vrot.slane %v834_v2, 4  ;;  %3504 = vpow2.f32 %v781_v29  ;;  %v882_v61 = vmul.f32 %v4220_v60, %v868_v1  ;;  %113 = vmax.xlane.f32.xlu1 %v4353_v46  ;;  %v4457_v33 = vpop.f32.mrb[44].mxu0  ;;  %v4467_v46 = vld [vmem:[%s6517_s3 + $0x60] sm:$0xff] }
 0x1ba   :  { %3506 = vpow2.f32 %v785_v4  ;;  %v908_v41 = vpack.c.bf16 %v878_v44, %v876_v18  ;;  %v869_v16 = vmul.f32 0.17677669, %v3491_v53  ;;  %v121_v38 = vsel %vm87_vm2, %v4448_v36, -inf  ;;  %v4461_v12 = vpop.f32.mrb[45].mxu0  ;;  %6682 = vst [vmem:[#allocation35_spill] sm:$0xff] %v4467_v46 }
 0x1bb   :  { %v829_v25 = vadd.f32 %v828_v24, %v827_v19  ;;  %v836_v52 = vadd.f32 %v835_v17, %v834_v2  ;;  %v910_v40 = vpack.c.bf16 %v882_v61, %v880_v59  ;;  %116 = vmax.xlane.f32.xlu0 %v4395_v5  ;;  %3508 = vrcp.f32 %v822_v62  ;;  %v4469_v60 = vpop.f32.mrb[46].mxu0  ;;  %v4515_v17 = vld [vmem:[%s6517_s3 + $0x70] sm:$0xff] }
 0x1bc   :  { %1683 = vmatprep.subr.bf16.mxu0 %v908_v41  ;;  %v4472_v29 = vmul.f32 %v4261_v21, %v869_v16  ;;  %v4475_v49 = vmul.f32 %v4271_v27, %v869_v16  ;;  %v4478_v4 = vmul.f32 %v4284_v10, %v869_v16  ;;  %v4481_v5 = vmul.f32 %v4297_v28, %v869_v16  ;;  %v4483_v62 = vpop.f32.mrb[47].mxu0  ;;  %v4494_v21 = vld [vmem:[%s6517_s3 + $0x68] sm:$0xff] }
 0x1bd   :  { %v4485_v1 = vpop.eup %3492  ;;  %v830_v19 = vrot.slane %v829_v25, 1  ;;  %v837_v2 = vrot.slane %v836_v52, 2  ;;  %v6683_v53 = vpack.c.bf16 %v4377_v55, %v4358_v31  ;;  %119 = vmax.xlane.f32.xlu1 %v4399_v23  ;;  %6684 = vst [vmem:[#allocation36_spill] sm:$0xff] %v4494_v21  ;;  %v124_v55 = vsel %vm87_vm2, %v4467_v46, -inf  ;;  %6685 = vst [vmem:[#allocation37_spill] sm:$0xff] %v4515_v17 }
 0x1be   :  { %v4500_v10 = vpop.eup %3494  ;;  %v127_v41 = vsel %vm87_vm2, %v4494_v21, -inf }
 0x1bf   :  { %1684 = vmatpush1.bf16.msra.mxu0 %v6683_v53  ;;  %v4508_v18 = vpop.eup %3496  ;;  %v831_v44 = vadd.f32 %v830_v19, %v829_v25  ;;  %v838_v59 = vadd.f32 %v837_v2, %v836_v52  ;;  %v841_v24 = vadd.f32 %v4500_v10, %v4485_v1  ;;  %122 = vmax.xlane.f32.xlu0 %v121_v38  ;;  %v4530_v38 = vld [vmem:[%s6517_s3 + $0x78] sm:$0xff]  ;;  %v130_v53 = vsel %vm87_vm2, %v4515_v17, -inf }
 0x1c0   :  { %1685 = vmatprep.subr.bf16.mxu0 %v910_v40  ;;  %v4517_v61 = vpop.eup %3498  ;;  %v6686_v25 = vpack.c.bf16 %v4387_v45, %v4380_v47  ;;  %6687 = vst [vmem:[#allocation38_spill] sm:$0xff] %v4530_v38  ;;  %v133_v28 = vsel %vm87_vm2, %v4530_v38, -inf }
 0x1c1   :  { %v4521_v16 = vpop.eup %3500  ;;  %v842_v40 = vadd.f32 %v4508_v18, %v841_v24  ;;  %125 = vmax.xlane.f32.xlu1 %v124_v55  ;;  %v4532_v52 = vpop.f32.mrb[48].mxu0  ;;  %v839_v19 = vrot.slane %v838_v59, 1  ;;  %3510 = vrcp.f32 %v831_v44 }
 0x1c2   :  { %v4534_v2 = vpop.eup %3502  ;;  %v4538_v24 = vpop.f32.mrb[49].mxu0 }
 0x1c3   :  { %1686 = vmatpush1.bf16.msra.mxu0 %v6686_v25  ;;  %6688 = vst [vmem:[#allocation39_spill] sm:$0xff] %v4538_v24  ;;  %v4540_v23 = vpop.eup %3504  ;;  %v843_v45 = vadd.f32 %v4517_v61, %v842_v40  ;;  %v850_v47 = vadd.f32 %v4534_v2, %v4521_v16  ;;  %128 = vmax.xlane.f32.xlu0 %v127_v41  ;;  %v4545_v25 = vpop.f32.mrb[50].mxu0 }
 0x1c4   :  { %v840_v55 = vadd.f32 %v839_v19, %v838_v59  ;;  %v947_v44 = vmax.f32 %v4532_v52, %v4538_v24  ;;  %v4549_v27 = vpop.eup %3506  ;;  %v4553_v31 = vpop.f32.mrb[51].mxu0 }
 0x1c5   :  { %v3509_v13 = vpop.eup %3508  ;;  %v844_v11 = vrot.slane %v843_v45, 4  ;;  %v851_v40 = vadd.f32 %v4540_v23, %v850_v47  ;;  %131 = vmax.xlane.f32.xlu1 %v130_v53  ;;  %v950_v59 = vmax.f32 %v4545_v25, %v4553_v31  ;;  %v6689_v53 = vmax.f32 %v4422_v30, %v4431_v26 }
 0x1c6   :  { %3512 = vrcp.f32 %v840_v55  ;;  %v870_v41 = vmul.f32 0.17677669, %v3509_v13 }
 0x1c7   :  { %v845_v19 = vadd.f32 %v844_v11, %v843_v45  ;;  %v852_v17 = vadd.f32 %v4549_v27, %v851_v40  ;;  %134 = vmax.xlane.f32.xlu0 %v133_v28 }
 0x1c8   :  { %v884_v21 = vmul.f32 %v4305_v58, %v870_v41  ;;  %v886_v38 = vmul.f32 %v4308_v14, %v870_v41  ;;  %v888_v46 = vmul.f32 %v4319_v7, %v870_v41  ;;  %v890_v36 = vmul.f32 %v4326_v48, %v870_v41 }
 0x1c9   :  { %v846_v24 = vrot.slane %v845_v19, 2  ;;  %v853_v47 = vrot.slane %v852_v17, 4  ;;  %936 = vmax.xlane.f32.xlu1 %v6689_v53  ;;  %v4566_v55 = vpop.f32.mrb[52].mxu0  ;;  %v6691_v14 = vmax.f32 %v4437_v51, %v4439_v63 }
 0x1ca   :  { %v912_v11 = vpack.c.bf16 %v886_v38, %v884_v21  ;;  %v914_v13 = vpack.c.bf16 %v890_v36, %v888_v46  ;;  %v4568_v45 = vpop.f32.mrb[53].mxu0  ;;  %v6692_v46 = vpack.c.bf16 %v4475_v49, %v4472_v29  ;;  %v6694_v49 = vmax.f32 %v4469_v60, %v4483_v62 }
 0x1cb   :  { %6690 = vst [vmem:[#allocation40_spill] sm:$0xff] %v4568_v45  ;;  %v3511_v28 = vpop.eup %3510  ;;  %v847_v58 = vadd.f32 %v846_v24, %v845_v19  ;;  %v854_v40 = vadd.f32 %v853_v47, %v852_v17  ;;  %939 = vmax.xlane.f32.xlu0 %v6691_v14  ;;  %v4573_v48 = vpop.f32.mrb[54].mxu0  ;;  %v953_v7 = vmax.f32 %v4566_v55, %v4568_v45 }
 0x1cc   :  { %1687 = vmatprep.subr.bf16.mxu0 %v912_v11  ;;  %v871_v41 = vmul.f32 0.17677669, %v3511_v28  ;;  %v4577_v53 = vpop.f32.mrb[55].mxu0  ;;  %v6693_v17 = vmax.f32 %v4457_v33, %v4461_v12 }
 0x1cd   :  { %v848_v21 = vrot.slane %v847_v58, 1  ;;  %v855_v36 = vrot.slane %v854_v40, 2  ;;  %1688 = vmatpush1.bf16.msra.mxu0 %v6692_v46  ;;  %v956_v38 = vmax.f32 %v4573_v48, %v4577_v53 }
 0x1ce   :  { %942 = vmax.xlane.f32.xlu1 %v6693_v17  ;;  %1689 = vmatprep.subr.bf16.mxu0 %v914_v13  ;;  %v891_v24 = vmul.f32 %v4382_v35, %v871_v41  ;;  %v893_v19 = vmul.f32 %v4389_v43, %v871_v41  ;;  %v895_v47 = vmul.f32 %v4401_v3, %v871_v41 }
 0x1cf   :  { %v897_v11 = vmul.f32 %v4408_v37, %v871_v41  ;;  %v849_v14 = vadd.f32 %v848_v21, %v847_v58  ;;  %v856_v29 = vadd.f32 %v855_v36, %v854_v40  ;;  %945 = vmax.xlane.f32.xlu0 %v6694_v49  ;;  %v6695_v13 = vpack.c.bf16 %v4481_v5, %v4478_v4 }
 0x1d0   :  { %v3513_v28 = vpop.eup %3512  ;;  %v915_v17 = vpack.c.bf16 %v893_v19, %v891_v24 }
 0x1d1   :  { %v872_v46 = vmul.f32 0.17677669, %v3513_v28  ;;  %v917_v45 = vpack.c.bf16 %v897_v11, %v895_v47  ;;  %1690 = vmatpush1.bf16.msra.mxu0 %v6695_v13  ;;  %v4597_v35 = vpop.f32.mrb[56].mxu0  ;;  %v857_v43 = vrot.slane %v856_v29, 1  ;;  %3514 = vrcp.f32 %v849_v14 }
 0x1d2   :  { %948 = vmax.xlane.f32.xlu1 %v947_v44  ;;  %v4603_v41 = vpop.f32.mrb[57].mxu0 }
 0x1d3   :  { %v892_v3 = vmul.f32 %v4413_v39, %v872_v46  ;;  %v894_v37 = vmul.f32 %v4417_v32, %v872_v46  ;;  %v896_v58 = vmul.f32 %v4424_v42, %v872_v46  ;;  %v898_v40 = vmul.f32 %v4433_v8, %v872_v46  ;;  %951 = vmax.xlane.f32.xlu0 %v950_v59  ;;  %v4605_v21 = vpop.f32.mrb[58].mxu0 }
 0x1d4   :  { %v959_v4 = vmax.f32 %v4597_v35, %v4603_v41  ;;  %v858_v5 = vadd.f32 %v857_v43, %v856_v29  ;;  %v4609_v24 = vpop.f32.mrb[59].mxu0 }
 0x1d5   :  { %v916_v44 = vpack.c.bf16 %v894_v37, %v892_v3  ;;  %v918_v36 = vpack.c.bf16 %v898_v40, %v896_v58  ;;  %v962_v39 = vmax.f32 %v4605_v21, %v4609_v24 }
 0x1d6   :  { %954 = vmax.xlane.f32.xlu1 %v953_v7  ;;  %3516 = vrcp.f32 %v858_v5 }
 0x1d7   :  { %1691 = vmatprep.subr.bf16.mxu0 %v916_v44  ;;  %957 = vmax.xlane.f32.xlu0 %v956_v38 }
 0x1d8   :  { %1692 = vmatpush1.bf16.msra.mxu0 %v915_v17 }
 0x1d9   :  { %1693 = vmatprep.subr.bf16.mxu0 %v918_v36  ;;  %v4613_v32 = vpop.f32.mrb[60].mxu0 }
 0x1da   :  { %960 = vmax.xlane.f32.xlu1 %v959_v4  ;;  %v4615_v42 = vpop.f32.mrb[61].mxu0  ;;  %v3429_v4 = vld [vmem:[%s6518_s4 + $0x18] sm:$0xff]  }
 0x1db   :  { %v3515_v8 = vpop.eup %3514  ;;  %963 = vmax.xlane.f32.xlu0 %v962_v39  ;;  %v4617_v59 = vpop.f32.mrb[62].mxu0  ;;  %v965_v7 = vmax.f32 %v4613_v32, %v4615_v42 }
 0x1dc   :  { %1694 = vmatpush1.bf16.msra.mxu0 %v917_v45  ;;  %v4621_v19 = vpop.f32.mrb[63].mxu0  ;;  %v873_v47 = vmul.f32 0.17677669, %v3515_v8  ;;  %v4672_v8 = vsel %vm87_vm2, %v3429_v4, 0 }
 0x1dd   :  { %v968_v38 = vmax.f32 %v4617_v59, %v4621_v19  ;;  %6703 = vst [vmem:[#allocation48_spill] sm:$0xff] %v4672_v8 }
 0x1de   :  { %966 = vmax.xlane.f32.xlu1 %v965_v7  ;;  %v899_v11 = vmul.f32 %v4485_v1, %v873_v47  ;;  %v901_v28 = vmul.f32 %v4500_v10, %v873_v47  ;;  %v903_v14 = vmul.f32 %v4508_v18, %v873_v47  ;;  %v905_v45 = vmul.f32 %v4517_v61, %v873_v47  ;;  %v3426_v10 = vld [vmem:[%s6518_s4] sm:$0xff]   ;;  %v3427_v18 = vld [vmem:[%s6518_s4 + $0x8] sm:$0xff]   ;;  %v3428_v61 = vld [vmem:[%s6518_s4 + $0x10] sm:$0xff]  }
 0x1df   :  { %969 = vmax.xlane.f32.xlu0 %v968_v38  ;;  %3399 = vmatprep.subr.msk.bf16.mxu1 %vm87_vm2, %v3426_v10  ;;  %v4659_v40 = vsel %vm87_vm2, %v3428_v61, 0  ;;  %v3430_v7 = vld [vmem:[%s6518_s4 + $0x20] sm:$0xff]  }
 0x1e0   :  { %v3517_v29 = vpop.eup %3516  ;;  %v919_v46 = vpack.c.bf16 %v901_v28, %v899_v11  ;;  %v921_v17 = vpack.c.bf16 %v905_v45, %v903_v14  ;;  %6700 = vst [vmem:[#allocation45_spill] sm:$0xff] %v4659_v40  ;;  %v3866_v28 = vld [vmem:[%s6517_s3] sm:$0xff] }
 0x1e1   :  { %v874_v49 = vmul.f32 0.17677669, %v3517_v29 }
 0x1e3   :  { %v900_v13 = vmul.f32 %v4521_v16, %v874_v49  ;;  %v902_v43 = vmul.f32 %v4534_v2, %v874_v49  ;;  %v904_v3 = vmul.f32 %v4540_v23, %v874_v49  ;;  %v906_v37 = vmul.f32 %v4549_v27, %v874_v49  ;;  %v4652_v16 = vpop.xlane.xlu1 %89  ;;  %v4656_v2 = vpop.xlane.xlu0 %92 }
 0x1e4   :  { %v4641_v23 = vsel %vm87_vm2, %v3426_v10, 0  ;;  %v4647_v27 = vsel %vm87_vm2, %v3427_v18, 0  ;;  %6698 = vst [vmem:[#allocation43_spill] sm:$0xff] %v4652_v16  ;;  %6699 = vst [vmem:[#allocation44_spill] sm:$0xff] %v4656_v2 }
 0x1e5   :  { %v920_v1 = vpack.c.bf16 %v902_v43, %v900_v13  ;;  %v922_v58 = vpack.c.bf16 %v906_v37, %v904_v3  ;;  %6696 = vst [vmem:[#allocation41_spill] sm:$0xff] %v4641_v23  ;;  %3296 = vmatpush3.bf16.xpose.msra.mxu1 %v4641_v23  ;;  %6697 = vst [vmem:[#allocation42_spill] sm:$0xff] %v4647_v27 }
 0x1e6   :  { %3400 = vmatprep.subr.msk.bf16.mxu1 %vm87_vm2, %v3427_v18 }
 0x1e7   :  { %1695 = vmatprep.subr.bf16.mxu0 %v920_v1  ;;  %v4664_v5 = vpop.xlane.xlu1 %95  ;;  %v4666_v44 = vpop.xlane.xlu0 %98 }
 0x1e8   :  { %1696 = vmatpush1.bf16.msra.mxu0 %v919_v46  ;;  %6701 = vst [vmem:[#allocation46_spill] sm:$0xff] %v4664_v5  ;;  %6702 = vst [vmem:[#allocation47_spill] sm:$0xff] %v4666_v44 }
 0x1e9   :  { %1697 = vmatprep.subr.bf16.mxu0 %v922_v58 }
 0x1ec   :  { %1698 = vmatpush1.bf16.msra.mxu0 %v921_v17 }
 0x1ed   :  { %3407 = vmatprep.subr.msk.bf16.mxu0 %vm87_vm2, %v3426_v10  ;;  %3298 = vmatpush3.bf16.xpose.msra.mxu1 %v4647_v27 }
 0x1ee   :  { %3401 = vmatprep.subr.msk.bf16.mxu1 %vm87_vm2, %v3428_v61 }
 0x1f5   :  { %3300 = vmatpush3.bf16.xpose.msra.mxu1 %v4659_v40 }
 0x1f6   :  { %3402 = vmatprep.subr.msk.bf16.mxu1 %vm87_vm2, %v3429_v4 }
 0x1fd   :  { %3302 = vmatpush3.bf16.xpose.msra.mxu1 %v4672_v8 }
 0x1fe   :  { %3403 = vmatprep.subr.msk.bf16.mxu1 %vm87_vm2, %v3430_v7 }
 0x234   :  { %v925_v36 = vpop.xlane.xlu1 %924 }
 0x235   :  { %v971_v39 = vmax.f32 %v925_v36, %v4652_v16 }
 0x236   :  { %v928_v47 = vpop.xlane.xlu0 %927 }
 0x237   :  { %v987_v38 = vsub.f32 %v4324_v9, %v971_v39  ;;  %v988_v11 = vsub.f32 %v4331_v34, %v971_v39  ;;  %v1083_v14 = vsub.f32 %v3866_v28, %v971_v39  ;;  %v972_v45 = vmax.f32 %v928_v47, %v4656_v2  ;;  %v3867_v34 = vld [vmem:[%s6517_s3 + $0x8] sm:$0xff]  ;;  %v3868_v47 = vld [vmem:[%s6517_s3 + $0x10] sm:$0xff] }
 0x239   :  { %v1019_v29 = vmul.f32 1.442695, %v987_v38  ;;  %v1021_v49 = vmul.f32 1.442695, %v988_v11  ;;  %v1099_v46 = vmul.f32 1.442695, %v1083_v14  ;;  %v989_v17 = vsub.f32 %v4335_v22, %v972_v45 }
 0x23a   :  { %v990_v9 = vsub.f32 %v4340_v54, %v972_v45  ;;  %v1084_v13 = vsub.f32 %v3867_v34, %v972_v45  ;;  %v931_v43 = vpop.xlane.xlu1 %930  ;;  %v4694_v54 = vsel %vm87_vm2, %v3430_v7, 0  ;;  %v3869_v14 = vld [vmem:[%s6517_s3 + $0x18] sm:$0xff] }
 0x23b   :  { %3518 = vpow2.f32 %v1019_v29  ;;  %v1023_v3 = vmul.f32 1.442695, %v989_v17  ;;  %v973_v37 = vmax.f32 %v931_v43, %v4664_v5  ;;  %6704 = vst [vmem:[#allocation49_spill] sm:$0xff] %v4694_v54  ;;  %3304 = vmatpush3.bf16.xpose.msra.mxu1 %v4694_v54 }
 0x23c   :  { %3520 = vpow2.f32 %v1021_v49  ;;  %v1025_v1 = vmul.f32 1.442695, %v990_v9  ;;  %v1101_v58 = vmul.f32 1.442695, %v1084_v13  ;;  %v934_v10 = vpop.xlane.xlu0 %933 }
 0x23d   :  { %3522 = vpow2.f32 %v1099_v46  ;;  %v991_v22 = vsub.f32 %v4349_v57, %v973_v37  ;;  %v992_v18 = vsub.f32 %v4355_v56, %v973_v37  ;;  %v974_v61 = vmax.f32 %v934_v10, %v4666_v44 }
 0x23e   :  { %3524 = vpow2.f32 %v1023_v3  ;;  %v4697_v4 = vpop.xlane.xlu1 %101  ;;  %v1085_v38 = vsub.f32 %v3868_v47, %v973_v37 }
 0x23f   :  { %6705 = vst [vmem:[#allocation50_spill] sm:$0xff] %v4697_v4  ;;  %3526 = vpow2.f32 %v1025_v1  ;;  %v1027_v36 = vmul.f32 1.442695, %v991_v22  ;;  %v1029_v39 = vmul.f32 1.442695, %v992_v18  ;;  %v993_v57 = vsub.f32 %v4360_v15, %v974_v61 }
 0x240   :  { %3528 = vpow2.f32 %v1101_v58  ;;  %v994_v56 = vsub.f32 %v4374_v50, %v974_v61  ;;  %v4704_v7 = vpop.xlane.xlu0 %104  ;;  %v1086_v45 = vsub.f32 %v3869_v14, %v974_v61  ;;  %v1103_v49 = vmul.f32 1.442695, %v1085_v38 }
 0x241   :  { %6706 = vst [vmem:[#allocation51_spill] sm:$0xff] %v4704_v7  ;;  %3530 = vpow2.f32 %v1027_v36  ;;  %v1031_v11 = vmul.f32 1.442695, %v993_v57 }
 0x242   :  { %3532 = vpow2.f32 %v1029_v39  ;;  %v1033_v28 = vmul.f32 1.442695, %v994_v56  ;;  %v4710_v29 = vpop.xlane.xlu1 %107  ;;  %v1105_v17 = vmul.f32 1.442695, %v1086_v45 }
 0x243   :  { %6707 = vst [vmem:[#allocation52_spill] sm:$0xff] %v4710_v29  ;;  %3534 = vpow2.f32 %v1031_v11 }
 0x244   :  { %v4712_v15 = vpop.xlane.xlu0 %110  ;;  %3536 = vpow2.f32 %v1033_v28 }
 0x245   :  { %6708 = vst [vmem:[#allocation53_spill] sm:$0xff] %v4712_v15  ;;  %v4714_v50 = vpop.eup %3518  ;;  %3538 = vpow2.f32 %v1103_v49 }
 0x246   :  { %v4716_v46 = vpop.eup %3520  ;;  %v4718_v9 = vpop.xlane.xlu1 %113  ;;  %3540 = vpow2.f32 %v1105_v17 }
 0x247   :  { %6709 = vst [vmem:[#allocation54_spill] sm:$0xff] %v4718_v9  ;;  %v4720_v34 = vpop.eup %3522  ;;  %v1131_v18 = vadd.f32 %v4716_v46, %v4714_v50 }
 0x248   :  { %v4722_v13 = vpop.eup %3524  ;;  %v1179_v43 = vsel %vm87_vm2, %v4720_v34, 0.0  ;;  %v4726_v3 = vpop.xlane.xlu0 %116 }
 0x249   :  { %6710 = vst [vmem:[#allocation55_spill] sm:$0xff] %v4726_v3  ;;  %v4728_v37 = vpop.eup %3526  ;;  %1180 = vadd.xlane.f32.xlu1 %v1179_v43 }
 0x24a   :  { %v4730_v1 = vpop.eup %3528  ;;  %v4732_v58 = vpop.xlane.xlu1 %119  ;;  %v1134_v38 = vadd.f32 %v4728_v37, %v4722_v13 }
 0x24b   :  { %6711 = vst [vmem:[#allocation56_spill] sm:$0xff] %v4732_v58  ;;  %v4734_v10 = vpop.eup %3530  ;;  %v1182_v22 = vsel %vm87_vm2, %v4730_v1, 0.0 }
 0x24c   :  { %v4740_v61 = vpop.eup %3532  ;;  %1183 = vadd.xlane.f32.xlu0 %v1182_v22  ;;  %v4742_v36 = vpop.xlane.xlu0 %122 }
 0x24d   :  { %6712 = vst [vmem:[#allocation57_spill] sm:$0xff] %v4742_v36  ;;  %1132 = vadd.xlane.f32.xlu1 %v1131_v18  ;;  %v1137_v39 = vadd.f32 %v4740_v61, %v4734_v10  ;;  %v4746_v47 = vpop.eup %3534 }
 0x24e   :  { %v4750_v57 = vpop.xlane.xlu1 %125  ;;  %v4752_v56 = vpop.eup %3536 }
 0x24f   :  { %6713 = vst [vmem:[#allocation58_spill] sm:$0xff] %v4750_v57  ;;  %v1140_v28 = vadd.f32 %v4752_v56, %v4746_v47  ;;  %v4758_v14 = vpop.eup %3538 }
 0x250   :  { %1135 = vadd.xlane.f32.xlu0 %v1134_v38  ;;  %v4754_v11 = vpop.xlane.xlu0 %128  ;;  %v4762_v49 = vpop.eup %3540  ;;  %v1185_v17 = vsel %vm87_vm2, %v4758_v14, 0.0 }
 0x251   :  { %6714 = vst [vmem:[#allocation59_spill] sm:$0xff] %v4754_v11  ;;  %1138 = vadd.xlane.f32.xlu1 %v1137_v39  ;;  %v1188_v18 = vsel %vm87_vm2, %v4762_v49, 0.0 }
 0x252   :  { %v4760_v45 = vpop.xlane.xlu1 %131 }
 0x253   :  { %6715 = vst [vmem:[#allocation60_spill] sm:$0xff] %v4760_v45 }
 0x254   :  { %1141 = vadd.xlane.f32.xlu0 %v1140_v28  ;;  %v4766_v43 = vpop.xlane.xlu0 %134  ;;  %v3431_v28 = vld [vmem:[%s6518_s4 + $0x28] sm:$0xff]  }
 0x255   :  { %6716 = vst [vmem:[#allocation61_spill] sm:$0xff] %v4766_v43  ;;  %1186 = vadd.xlane.f32.xlu1 %v1185_v17  ;;  %3404 = vmatprep.subr.msk.bf16.mxu1 %vm87_vm2, %v3431_v28 }
 0x256   :  { %v937_v22 = vpop.xlane.xlu1 %936 }
 0x257   :  { %v975_v38 = vmax.f32 %v937_v22, %v4697_v4 }
 0x258   :  { %1189 = vadd.xlane.f32.xlu0 %v1188_v18  ;;  %v940_v44 = vpop.xlane.xlu0 %939  ;;  %v4781_v18 = vsel %vm87_vm2, %v3431_v28, 0 }
 0x259   :  { %v995_v39 = vsub.f32 %v4422_v30, %v975_v38  ;;  %v976_v5 = vmax.f32 %v940_v44, %v4704_v7  ;;  %v1087_v2 = vsub.f32 %v4245_v0, %v975_v38  ;;  %v996_v17 = vsub.f32 %v4431_v26, %v975_v38  ;;  %6717 = vst [vmem:[#allocation62_spill] sm:$0xff] %v4781_v18 }
 0x25a   :  { %3306 = vmatpush3.bf16.xpose.msra.mxu1 %v4781_v18 }
 0x25b   :  { %v943_v16 = vpop.xlane.xlu1 %942  ;;  %v1088_v54 = vsub.f32 %v4250_v6, %v976_v5  ;;  %v1035_v30 = vmul.f32 1.442695, %v995_v39  ;;  %v997_v44 = vsub.f32 %v4437_v51, %v976_v5  ;;  %v1107_v4 = vmul.f32 1.442695, %v1087_v2  ;;  %v3432_v6 = vld [vmem:[%s6518_s4 + $0x30] sm:$0xff]  }
 0x25c   :  { %v946_v22 = vpop.xlane.xlu0 %945  ;;  %v977_v7 = vmax.f32 %v943_v16, %v4710_v29  ;;  %v998_v0 = vsub.f32 %v4439_v63, %v976_v5  ;;  %v1037_v26 = vmul.f32 1.442695, %v996_v17  ;;  %3405 = vmatprep.subr.msk.bf16.mxu1 %vm87_vm2, %v3432_v6  ;;  %v6718_v63 = vld [vmem:[#allocation29_spill] sm:$0xff]  ;;  %v4796_v5 = vsel %vm87_vm2, %v3432_v6, 0 }
 0x25d   :  { %v1109_v8 = vmul.f32 1.442695, %v1088_v54  ;;  %v978_v40 = vmax.f32 %v946_v22, %v4712_v15  ;;  %3542 = vpow2.f32 %v1035_v30  ;;  %v1039_v38 = vmul.f32 1.442695, %v997_v44  ;;  %6719 = vst [vmem:[#allocation29_spill] sm:$0xff] %v4796_v5  ;;  %v6725_v15 = vld [vmem:[#allocation34_spill] sm:$0xff] }
 0x25e   :  { %v999_v39 = vsub.f32 %v4457_v33, %v977_v7  ;;  %3544 = vpow2.f32 %v1107_v4  ;;  %v1041_v51 = vmul.f32 1.442695, %v998_v0  ;;  %v1089_v16 = vsub.f32 %v4257_v20, %v977_v7 }
 0x25f   :  { %v949_v28 = vpop.xlane.xlu1 %948  ;;  %3546 = vpow2.f32 %v1109_v8  ;;  %v1090_v2 = vsub.f32 %v6718_v63, %v978_v40  ;;  %v1000_v54 = vsub.f32 %v4461_v12, %v977_v7  ;;  %v1001_v33 = vsub.f32 %v4469_v60, %v978_v40  ;;  %v4809_v12 = vld [vmem:[%s6518_s4 + $0x38] sm:$0xff]  }
 0x260   :  { %3548 = vpow2.f32 %v1037_v26  ;;  %v952_v17 = vpop.xlane.xlu0 %951  ;;  %v1043_v22 = vmul.f32 1.442695, %v999_v39  ;;  %v979_v4 = vmax.f32 %v949_v28, %v4718_v9  ;;  %v1111_v20 = vmul.f32 1.442695, %v1089_v16  ;;  %v4804_v26 = vpop.f32.mrb[64].mxu0  ;;  %v6721_v16 = vld [vmem:[#allocation32_spill] sm:$0xff] }
 0x261   :  { %3550 = vpow2.f32 %v1039_v38  ;;  %v1002_v8 = vsub.f32 %v4483_v62, %v978_v40  ;;  %v1113_v30 = vmul.f32 1.442695, %v1090_v2  ;;  %v980_v44 = vmax.f32 %v952_v17, %v4726_v3  ;;  %v4812_v38 = vpop.f32.mrb[65].mxu0  ;;  %v6720_v40 = vld [vmem:[#allocation31_spill] sm:$0xff] }
 0x262   :  { %3308 = vmatpush3.bf16.xpose.msra.mxu1 %v4796_v5  ;;  %3552 = vpow2.f32 %v1041_v51  ;;  %v1045_v0 = vmul.f32 1.442695, %v1000_v54  ;;  %v1047_v60 = vmul.f32 1.442695, %v1001_v33  ;;  %v1003_v7 = vsub.f32 %v4532_v52, %v979_v4  ;;  %v4820_v2 = vpop.f32.mrb[66].mxu0  ;;  %v6722_v52 = vld [vmem:[#allocation39_spill] sm:$0xff] }
 0x263   :  { %3554 = vpow2.f32 %v1043_v22  ;;  %v955_v6 = vpop.xlane.xlu1 %954  ;;  %v1049_v62 = vmul.f32 1.442695, %v1002_v8  ;;  %v1091_v39 = vsub.f32 %v6720_v40, %v979_v4  ;;  %3406 = vmatprep.subr.msk.bf16.mxu1 %vm87_vm2, %v4809_v12  ;;  %v1092_v28 = vsub.f32 %v6721_v16, %v980_v44  ;;  %v4826_v33 = vpop.f32.mrb[67].mxu0 }
 0x264   :  { %3556 = vpow2.f32 %v1111_v20  ;;  %v958_v63 = vpop.xlane.xlu0 %957  ;;  %v1004_v17 = vsub.f32 %v6722_v52, %v979_v4  ;;  %v981_v22 = vmax.f32 %v955_v6, %v4732_v58  ;;  %v1051_v8 = vmul.f32 1.442695, %v1003_v7  ;;  %v4837_v52 = vpop.f32.mrb[68].mxu0 }
 0x265   :  { %3558 = vpow2.f32 %v1113_v30  ;;  %v1005_v30 = vsub.f32 %v4545_v25, %v980_v44  ;;  %v1006_v40 = vsub.f32 %v4553_v31, %v980_v44  ;;  %v1115_v3 = vmul.f32 1.442695, %v1091_v39  ;;  %v4846_v44 = vpop.f32.mrb[69].mxu0 }
 0x266   :  { %3560 = vpow2.f32 %v1045_v0  ;;  %v982_v0 = vmax.f32 %v958_v63, %v4742_v36  ;;  %v1117_v4 = vmul.f32 1.442695, %v1092_v28  ;;  %v1007_v7 = vsub.f32 %v4566_v55, %v981_v22  ;;  %v6723_v28 = vld [vmem:[#allocation33_spill] sm:$0xff]  ;;  %v6724_v36 = vld [vmem:[#allocation40_spill] sm:$0xff]  ;;  %v4854_v18 = vpop.f32.mrb[70].mxu0 }
 0x267   :  { %v4817_v51 = vpop.eup %3542  ;;  %3562 = vpow2.f32 %v1047_v60  ;;  %v961_v6 = vpop.xlane.xlu1 %960  ;;  %v1053_v60 = vmul.f32 1.442695, %v1004_v17  ;;  %v1057_v39 = vmul.f32 1.442695, %v1006_v40  ;;  %v1093_v63 = vsub.f32 %v6723_v28, %v981_v22 }
 0x268   :  { %v4822_v54 = vpop.eup %3544  ;;  %3564 = vpow2.f32 %v1049_v62  ;;  %v1055_v62 = vmul.f32 1.442695, %v1005_v30  ;;  %v1008_v17 = vsub.f32 %v6724_v36, %v981_v22  ;;  %v1094_v55 = vsub.f32 %v6725_v15, %v982_v0  ;;  %v964_v5 = vpop.xlane.xlu0 %963 }
 0x269   :  { %v4828_v20 = vpop.eup %3546  ;;  %v1191_v31 = vsel %vm87_vm2, %v4822_v54, 0.0  ;;  %3566 = vpow2.f32 %v1051_v8  ;;  %v4852_v29 = vmax.f32 %v961_v6, %v4750_v57  ;;  %v1009_v8 = vsub.f32 %v4573_v48, %v982_v0  ;;  %v4863_v36 = vpop.f32.mrb[71].mxu0 }
 0x26a   :  { %v4832_v16 = vpop.eup %3548  ;;  %v1194_v25 = vsel %vm87_vm2, %v4828_v20, 0.0  ;;  %1192 = vadd.xlane.f32.xlu1 %v1191_v31  ;;  %3568 = vpow2.f32 %v1115_v3  ;;  %v1059_v22 = vmul.f32 1.442695, %v1007_v7  ;;  %v1010_v40 = vsub.f32 %v4577_v53, %v982_v0  ;;  %v4873_v31 = vpop.f32.mrb[72].mxu0 }
 0x26b   :  { %v4835_v9 = vpop.eup %3550  ;;  %1195 = vadd.xlane.f32.xlu0 %v1194_v25  ;;  %3570 = vpow2.f32 %v1117_v4  ;;  %v1143_v30 = vadd.f32 %v4832_v16, %v4817_v51  ;;  %v1119_v4 = vmul.f32 1.442695, %v1093_v63  ;;  %v4871_v48 = vmax.f32 %v964_v5, %v4754_v11  ;;  %v967_v57 = vpop.xlane.xlu1 %966  ;;  %v6728_v5 = vld [vmem:[#allocation35_spill] sm:$0xff] }
 0x26c   :  { %v4839_v58 = vpop.eup %3552  ;;  %3572 = vpow2.f32 %v1053_v60  ;;  %v1121_v28 = vmul.f32 1.442695, %v1094_v55  ;;  %v4877_v60 = vpop.f32.mrb[73].mxu0  ;;  %v1061_v53 = vmul.f32 1.442695, %v1008_v17  ;;  %v1095_v63 = vsub.f32 %v6728_v5, %v4852_v29  ;;  %v6730_v17 = vld [vmem:[#allocation36_spill] sm:$0xff] }
 0x26d   :  { %v4856_v27 = vpop.eup %3554  ;;  %v1146_v3 = vadd.f32 %v4839_v58, %v4835_v9  ;;  %3574 = vpow2.f32 %v1055_v62  ;;  %v1063_v0 = vmul.f32 1.442695, %v1009_v8  ;;  %v1011_v62 = vsub.f32 %v4597_v35, %v4852_v29  ;;  %v4891_v11 = vpop.f32.mrb[74].mxu0 }
 0x26e   :  { %6726 = vst [vmem:[#allocation31_spill] sm:$0xff] %v4856_v27  ;;  %v4865_v15 = vpop.eup %3556  ;;  %1144 = vadd.xlane.f32.xlu1 %v1143_v30  ;;  %3576 = vpow2.f32 %v1057_v39  ;;  %v1096_v8 = vsub.f32 %v6730_v17, %v4871_v48  ;;  %v4896_v35 = vmax.f32 %v967_v57, %v4760_v45  ;;  %v970_v5 = vpop.xlane.xlu0 %969  ;;  %v604_v23 = vpack.c.bf16 %v4826_v33, %v4812_v38 }
 0x26f   :  { %v4868_v6 = vpop.eup %3558  ;;  %1147 = vadd.xlane.f32.xlu0 %v1146_v3  ;;  %3578 = vpow2.f32 %v1059_v22  ;;  %v1065_v3 = vmul.f32 1.442695, %v1010_v40  ;;  %v1197_v39 = vsel %vm87_vm2, %v4865_v15, 0.0  ;;  %v4900_v40 = vpop.f32.mrb[75].mxu0  ;;  %v1012_v22 = vsub.f32 %v4603_v41, %v4852_v29 }
 0x270   :  { %v4875_v25 = vpop.eup %3560  ;;  %v1200_v55 = vsel %vm87_vm2, %v4868_v6, 0.0  ;;  %3580 = vpow2.f32 %v1119_v4  ;;  %v4906_v4 = vsel %vm87_vm2, %v4809_v12, 0  ;;  %v4910_v17 = vpop.f32.mrb[76].mxu0  ;;  %v1067_v45 = vmul.f32 1.442695, %v1011_v62 }
 0x271   :  { %v4879_v7 = vpop.eup %3562  ;;  %3582 = vpow2.f32 %v1121_v28  ;;  %6731 = vst [vmem:[#allocation33_spill] sm:$0xff] %v4906_v4  ;;  %3310 = vmatpush3.bf16.xpose.msra.mxu1 %v4906_v4  ;;  %v4923_v33 = vpop.f32.mrb[77].mxu0  ;;  %v1013_v12 = vsub.f32 %v4605_v21, %v4871_v48  ;;  %v4938_v38 = vmax.f32 %v970_v5, %v4766_v43 }
 0x272   :  { %6727 = vst [vmem:[#allocation32_spill] sm:$0xff] %v4879_v7  ;;  %v4885_v30 = vpop.eup %3564  ;;  %1198 = vadd.xlane.f32.xlu1 %v1197_v39  ;;  %3584 = vpow2.f32 %v1061_v53  ;;  %1516 = vmatprep.subr.bf16.mxu1 %v604_v23  ;;  %v4931_v4 = vpop.f32.mrb[78].mxu0  ;;  %v1123_v53 = vmul.f32 1.442695, %v1095_v63  ;;  %v1016_v63 = vsub.f32 %v4615_v42, %v4896_v35 }
 0x273   :  { %6729 = vst [vmem:[#allocation39_spill] sm:$0xff] %v4885_v30  ;;  %1201 = vadd.xlane.f32.xlu0 %v1200_v55  ;;  %v4912_v39 = vpop.eup %3566  ;;  %v1149_v55 = vadd.f32 %v4875_v25, %v4856_v27  ;;  %v1152_v28 = vadd.f32 %v4885_v30, %v4879_v7  ;;  %3586 = vpow2.f32 %v1063_v0  ;;  %v4942_v23 = vpop.f32.mrb[79].mxu0  ;;  %v1014_v0 = vsub.f32 %v4609_v24, %v4871_v48 }
 0x274   :  { %6732 = vst [vmem:[#allocation40_spill] sm:$0xff] %v4912_v39  ;;  %v4925_v57 = vpop.eup %3568  ;;  %3588 = vpow2.f32 %v1065_v3  ;;  %v4950_v62 = vpop.f32.mrb[80].mxu0  ;;  %v1069_v3 = vmul.f32 1.442695, %v1012_v22 }
 0x275   :  { %6733 = vst [vmem:[#allocation34_spill] sm:$0xff] %v4925_v57  ;;  %v4933_v7 = vpop.eup %3570  ;;  %v4956_v41 = vpop.f32.mrb[81].mxu0  ;;  %v1203_v24 = vsel %vm87_vm2, %v4925_v57, 0.0  ;;  %3590 = vpow2.f32 %v1067_v45  ;;  %v1073_v57 = vmul.f32 1.442695, %v1014_v0 }
 0x276   :  { %6734 = vst [vmem:[#allocation35_spill] sm:$0xff] %v4933_v7  ;;  %1150 = vadd.xlane.f32.xlu1 %v1149_v55  ;;  %v4944_v29 = vpop.eup %3572  ;;  %v1125_v55 = vmul.f32 1.442695, %v1096_v8  ;;  %v1206_v48 = vsel %vm87_vm2, %v4933_v7, 0.0  ;;  %v4966_v21 = vpop.f32.mrb[82].mxu0  ;;  %3592 = vpow2.f32 %v1123_v53  ;;  %v1018_v7 = vsub.f32 %v4621_v19, %v4938_v38 }
 0x277   :  { %1153 = vadd.xlane.f32.xlu0 %v1152_v28  ;;  %6735 = vst [vmem:[#allocation36_spill] sm:$0xff] %v4944_v29  ;;  %v4952_v5 = vpop.eup %3574  ;;  %v1015_v28 = vsub.f32 %v4613_v32, %v4896_v35  ;;  %v1071_v8 = vmul.f32 1.442695, %v1013_v12  ;;  %v1017_v32 = vsub.f32 %v4617_v59, %v4938_v38  ;;  %v4972_v43 = vpop.f32.mrb[83].mxu0  ;;  %v1077_v19 = vmul.f32 1.442695, %v1016_v63 }
 0x278   :  { %6736 = vst [vmem:[#allocation63_spill] sm:$0xff] %v4952_v5  ;;  %v4958_v27 = vpop.eup %3576  ;;  %v4980_v12 = vpop.f32.mrb[84].mxu0  ;;  %3594 = vpow2.f32 %v1125_v55 }
 0x279   :  { %6737 = vst [vmem:[#allocation64_spill] sm:$0xff] %v4958_v27  ;;  %v4974_v42 = vpop.eup %3578  ;;  %v1158_v22 = vadd.f32 %v4958_v27, %v4952_v5  ;;  %v4988_v53 = vpop.f32.mrb[85].mxu0  ;;  %3596 = vpow2.f32 %v1069_v3  ;;  %v1079_v45 = vmul.f32 1.442695, %v1017_v32  ;;  %v6742_v5 = vld [vmem:[#allocation37_spill] sm:$0xff]  ;;  %v6744_v32 = vld [vmem:[#allocation38_spill] sm:$0xff] }
 0x27a   :  { %1204 = vadd.xlane.f32.xlu1 %v1203_v24  ;;  %6738 = vst [vmem:[#allocation65_spill] sm:$0xff] %v4974_v42  ;;  %v4982_v59 = vpop.eup %3580  ;;  %v1075_v24 = vmul.f32 1.442695, %v1015_v28  ;;  %v4992_v30 = vpop.f32.mrb[86].mxu0  ;;  %3598 = vpow2.f32 %v1071_v8  ;;  %v1097_v27 = vsub.f32 %v6742_v5, %v4896_v35 }
 0x27b   :  { %1207 = vadd.xlane.f32.xlu0 %v1206_v48  ;;  %6739 = vst [vmem:[#allocation66_spill] sm:$0xff] %v4982_v59  ;;  %v1155_v48 = vadd.f32 %v4944_v29, %v4912_v39  ;;  %v4990_v0 = vpop.eup %3582  ;;  %v4996_v28 = vpop.f32.mrb[87].mxu0  ;;  %3600 = vpow2.f32 %v1073_v57  ;;  %v1081_v29 = vmul.f32 1.442695, %v1018_v7  ;;  %v1209_v35 = vsel %vm87_vm2, %v4982_v59, 0.0 }
 0x27c   :  { %6740 = vst [vmem:[#allocation67_spill] sm:$0xff] %v4990_v0  ;;  %v4998_v39 = vpop.eup %3584  ;;  %v5004_v63 = vpop.f32.mrb[88].mxu0  ;;  %3602 = vpow2.f32 %v1075_v24  ;;  %v1212_v7 = vsel %vm87_vm2, %v4990_v0, 0.0  ;;  %v1127_v24 = vmul.f32 1.442695, %v1097_v27 }
 0x27d   :  { %6741 = vst [vmem:[#allocation68_spill] sm:$0xff] %v4998_v39  ;;  %v5006_v8 = vpop.eup %3586  ;;  %3604 = vpow2.f32 %v1077_v19 }
 0x27e   :  { %1156 = vadd.xlane.f32.xlu1 %v1155_v48  ;;  %6743 = vst [vmem:[#allocation37_spill] sm:$0xff] %v5006_v8  ;;  %v5010_v48 = vpop.f32.mrb[89].mxu0  ;;  %v5012_v55 = vpop.eup %3588  ;;  %3606 = vpow2.f32 %v1079_v45  ;;  %v1161_v45 = vadd.f32 %v4998_v39, %v4974_v42 }
 0x27f   :  { %1159 = vadd.xlane.f32.xlu0 %v1158_v22  ;;  %v1098_v22 = vsub.f32 %v6744_v32, %v4938_v38  ;;  %6745 = vst [vmem:[#allocation38_spill] sm:$0xff] %v5012_v55  ;;  %v5018_v57 = vpop.f32.mrb[90].mxu0  ;;  %3608 = vpow2.f32 %v1081_v29  ;;  %v5028_v3 = vpop.eup %3590 }
 0x280   :  { %v5022_v38 = vpop.f32.mrb[91].mxu0  ;;  %6747 = vst [vmem:[#allocation70_spill] sm:$0xff] %v5028_v3  ;;  %v5036_v5 = vpop.eup %3592  ;;  %3610 = vpow2.f32 %v1127_v24 }
 0x281   :  { %v5026_v32 = vpop.f32.mrb[92].mxu0  ;;  %v1129_v0 = vmul.f32 1.442695, %v1098_v22  ;;  %6749 = vst [vmem:[#allocation72_spill] sm:$0xff] %v5036_v5 }
 0x282   :  { %1210 = vadd.xlane.f32.xlu1 %v1209_v35  ;;  %6746 = vst [vmem:[#allocation69_spill] sm:$0xff] %v5026_v32  ;;  %v1164_v35 = vadd.f32 %v5012_v55, %v5006_v8  ;;  %v5040_v29 = vpop.eup %3594 }
 0x283   :  { %1213 = vadd.xlane.f32.xlu0 %v1212_v7  ;;  %v5034_v7 = vpop.f32.mrb[93].mxu0  ;;  %6751 = vst [vmem:[#allocation74_spill] sm:$0xff] %v5040_v29  ;;  %v5046_v59 = vpop.eup %3596  ;;  %3612 = vpow2.f32 %v1129_v0 }
 0x284   :  { %6748 = vst [vmem:[#allocation71_spill] sm:$0xff] %v5034_v7  ;;  %v5038_v27 = vpop.f32.mrb[94].mxu0  ;;  %6752 = vst [vmem:[#allocation75_spill] sm:$0xff] %v5046_v59  ;;  %v5050_v8 = vpop.eup %3598  ;;  %v1167_v42 = vadd.f32 %v5046_v59, %v5028_v3 }
 0x285   :  { %6750 = vst [vmem:[#allocation73_spill] sm:$0xff] %v5038_v27  ;;  %v5044_v22 = vpop.f32.mrb[95].mxu0  ;;  %6753 = vst [vmem:[#allocation76_spill] sm:$0xff] %v5050_v8  ;;  %v5052_v55 = vpop.eup %3600 }
 0x286   :  { %1162 = vadd.xlane.f32.xlu1 %v1161_v45  ;;  %6754 = vst [vmem:[#allocation77_spill] sm:$0xff] %v5052_v55  ;;  %v1215_v45 = vsel %vm87_vm2, %v5036_v5, 0.0  ;;  %v5058_v19 = vpop.eup %3602  ;;  %v1170_v0 = vadd.f32 %v5052_v55, %v5050_v8 }
 0x287   :  { %1165 = vadd.xlane.f32.xlu0 %v1164_v35  ;;  %v1218_v35 = vsel %vm87_vm2, %v5040_v29, 0.0  ;;  %6755 = vst [vmem:[#allocation78_spill] sm:$0xff] %v5058_v19  ;;  %v5060_v32 = vpop.eup %3604 }
 0x288   :  { %6756 = vst [vmem:[#allocation79_spill] sm:$0xff] %v5060_v32  ;;  %v5062_v24 = vpop.eup %3606  ;;  %v1173_v29 = vadd.f32 %v5060_v32, %v5058_v19 }
 0x289   :  { %6757 = vst [vmem:[#allocation80_spill] sm:$0xff] %v5062_v24  ;;  %v5068_v27 = vpop.eup %3608 }
 0x28a   :  { %1216 = vadd.xlane.f32.xlu1 %v1215_v45  ;;  %6758 = vst [vmem:[#allocation81_spill] sm:$0xff] %v5068_v27  ;;  %v1176_v45 = vadd.f32 %v5068_v27, %v5062_v24 }
 0x28b   :  { %1219 = vadd.xlane.f32.xlu0 %v1218_v35  ;;  %v5074_v35 = vpop.eup %3610 }
 0x28c   :  { %6759 = vst [vmem:[#allocation82_spill] sm:$0xff] %v5074_v35  ;;  %v1221_v3 = vsel %vm87_vm2, %v5074_v35, 0.0 }
 0x28d   :  { %v5076_v5 = vpop.eup %3612 }
 0x28e   :  { %1168 = vadd.xlane.f32.xlu1 %v1167_v42  ;;  %6760 = vst [vmem:[#allocation83_spill] sm:$0xff] %v5076_v5  ;;  %v1224_v8 = vsel %vm87_vm2, %v5076_v5, 0.0 }
 0x28f   :  { %1171 = vadd.xlane.f32.xlu0 %v1170_v0 }
 0x292   :  { %1174 = vadd.xlane.f32.xlu1 %v1173_v29 }
 0x293   :  { %1177 = vadd.xlane.f32.xlu0 %v1176_v45 }
 0x296   :  { %1222 = vadd.xlane.f32.xlu1 %v1221_v3 }
 0x297   :  { %1225 = vadd.xlane.f32.xlu0 %v1224_v8 }
 0x2d6   :  { %v1181_v42 = vpop.xlane.xlu1 %1180 }
 0x2d9   :  { %v1184_v0 = vpop.xlane.xlu0 %1183 }
 0x2da   :  { %v1133_v19 = vpop.xlane.xlu1 %1132 }
 0x2db   :  { %v1227_v32 = vadd.f32 %v1181_v42, %v1133_v19 }
 0x2dd   :  { %3614 = vrcp.f32 %v1227_v32  ;;  %v1136_v24 = vpop.xlane.xlu0 %1135 }
 0x2de   :  { %v1228_v27 = vadd.f32 %v1184_v0, %v1136_v24  ;;  %v1139_v55 = vpop.xlane.xlu1 %1138  ;;  %v6764_v0 = vpack.c.bf16 %v4900_v40, %v4877_v60 }
 0x2e0   :  { %3616 = vrcp.f32 %v1228_v27 }
 0x2e1   :  { %v1142_v59 = vpop.xlane.xlu0 %1141 }
 0x2e2   :  { %v1187_v29 = vpop.xlane.xlu1 %1186 }
 0x2e3   :  { %v1229_v45 = vadd.f32 %v1187_v29, %v1139_v55 }
 0x2e5   :  { %3618 = vrcp.f32 %v1229_v45  ;;  %v1190_v39 = vpop.xlane.xlu0 %1189 }
 0x2e6   :  { %v1230_v35 = vadd.f32 %v1190_v39, %v1142_v59 }
 0x2e7   :  { %v3615_v7 = vpop.eup %3614 }
 0x2e8   :  { %3620 = vrcp.f32 %v1230_v35  ;;  %v1307_v3 = vmul.f32 %v3615_v7, %v4720_v34  ;;  %v5084_v8 = vmul.f32 %v3615_v7, %v4716_v46  ;;  %v5091_v27 = vmul.f32 %v3615_v7, %v4714_v50 }
 0x2ea   :  { %v3617_v5 = vpop.eup %3616 }
 0x2eb   :  { %v1308_v19 = vmul.f32 %v3617_v5, %v4730_v1  ;;  %v5088_v32 = vmul.f32 %v3617_v5, %v4728_v37  ;;  %v5094_v55 = vmul.f32 %v3617_v5, %v4722_v13 }
 0x2ed   :  { %v1323_v39 = vpack.c.bf16 %v1308_v19, %v1307_v3  ;;  %v1292_v59 = vpack.c.bf16 %v5088_v32, %v5084_v8  ;;  %v1291_v34 = vpack.c.bf16 %v5094_v55, %v5091_v27  ;;  %v6617_v8 = vmov 0.0  }
 0x2ef   :  { %v3619_v46 = vpop.eup %3618  ;;  %3311 = vmatprep.mubr.msk.bf16.mxu1 %vm87_vm2, %v1323_v39 }
 0x2f0   :  { %v1309_v37 = vmul.f32 %v3619_v46, %v4758_v14  ;;  %v5103_v24 = vmul.f32 %v3619_v46, %v4740_v61  ;;  %v5110_v5 = vmul.f32 %v3619_v46, %v4734_v10  ;;  %v6761_v61 = vpack.c.bf16 %v4820_v2, %v4804_v26 }
 0x2f1   :  { %v6762_v10 = vpack.c.bf16 %v4863_v36, %v4846_v44  ;;  %v6765_v44 = vpack.c.bf16 %v4891_v11, %v4873_v31  ;;  %v6768_v31 = vpack.c.bf16 %v4972_v43, %v4956_v41 }
 0x2f2   :  { %v3621_v1 = vpop.eup %3620 }
 0x2f3   :  { %v1310_v50 = vmul.f32 %v3621_v1, %v4762_v49  ;;  %v5107_v13 = vmul.f32 %v3621_v1, %v4752_v56  ;;  %v5113_v7 = vmul.f32 %v3621_v1, %v4746_v47  ;;  %v6763_v49 = vpack.c.bf16 %v4854_v18, %v4837_v52 }
 0x2f4   :  { %v6766_v18 = vpack.c.bf16 %v4942_v23, %v4923_v33 }
 0x2f5   :  { %v1324_v35 = vpack.c.bf16 %v1310_v50, %v1309_v37  ;;  %v1294_v42 = vpack.c.bf16 %v5107_v13, %v5103_v24  ;;  %v1293_v14 = vpack.c.bf16 %v5113_v7, %v5110_v5  ;;  %v6767_v50 = vpack.c.bf16 %v4931_v4, %v4910_v17 }
 0x2f7   :  { %3312 = vmatmul.mubr.msk.bf16.vlgmr.msra.gmra.mrb[0].mxu1 %vm87_vm2, %v1324_v35  ;;  %v1193_v56 = vpop.xlane.xlu1 %1192 }
 0x2f8   :  { %1517 = vmatpush1.bf16.xpose.msra.mxu1 %v6761_v61  ;;  %v1196_v47 = vpop.xlane.xlu0 %1195 }
 0x2f9   :  { %1518 = vmatprep.subr.bf16.mxu1 %v6762_v10 }
 0x2fb   :  { %v1145_v29 = vpop.xlane.xlu1 %1144 }
 0x2fc   :  { %v1148_v45 = vpop.xlane.xlu0 %1147  ;;  %v1231_v3 = vadd.f32 %v1193_v56, %v1145_v29 }
 0x2fd   :  { %v1232_v19 = vadd.f32 %v1196_v47, %v1148_v45 }
 0x2fe   :  { %3622 = vrcp.f32 %v1231_v3  ;;  %v6771_v3 = vld [vmem:[#allocation39_spill] sm:$0xff] }
 0x2ff   :  { %3624 = vrcp.f32 %v1232_v19  ;;  %v1199_v26 = vpop.xlane.xlu1 %1198 }
 0x300   :  { %1519 = vmatpush1.bf16.xpose.msra.mxu1 %v6763_v49  ;;  %v1202_v2 = vpop.xlane.xlu0 %1201 }
 0x301   :  { %1520 = vmatprep.subr.bf16.mxu1 %v6764_v0  ;;  %v6770_v0 = vpack.c.bf16 %v4996_v28, %v4988_v53 }
 0x303   :  { %v1151_v52 = vpop.xlane.xlu1 %1150 }
 0x304   :  { %v1154_v36 = vpop.xlane.xlu0 %1153  ;;  %v1233_v60 = vadd.f32 %v1199_v26, %v1151_v52  ;;  %v6772_v26 = vld [vmem:[#allocation32_spill] sm:$0xff] }
 0x305   :  { %v1234_v40 = vadd.f32 %v1202_v2, %v1154_v36 }
 0x306   :  { %3626 = vrcp.f32 %v1233_v60 }
 0x307   :  { %3628 = vrcp.f32 %v1234_v40  ;;  %v1205_v39 = vpop.xlane.xlu1 %1204 }
 0x308   :  { %1521 = vmatpush1.bf16.xpose.msra.mxu1 %v6765_v44  ;;  %v1208_v46 = vpop.xlane.xlu0 %1207  ;;  %v3623_v1 = vpop.eup %3622 }
 0x309   :  { %1522 = vmatprep.subr.bf16.mxu1 %v6766_v18  ;;  %v3625_v37 = vpop.eup %3624  ;;  %v1311_v11 = vmul.f32 %v3623_v1, %v4822_v54  ;;  %v5147_v23 = vmul.f32 %v3623_v1, %v4832_v16  ;;  %v5156_v17 = vmul.f32 %v3623_v1, %v4817_v51  ;;  %v6769_v51 = vpack.c.bf16 %v4966_v21, %v4950_v62  ;;  %v6773_v62 = vld [vmem:[#allocation31_spill] sm:$0xff] }
 0x30a   :  { %v1312_v33 = vmul.f32 %v3625_v37, %v4828_v20  ;;  %v5150_v35 = vmul.f32 %v3625_v37, %v4839_v58  ;;  %v5153_v61 = vmul.f32 %v3625_v37, %v4835_v9  ;;  %v6776_v37 = vpack.c.bf16 %v5022_v38, %v5010_v48 }
 0x30b   :  { %v1157_v10 = vpop.xlane.xlu1 %1156 }
 0x30c   :  { %v1160_v4 = vpop.xlane.xlu0 %1159  ;;  %v1235_v54 = vadd.f32 %v1205_v39, %v1157_v10  ;;  %v1325_v43 = vpack.c.bf16 %v1312_v33, %v1311_v11  ;;  %v1296_v20 = vpack.c.bf16 %v5150_v35, %v5147_v23  ;;  %v1295_v16 = vpack.c.bf16 %v5153_v61, %v5156_v17  ;;  %v6779_v10 = vld [vmem:[#allocation64_spill] sm:$0xff] }
 0x30d   :  { %v1236_v56 = vadd.f32 %v1208_v46, %v1160_v4  ;;  %v6774_v39 = vpack.c.bf16 %v4992_v30, %v4980_v12  ;;  %v6775_v46 = vld [vmem:[#allocation34_spill] sm:$0xff]  ;;  %v6781_v12 = vld [vmem:[#allocation40_spill] sm:$0xff] }
 0x30e   :  { %3630 = vrcp.f32 %v1235_v54  ;;  %3315 = vmatprep.mubr.msk.bf16.mxu1 %vm87_vm2, %v1325_v43  ;;  %v6780_v54 = vld [vmem:[#allocation63_spill] sm:$0xff]  ;;  %v5287_v61 = vld [vmem:[%s6514_s0 + $0x8] sm:$0xff] }
 0x30f   :  { %3632 = vrcp.f32 %v1236_v56  ;;  %v1211_v9 = vpop.xlane.xlu1 %1210 }
 0x310   :  { %1523 = vmatpush1.bf16.xpose.msra.mxu1 %v6767_v50  ;;  %v1214_v58 = vpop.xlane.xlu0 %1213  ;;  %v3627_v41 = vpop.eup %3626  ;;  %v6777_v50 = vld [vmem:[#allocation35_spill] sm:$0xff] }
 0x311   :  { %1524 = vmatprep.subr.bf16.mxu1 %v6768_v31  ;;  %v3629_v47 = vpop.eup %3628  ;;  %v1313_v49 = vmul.f32 %v3627_v41, %v4865_v15  ;;  %v5172_v45 = vmul.f32 %v3627_v41, %v4875_v25  ;;  %v5181_v18 = vmul.f32 %v3627_v41, %v6773_v62  ;;  %v6778_v31 = vld [vmem:[#allocation36_spill] sm:$0xff] }
 0x312   :  { %v1314_v29 = vmul.f32 %v3629_v47, %v4868_v6  ;;  %v5175_v19 = vmul.f32 %v3629_v47, %v6771_v3  ;;  %v5178_v2 = vmul.f32 %v3629_v47, %v6772_v26  ;;  %v6782_v3 = vpack.c.bf16 %v5018_v57, %v5004_v63  ;;  %v6783_v26 = vld [vmem:[#allocation66_spill] sm:$0xff] }
 0x313   :  { %v1163_v44 = vpop.xlane.xlu1 %1162 }
 0x314   :  { %v1166_v21 = vpop.xlane.xlu0 %1165  ;;  %v1237_v15 = vadd.f32 %v1211_v9, %v1163_v44  ;;  %v1326_v53 = vpack.c.bf16 %v1314_v29, %v1313_v49  ;;  %v1298_v6 = vpack.c.bf16 %v5175_v19, %v5172_v45  ;;  %v1297_v25 = vpack.c.bf16 %v5178_v2, %v5181_v18 }
 0x315   :  { %v1238_v52 = vadd.f32 %v1214_v58, %v1166_v21  ;;  %v6784_v21 = vld [vmem:[#allocation71_spill] sm:$0xff]  ;;  %v1760_v45 = vmul.f32 %v5287_v61, %v5287_v61 }
 0x316   :  { %3634 = vrcp.f32 %v1237_v15  ;;  %3316 = vmatmul.mubr.msk.bf16.gmra.mrb[4].mxu1 %vm87_vm2, %v1326_v53  ;;  %v6785_v62 = vpack.c.bf16 %v5044_v22, %v6784_v21  ;;  %v6786_v15 = vld [vmem:[#allocation67_spill] sm:$0xff]  ;;  %v6787_v53 = vld [vmem:[#allocation68_spill] sm:$0xff] }
 0x317   :  { %3636 = vrcp.f32 %v1238_v52  ;;  %v1217_v28 = vpop.xlane.xlu1 %1216  ;;  %v1762_v19 = vcombine.high %v1760_v45, %v1760_v45 }
 0x318   :  { %1525 = vmatpush1.bf16.xpose.msra.mxu1 %v6769_v51  ;;  %v1220_v36 = vpop.xlane.xlu0 %1219  ;;  %v3631_v60 = vpop.eup %3630 }
 0x319   :  { %1526 = vmatprep.subr.bf16.mxu1 %v6770_v0  ;;  %v3633_v40 = vpop.eup %3632  ;;  %v1315_v1 = vmul.f32 %v3631_v60, %v6775_v46  ;;  %v5197_v33 = vmul.f32 %v3631_v60, %v6778_v31  ;;  %v5206_v9 = vmul.f32 %v3631_v60, %v6781_v12  ;;  %v6795_v12 = vld [vmem:[#allocation75_spill] sm:$0xff] }
 0x31a   :  { %v1316_v11 = vmul.f32 %v3633_v40, %v6777_v50  ;;  %v5200_v4 = vmul.f32 %v3633_v40, %v6779_v10  ;;  %v5203_v56 = vmul.f32 %v3633_v40, %v6780_v54  ;;  %v6789_v40 = vld [vmem:[#allocation37_spill] sm:$0xff] }
 0x31b   :  { %v1169_v43 = vpop.xlane.xlu1 %1168  ;;  %v6792_v54 = vld [vmem:[#allocation69_spill] sm:$0xff] }
 0x31c   :  { %v1172_v30 = vpop.xlane.xlu0 %1171  ;;  %v1239_v58 = vadd.f32 %v1217_v28, %v1169_v43  ;;  %v1327_v48 = vpack.c.bf16 %v1316_v11, %v1315_v1  ;;  %v1300_v38 = vpack.c.bf16 %v5200_v4, %v5197_v33  ;;  %v1299_v47 = vpack.c.bf16 %v5203_v56, %v5206_v9  ;;  %v6791_v4 = vld [vmem:[#allocation73_spill] sm:$0xff]  ;;  %v6794_v43 = vld [vmem:[#allocation72_spill] sm:$0xff] }
 0x31d   :  { %v1240_v41 = vadd.f32 %v1220_v36, %v1172_v30  ;;  %v6788_v36 = vld [vmem:[#allocation38_spill] sm:$0xff]  ;;  %v6793_v56 = vpack.c.bf16 %v6791_v4, %v6792_v54  ;;  %v1771_v4 = vsel %vm141_vm0, %v1762_v19, 0.0 }
 0x31e   :  { %3638 = vrcp.f32 %v1239_v58  ;;  %3319 = vmatprep.mubr.msk.bf16.mxu1 %vm87_vm2, %v1327_v48  ;;  %v6796_v58 = vld [vmem:[#allocation74_spill] sm:$0xff]  ;;  %v6797_v48 = vld [vmem:[#allocation77_spill] sm:$0xff] }
 0x31f   :  { %3640 = vrcp.f32 %v1240_v41  ;;  %v1175_v51 = vpop.xlane.xlu1 %1174 }
 0x320   :  { %1527 = vmatpush1.bf16.xpose.msra.mxu1 %v6774_v39  ;;  %v1178_v49 = vpop.xlane.xlu0 %1177  ;;  %v3635_v0 = vpop.eup %3634 }
 0x321   :  { %1528 = vmatprep.subr.bf16.mxu1 %v6776_v37  ;;  %v3637_v29 = vpop.eup %3636  ;;  %v1317_v44 = vmul.f32 %v3635_v0, %v6783_v26  ;;  %v1280_v28 = vmul.f32 %v3635_v0, %v6787_v53  ;;  %v6790_v37 = vld [vmem:[#allocation65_spill] sm:$0xff] }
 0x322   :  { %v1318_v52 = vmul.f32 %v3637_v29, %v6786_v15  ;;  %v1282_v60 = vmul.f32 %v3637_v29, %v6788_v36  ;;  %v1281_v39 = vmul.f32 %v3637_v29, %v6789_v40  ;;  %v1279_v50 = vmul.f32 %v3635_v0, %v6790_v37  ;;  %v6799_v29 = vld [vmem:[#allocation76_spill] sm:$0xff] }
 0x323   :  { %v1223_v46 = vpop.xlane.xlu1 %1222 }
 0x324   :  { %v1226_v1 = vpop.xlane.xlu0 %1225  ;;  %v1241_v63 = vadd.f32 %v1223_v46, %v1175_v51  ;;  %v1328_v11 = vpack.c.bf16 %v1318_v52, %v1317_v44  ;;  %v1302_v31 = vpack.c.bf16 %v1282_v60, %v1280_v28  ;;  %v1301_v33 = vpack.c.bf16 %v1281_v39, %v1279_v50  ;;  %v6800_v52 = vld [vmem:[#allocation82_spill] sm:$0xff]  ;;  %v6801_v28 = vld [vmem:[#allocation79_spill] sm:$0xff]  ;;  %v6803_v39 = vld [vmem:[#allocation81_spill] sm:$0xff] }
 0x325   :  { %v1242_v57 = vadd.f32 %v1226_v1, %v1178_v49  ;;  %v6798_v49 = vld [vmem:[#allocation70_spill] sm:$0xff]  ;;  %v6802_v60 = vld [vmem:[#allocation83_spill] sm:$0xff]  ;;  %v6805_v50 = vld [vmem:[#allocation80_spill] sm:$0xff] }
 0x326   :  { %3642 = vrcp.f32 %v1241_v63  ;;  %3320 = vmatmul.mubr.msk.bf16.gmra.mrb[8].mxu1 %vm87_vm2, %v1328_v11  ;;  %v6804_v1 = vld [vmem:[#allocation78_spill] sm:$0xff] }
 0x327   :  { %3644 = vrcp.f32 %v1242_v57 }
 0x328   :  { %1529 = vmatpush1.bf16.xpose.msra.mxu1 %v6782_v3  ;;  %v3639_v22 = vpop.eup %3638 }
 0x329   :  { %1530 = vmatprep.subr.bf16.mxu1 %v6785_v62  ;;  %v3641_v10 = vpop.eup %3640  ;;  %v1319_v30 = vmul.f32 %v3639_v22, %v6794_v43  ;;  %v1284_v9 = vmul.f32 %v3639_v22, %v6795_v12  ;;  %v1283_v0 = vmul.f32 %v3639_v22, %v6798_v49  ;;  %v74_v49 = vld [vmem:[%s6522_s8 + $0x18] sm:$0xff] }
 0x32a   :  { %v1320_v41 = vmul.f32 %v3641_v10, %v6796_v58  ;;  %v1286_v51 = vmul.f32 %v3641_v10, %v6797_v48  ;;  %v1285_v3 = vmul.f32 %v3641_v10, %v6799_v29 }
 0x32c   :  { %v1329_v26 = vpack.c.bf16 %v1320_v41, %v1319_v30  ;;  %v1304_v44 = vpack.c.bf16 %v1286_v51, %v1284_v9  ;;  %v1303_v21 = vpack.c.bf16 %v1285_v3, %v1283_v0  ;;  %v1772_v30 = vrot.slane %v1771_v4, 4  ;;  %v73_v51 = vld [vmem:[%s6522_s8 + $0x10] sm:$0xff] }
 0x32e   :  { %3323 = vmatprep.mubr.msk.bf16.mxu1 %vm87_vm2, %v1329_v26  ;;  %v1773_v29 = vadd.f32 %v1772_v30, %v1771_v4 }
 0x330   :  { %1531 = vmatpush1.bf16.xpose.msra.mxu1 %v6793_v56  ;;  %v3643_v62 = vpop.eup %3642 }
 0x331   :  { %v3645_v15 = vpop.eup %3644  ;;  %v1321_v53 = vmul.f32 %v3643_v62, %v6800_v52  ;;  %v1288_v36 = vmul.f32 %v3643_v62, %v6801_v28  ;;  %v1287_v37 = vmul.f32 %v3643_v62, %v6804_v1  ;;  %3327 = vmatprep.subr.bf16.mxu1 %v6617_v8 }
 0x332   :  { %v1322_v40 = vmul.f32 %v3645_v15, %v6802_v60  ;;  %v1290_v46 = vmul.f32 %v3645_v15, %v6803_v39  ;;  %v1289_v63 = vmul.f32 %v3645_v15, %v6805_v50  ;;  %v1774_v15 = vrot.slane %v1773_v29, 2  ;;  %v76_v39 = vld [vmem:[%s6522_s8 + $0x28] sm:$0xff] }
 0x334   :  { %v1330_v57 = vpack.c.bf16 %v1322_v40, %v1321_v53  ;;  %v1306_v11 = vpack.c.bf16 %v1290_v46, %v1288_v36  ;;  %v1305_v22 = vpack.c.bf16 %v1289_v63, %v1287_v37  ;;  %v75_v40 = vld [vmem:[%s6522_s8 + $0x20] sm:$0xff]  ;;  %v1775_v1 = vadd.f32 %v1774_v15, %v1773_v29 }
 0x336   :  { %3324 = vmatmul.mubr.msk.bf16.gmra.mrb[12].mxu1 %vm87_vm2, %v1330_v57 }
 0x337   :  { %1548 = vmatprep.mubr.bf16.mxu1 %v1292_v59 }
 0x33e   :  { %1549 = vmatmul.mubr.bf16.vlgmr.msra.gmra.mrb[16].mxu1 %v1291_v34 }
 0x33f   :  { %1556 = vmatprep.mubr.bf16.mxu1 %v1294_v42 }
 0x346   :  { %1557 = vmatmul.mubr.bf16.gmra.mrb[20].mxu1 %v1293_v14 }
 0x347   :  { %1564 = vmatprep.mubr.bf16.mxu1 %v1296_v20 }
 0x34e   :  { %1565 = vmatmul.mubr.bf16.gmra.mrb[24].mxu1 %v1295_v16 }
 0x34f   :  { %1572 = vmatprep.mubr.bf16.mxu1 %v1298_v6 }
 0x356   :  { %1573 = vmatmul.mubr.bf16.gmra.mrb[28].mxu1 %v1297_v25  ;;  %v71_v25 = vld [vmem:[%s6522_s8] sm:$0xff] }
 0x357   :  { %1580 = vmatprep.mubr.bf16.mxu1 %v1300_v38  ;;  %v72_v38 = vld [vmem:[%s6522_s8 + $0x8] sm:$0xff] }
 0x35e   :  { %1581 = vmatmul.mubr.bf16.gmra.mrb[32].mxu1 %v1299_v47 }
 0x35f   :  { %1588 = vmatprep.mubr.bf16.mxu1 %v1302_v31  ;;  %v1764_v31 = vsel %vm141_vm0, %v1760_v45, 0.0  ;;  %v77_v45 = vld [vmem:[%s6522_s8 + $0x30] sm:$0xff] }
 0x360   :  { %v1765_v43 = vrot.slane %v1764_v31, 4 }
 0x362   :  { %v1766_v48 = vadd.f32 %v1765_v43, %v1764_v31 }
 0x364   :  { %v1767_v62 = vrot.slane %v1766_v48, 2 }
 0x366   :  { %1589 = vmatmul.mubr.bf16.gmra.mrb[36].mxu1 %v1301_v33  ;;  %v1768_v60 = vadd.f32 %v1767_v62, %v1766_v48 }
 0x367   :  { %1596 = vmatprep.mubr.bf16.mxu1 %v1304_v44 }
 0x36e   :  { %1597 = vmatmul.mubr.bf16.gmra.mrb[40].mxu1 %v1303_v21 }
 0x36f   :  { %1604 = vmatprep.mubr.bf16.mxu1 %v1306_v11  ;;  %v1769_v11 = vrot.slane %v1768_v60, 1 }
 0x376   :  { %1605 = vmatmul.mubr.bf16.gmra.mrb[44].mxu1 %v1305_v22  ;;  %v1776_v22 = vrot.slane %v1775_v1, 1 }
 0x377   :  { %3343 = vmatprep.mubr.msk.bf16.mxu1 %vm3938_vm3, %v6617_v8 }
 0x3ca   :  { %v3313_v32 = vpop.f32.mrb[0].mxu1 }
 0x3cb   :  { %v1453_v27 = vpop.f32.mrb[1].mxu1 }
 0x3cc   :  { %v3314_v55 = vpop.f32.mrb[2].mxu1 }
 0x3cd   :  { %v1456_v59 = vpop.f32.mrb[3].mxu1 }
 0x3e9   :  { %v5270_v34 = vpop.f32.mrb[4].mxu1 }
 0x3ea   :  { %v1469_v24 = vpop.f32.mrb[5].mxu1 }
 0x3eb   :  { %v5272_v13 = vpop.f32.mrb[6].mxu1 }
 0x3ec   :  { %v1472_v5 = vpop.f32.mrb[7].mxu1 }
 0x3f9   :  { %v5274_v7 = vpop.f32.mrb[8].mxu1 }
 0x3fa   :  { %v5276_v42 = vpop.f32.mrb[9].mxu1 }
 0x3fb   :  { %v5278_v14 = vpop.f32.mrb[10].mxu1 }
 0x3fc   :  { %v5280_v23 = vpop.f32.mrb[11].mxu1 }
 0x409   :  { %v5282_v35 = vpop.f32.mrb[12].mxu1 }
 0x40a   :  { %v5289_v17 = vpop.f32.mrb[13].mxu1 }
 0x40b   :  { %v5291_v20 = vpop.f32.mrb[14].mxu1 }
 0x40c   :  { %v5293_v16 = vpop.f32.mrb[15].mxu1 }
 0x411   :  { %v1550_v2 = vpop.f32.mrb[16].mxu1 }
 0x412   :  { %v1551_v18 = vadd.f32 %v1550_v2, %v1453_v27  ;;  %v1552_v6 = vpop.f32.mrb[17].mxu1  ;;  %v1777_v2 = vadd.f32 %v1776_v22, %v1775_v1  ;;  %v85_v22 = vld [vmem:[%s6522_s8 + $0x70] sm:$0xff] }
 0x413   :  { %v1553_v47 = vpop.f32.mrb[18].mxu1 }
 0x414   :  { %v1554_v33 = vadd.f32 %v1553_v47, %v1456_v59  ;;  %v1555_v10 = vpop.f32.mrb[19].mxu1  ;;  %v1613_v54 = vmul.f32 %v1551_v18, %v71_v25  ;;  %v1779_v47 = vmax.f32 %v1777_v2, 1e-24 }
 0x416   :  { %v1614_v56 = vmul.f32 %v1554_v33, %v72_v38 }
 0x418   :  { %v1629_v12 = vpack.c.bf16 %v1614_v56, %v1613_v54  ;;  %v79_v54 = vld [vmem:[%s6522_s8 + $0x40] sm:$0xff] }
 0x419   :  { %v1558_v9 = vpop.f32.mrb[20].mxu1 }
 0x41a   :  { %v1559_v58 = vadd.f32 %v3313_v32, %v1558_v9  ;;  %v1560_v41 = vpop.f32.mrb[21].mxu1  ;;  %3328 = vmatpush3.bf16.xpose.msra.mxu1 %v1629_v12 }
 0x41b   :  { %v1561_v0 = vpop.f32.mrb[22].mxu1  ;;  %3329 = vmatprep.subr.bf16.mxu1 %v6617_v8 }
 0x41c   :  { %v1562_v3 = vadd.f32 %v3314_v55, %v1561_v0  ;;  %v1563_v26 = vpop.f32.mrb[23].mxu1  ;;  %v1615_v44 = vmul.f32 %v1559_v58, %v73_v51  ;;  %v81_v51 = vld [vmem:[%s6522_s8 + $0x50] sm:$0xff] }
 0x41e   :  { %v1616_v21 = vmul.f32 %v1562_v3, %v74_v49  ;;  %v82_v49 = vld [vmem:[%s6522_s8 + $0x58] sm:$0xff] }
 0x420   :  { %v1630_v52 = vpack.c.bf16 %v1616_v21, %v1615_v44 }
 0x421   :  { %v1566_v53 = vpop.f32.mrb[24].mxu1 }
 0x422   :  { %v1567_v28 = vadd.f32 %v1566_v53, %v1469_v24  ;;  %v1568_v36 = vpop.f32.mrb[25].mxu1  ;;  %3330 = vmatpush3.bf16.xpose.msra.mxu1 %v1630_v52  ;;  %v1770_v24 = vadd.f32 %v1769_v11, %v1768_v60 }
 0x423   :  { %v1569_v46 = vpop.f32.mrb[26].mxu1  ;;  %3331 = vmatprep.subr.bf16.mxu1 %v6617_v8 }
 0x424   :  { %v1570_v37 = vadd.f32 %v1569_v46, %v1472_v5  ;;  %v1571_v50 = vpop.f32.mrb[27].mxu1  ;;  %v1617_v63 = vmul.f32 %v1567_v28, %v75_v40  ;;  %v78_v5 = vld [vmem:[%s6522_s8 + $0x38] sm:$0xff]  ;;  %v1778_v38 = vmax.f32 %v1770_v24, 1e-24  ;;  %v83_v28 = vld [vmem:[%s6522_s8 + $0x60] sm:$0xff] }
 0x426   :  { %v1618_v57 = vmul.f32 %v1570_v37, %v76_v39  ;;  %3646 = vrsqrt.f32 %v1778_v38  ;;  %v6806_v37 = vld [vmem:[#allocation5_spill] sm:$0xff]  ;;  %v6812_v38 = vld [vmem:[#allocation10_spill] sm:$0xff] }
 0x427   :  { %3648 = vrsqrt.f32 %v1779_v47  ;;  %v6813_v47 = vld [vmem:[#allocation11_spill] sm:$0xff] }
 0x428   :  { %v1631_v32 = vpack.c.bf16 %v1618_v57, %v1617_v63 }
 0x429   :  { %v1574_v27 = vpop.f32.mrb[28].mxu1 }
 0x42a   :  { %v1575_v55 = vadd.f32 %v5270_v34, %v1574_v27  ;;  %v1576_v59 = vpop.f32.mrb[29].mxu1  ;;  %3332 = vmatpush3.bf16.xpose.msra.mxu1 %v1631_v32 }
 0x42b   :  { %v1577_v19 = vpop.f32.mrb[30].mxu1  ;;  %3333 = vmatprep.subr.bf16.mxu1 %v6617_v8 }
 0x42c   :  { %v1578_v18 = vadd.f32 %v5272_v13, %v1577_v19  ;;  %v1579_v6 = vpop.f32.mrb[31].mxu1  ;;  %v1619_v25 = vmul.f32 %v1575_v55, %v77_v45  ;;  %v80_v13 = vld [vmem:[%s6522_s8 + $0x48] sm:$0xff]  ;;  %v35_v19 = vld [vmem:[%s6519_s5] sm:$0x3] }
 0x42d   :  { %v6809_v6 = vld [vmem:[#allocation7_spill] sm:$0xff] }
 0x42e   :  { %v1620_v34 = vmul.f32 %v1578_v18, %v78_v5  ;;  %v6807_v18 = vmov 0  }
 0x430   :  { %v1632_v31 = vpack.c.bf16 %v1620_v34, %v1619_v25  ;;  %v3647_v3 = vpop.eup %3646  ;;  %v6810_v25 = vld [vmem:[#allocation8_spill] sm:$0xff]  ;;  %v6811_v34 = vld [vmem:[#allocation9_spill] sm:$0xff] }
 0x431   :  { %v1582_v33 = vpop.f32.mrb[32].mxu1  ;;  %v3649_v26 = vpop.eup %3648 }
 0x432   :  { %v1583_v10 = vadd.f32 %v1582_v33, %v5276_v42  ;;  %v1584_v4 = vpop.f32.mrb[33].mxu1  ;;  %3334 = vmatpush3.bf16.xpose.msra.mxu1 %v1632_v31  ;;  %v1784_v62 = vcombine.low %v3647_v3, %v3649_v26  ;;  %v6814_v31 = vld [vmem:[#allocation12_spill] sm:$0xff]  ;;  %v6815_v33 = vld [vmem:[#allocation13_spill] sm:$0xff] }
 0x433   :  { %v1585_v56 = vpop.f32.mrb[34].mxu1  ;;  %3335 = vmatprep.subr.bf16.mxu1 %v6617_v8  ;;  %v6817_v4 = vld [vmem:[#allocation15_spill] sm:$0xff] }
 0x434   :  { %v1586_v43 = vadd.f32 %v1585_v56, %v5280_v23  ;;  %v1587_v30 = vpop.f32.mrb[35].mxu1  ;;  %v1621_v12 = vmul.f32 %v1583_v10, %v79_v54  ;;  %v1786_v39 = vmul.f32 %v5287_v61, %v1784_v62  ;;  %v6816_v10 = vld [vmem:[#allocation14_spill] sm:$0xff]  ;;  %v6818_v54 = vld [vmem:[#allocation16_spill] sm:$0xff] }
 0x435   :  { %v6820_v56 = vld [vmem:[#allocation18_spill] sm:$0xff]  ;;  %v6822_v30 = vld [vmem:[#allocation20_spill] sm:$0xff] }
 0x436   :  { %v1622_v42 = vmul.f32 %v1586_v43, %v80_v13  ;;  %v1787_v50 = vmul.f32 %v1786_v39, %v6806_v37  ;;  %v6819_v13 = vld [vmem:[#allocation17_spill] sm:$0xff]  ;;  %v6821_v43 = vld [vmem:[#allocation19_spill] sm:$0xff] }
 0x438   :  { %v1633_v9 = vpack.c.bf16 %v1622_v42, %v1621_v12  ;;  %v1789_v55 = vcombine.high %v1787_v50, %v1787_v50  ;;  %v1791_v5 = vpack.c.bf16 %v1787_v50, %v1787_v50  ;;  %v6823_v12 = vld [vmem:[#allocation21_spill] sm:$0xff]  ;;  %v6824_v42 = vld [vmem:[#allocation22_spill] sm:$0xff] }
 0x439   :  { %v1590_v58 = vpop.f32.mrb[36].mxu1 }
 0x43a   :  { %v1591_v41 = vadd.f32 %v5274_v7, %v1590_v58  ;;  %v1592_v48 = vpop.f32.mrb[37].mxu1  ;;  %3336 = vmatpush3.bf16.xpose.msra.mxu1 %v1633_v9  ;;  %v1792_v45 = vpack.c.bf16 %v1789_v55, %v1789_v55  ;;  %v1794_v2 = vsel %vm323_vm1, %v1791_v5, 0  ;;  %v6825_v9 = vld [vmem:[#allocation23_spill] sm:$0xff]  ;;  %v6826_v58 = vld [vmem:[#allocation24_spill] sm:$0xff] }
 0x43b   :  { %v1593_v0 = vpop.f32.mrb[38].mxu1  ;;  %3337 = vmatprep.subr.bf16.mxu1 %v6617_v8  ;;  %v6828_v48 = vld [vmem:[#allocation26_spill] sm:$0xff] }
 0x43c   :  { %v1594_v23 = vadd.f32 %v5278_v14, %v1593_v0  ;;  %v1595_v29 = vpop.f32.mrb[39].mxu1  ;;  %v1623_v44 = vmul.f32 %v1591_v41, %v81_v51  ;;  %v84_v14 = vld [vmem:[%s6522_s8 + $0x68] sm:$0xff]  ;;  %v6827_v41 = vld [vmem:[#allocation25_spill] sm:$0xff]  ;;  %v6829_v51 = vld [vmem:[#allocation27_spill] sm:$0xff] }
 0x43d   :  { %v6831_v0 = vld [vmem:[#allocation30_spill] sm:$0xff] }
 0x43e   :  { %v1624_v7 = vmul.f32 %v1594_v23, %v82_v49  ;;  %v6830_v49 = vld [vmem:[#allocation28_spill] sm:$0xff] }
 0x440   :  { %v1634_v21 = vpack.c.bf16 %v1624_v7, %v1623_v44  ;;  %v6832_v7 = vld [vmem:[#allocation41_spill] sm:$0xff] }
 0x441   :  { %v1598_v15 = vpop.f32.mrb[40].mxu1 }
 0x442   :  { %v1599_v52 = vadd.f32 %v1598_v15, %v5289_v17  ;;  %v1600_v53 = vpop.f32.mrb[41].mxu1  ;;  %3338 = vmatpush3.bf16.xpose.msra.mxu1 %v1634_v21  ;;  %v3870_v21 = vld [vmem:[%s6518_s4 + $0x8] sm:$0xff]  }
 0x443   :  { %v1601_v36 = vpop.f32.mrb[42].mxu1  ;;  %3339 = vmatprep.subr.bf16.mxu1 %v6617_v8 }
 0x444   :  { %v1602_v60 = vadd.f32 %v1601_v36, %v5293_v16  ;;  %v1603_v40 = vpop.f32.mrb[43].mxu1  ;;  %v1625_v46 = vmul.f32 %v1599_v52, %v83_v28  ;;  %v86_v16 = vld [vmem:[%s6522_s8 + $0x78] sm:$0xff] }
 0x445   :  { %v6833_v36 = vld [vmem:[#allocation42_spill] sm:$0xff] }
 0x446   :  { %v1626_v17 = vmul.f32 %v1602_v60, %v84_v14  ;;  %v3871_v60 = vld [vmem:[%s6518_s4 + $0x10] sm:$0xff]  }
 0x448   :  { %v1635_v1 = vpack.c.bf16 %v1626_v17, %v1625_v46 }
 0x449   :  { %v1606_v63 = vpop.f32.mrb[44].mxu1 }
 0x44a   :  { %v1607_v57 = vadd.f32 %v5282_v35, %v1606_v63  ;;  %v1608_v11 = vpop.f32.mrb[45].mxu1  ;;  %3340 = vmatpush3.bf16.xpose.msra.mxu1 %v1635_v1 }
 0x44b   :  { %v1609_v32 = vpop.f32.mrb[46].mxu1  ;;  %3341 = vmatprep.subr.bf16.mxu1 %v6617_v8 }
 0x44c   :  { %v1610_v61 = vadd.f32 %v5291_v20, %v1609_v32  ;;  %v1611_v27 = vpop.f32.mrb[47].mxu1  ;;  %v1627_v59 = vmul.f32 %v1607_v57, %v85_v22  ;;  %v6808_v20 = vld [vmem:[#allocation6_spill] sm:$0xff]  ;;  %v6834_v57 = vld [vmem:[#allocation45_spill] sm:$0xff] }
 0x44d   :  { %v3872_v22 = vld [vmem:[%s6518_s4 + $0x18] sm:$0xff]  }
 0x44e   :  { %v1628_v24 = vmul.f32 %v1610_v61, %v86_v16 }
 0x450   :  { %v1636_v35 = vpack.c.bf16 %v1628_v24, %v1627_v59 }
 0x452   :  { %3342 = vmatpush3.bf16.xpose.msra.mxu1 %v1636_v35 }
 0x453   :  { %3212 = vmatprep.subr.msk.bf16.mxu1 %vm323_vm1, %v1792_v45 }
 0x459   :  { %3344 = vmatmul.mubr.bf16.vlgmr.msra.gmra.mrb[48].mxu1 %v35_v19 }
 0x45a   :  { %1800 = vmatpush1.bf16.msra.mxu1 %v1794_v2  ;;  %1831 = vmatprep.mubr.bf16.mxu1 %v6807_v18 }
 0x461   :  { %3213 = vmatmul.mubr.msk.bf16.vlgmr.msra.gmra.mrb[52].mxu1 %vm87_vm2, %v6808_v20  ;;  %v6835_v20 = vld [vmem:[#allocation48_spill] sm:$0xff] }
 0x462   :  { %1841 = vmatprep.mubr.bf16.mxu1 %v6807_v18 }
 0x469   :  { %3214 = vmatmul.mubr.msk.bf16.gmra.mrb[56].mxu1 %vm87_vm2, %v6809_v6 }
 0x46a   :  { %1851 = vmatprep.mubr.bf16.mxu1 %v6807_v18 }
 0x471   :  { %3215 = vmatmul.mubr.msk.bf16.gmra.mrb[60].mxu1 %vm87_vm2, %v6810_v25  ;;  %v3873_v25 = vld [vmem:[%s6518_s4 + $0x20] sm:$0xff]  }
 0x472   :  { %1861 = vmatprep.mubr.bf16.mxu1 %v6807_v18 }
 0x479   :  { %3216 = vmatmul.mubr.msk.bf16.gmra.mrb[64].mxu1 %vm87_vm2, %v6811_v34 }
 0x47a   :  { %1871 = vmatprep.mubr.bf16.mxu1 %v6807_v18 }
 0x481   :  { %3217 = vmatmul.mubr.msk.bf16.gmra.mrb[68].mxu1 %vm87_vm2, %v6812_v38 }
 0x482   :  { %1881 = vmatprep.mubr.bf16.mxu1 %v6807_v18 }
 0x489   :  { %3218 = vmatmul.mubr.msk.bf16.gmra.mrb[72].mxu1 %vm87_vm2, %v6813_v47 }
 0x48a   :  { %1891 = vmatprep.mubr.bf16.mxu1 %v6807_v18 }
 0x491   :  { %3219 = vmatmul.mubr.msk.bf16.gmra.mrb[76].mxu1 %vm87_vm2, %v6814_v31 }
 0x492   :  { %1901 = vmatprep.mubr.bf16.mxu1 %v6807_v18 }
 0x499   :  { %3220 = vmatmul.mubr.msk.bf16.gmra.mrb[80].mxu1 %vm87_vm2, %v6815_v33 }
 0x49a   :  { %1911 = vmatprep.mubr.bf16.mxu1 %v6807_v18 }
 0x4a1   :  { %3221 = vmatmul.mubr.msk.bf16.gmra.mrb[84].mxu1 %vm87_vm2, %v6816_v10 }
 0x4a2   :  { %1921 = vmatprep.mubr.bf16.mxu1 %v6807_v18 }
 0x4a9   :  { %3222 = vmatmul.mubr.msk.bf16.gmra.mrb[88].mxu1 %vm87_vm2, %v6817_v4 }
 0x4aa   :  { %1931 = vmatprep.mubr.bf16.mxu1 %v6807_v18 }
 0x4b1   :  { %3223 = vmatmul.mubr.msk.bf16.gmra.mrb[92].mxu1 %vm87_vm2, %v6818_v54 }
 0x4b2   :  { %1941 = vmatprep.mubr.bf16.mxu1 %v6807_v18 }
 0x4b9   :  { %3224 = vmatmul.mubr.msk.bf16.gmra.mrb[96].mxu1 %vm87_vm2, %v6819_v13 }
 0x4ba   :  { %1951 = vmatprep.mubr.bf16.mxu1 %v6807_v18 }
 0x4c1   :  { %3225 = vmatmul.mubr.msk.bf16.gmra.mrb[100].mxu1 %vm87_vm2, %v6820_v56 }
 0x4c2   :  { %1961 = vmatprep.mubr.bf16.mxu1 %v6807_v18 }
 0x4c9   :  { %3226 = vmatmul.mubr.msk.bf16.gmra.mrb[104].mxu1 %vm87_vm2, %v6821_v43 }
 0x4ca   :  { %1971 = vmatprep.mubr.bf16.mxu1 %v6807_v18 }
 0x4d1   :  { %3227 = vmatmul.mubr.msk.bf16.gmra.mrb[108].mxu1 %vm87_vm2, %v6822_v30 }
 0x4d2   :  { %1981 = vmatprep.mubr.bf16.mxu1 %v6807_v18 }
 0x4d9   :  { %3228 = vmatmul.mubr.msk.bf16.gmra.mrb[112].mxu1 %vm87_vm2, %v6823_v12 }
 0x4da   :  { %1991 = vmatprep.mubr.bf16.mxu1 %v6807_v18 }
 0x4e1   :  { %3229 = vmatmul.mubr.msk.bf16.gmra.mrb[116].mxu1 %vm87_vm2, %v6824_v42 }
 0x4e2   :  { %2001 = vmatprep.mubr.bf16.mxu1 %v6807_v18 }
 0x4e9   :  { %3230 = vmatmul.mubr.msk.bf16.gmra.mrb[120].mxu1 %vm87_vm2, %v6825_v9 }
 0x4ea   :  { %2011 = vmatprep.mubr.bf16.mxu1 %v6807_v18 }
 0x4f1   :  { %3231 = vmatmul.mubr.msk.bf16.gmra.mrb[124].mxu1 %vm87_vm2, %v6826_v58 }
 0x4f2   :  { %2021 = vmatprep.mubr.bf16.mxu1 %v6807_v18 }
 0x4f9   :  { %3232 = vmatmul.mubr.msk.bf16.gmra.mrb[128].mxu1 %vm87_vm2, %v6827_v41 }
 0x4fa   :  { %2031 = vmatprep.mubr.bf16.mxu1 %v6807_v18 }
 0x501   :  { %3233 = vmatmul.mubr.msk.bf16.gmra.mrb[132].mxu1 %vm87_vm2, %v6828_v48 }
 0x502   :  { %2041 = vmatprep.mubr.bf16.mxu1 %v6807_v18 }
 0x509   :  { %3234 = vmatmul.mubr.msk.bf16.gmra.mrb[136].mxu1 %vm87_vm2, %v6829_v51 }
 0x50a   :  { %2051 = vmatprep.mubr.bf16.mxu1 %v6807_v18 }
 0x511   :  { %3235 = vmatmul.mubr.msk.bf16.gmra.mrb[140].mxu1 %vm87_vm2, %v6830_v49 }
 0x512   :  { %2061 = vmatprep.mubr.bf16.mxu1 %v6807_v18 }
 0x519   :  { %3236 = vmatmul.mubr.msk.bf16.gmra.mrb[144].mxu1 %vm87_vm2, %v6831_v0  ;;  %v6836_v0 = vld [vmem:[#allocation49_spill] sm:$0xff] }
 0x51a   :  { %3115 = vmatprep.mubr.bf16.mxu1 %v6807_v18 }
 0x52c   :  { %v1671_v23 = vpop.f32.mrb[48].mxu1 }
 0x52d   :  { %v1677_v29 = vpack.c.bf16 %v1671_v23, %v1671_v23  ;;  %v3345_v3 = vpop.f32.mrb[49].mxu1 }
 0x52e   :  { %v1674_v26 = vpop.f32.mrb[50].mxu1 }
 0x52f   :  { %v3346_v44 = vpop.f32.mrb[51].mxu1  ;;  %1716 = vmatmul.mubr.bf16.vlgmr.msra.gmra.mrb[96].mxu0 %v1677_v29  ;;  %v3874_v26 = vld [vmem:[%s6518_s4 + $0x28] sm:$0xff]  }
 0x530   :  { %3348 = vmatpush3.bf16.xpose.msra.mxu0 %v6832_v7 }
 0x531   :  { %3408 = vmatprep.subr.msk.bf16.mxu0 %vm87_vm2, %v3870_v21 }
 0x534   :  { %v1833_v62 = vpop.f32.mrb[52].mxu1 }
 0x535   :  { %v1835_v15 = vpop.f32.mrb[53].mxu1 }
 0x536   :  { %v1837_v52 = vpop.f32.mrb[54].mxu1 }
 0x537   :  { %v2088_v53 = vmax.f32 %v1833_v62, %v1837_v52  ;;  %v1839_v28 = vpop.f32.mrb[55].mxu1 }
 0x538   :  { %v2097_v14 = vmax.f32 %v1835_v15, %v1839_v28  ;;  %3350 = vmatpush3.bf16.xpose.msra.mxu0 %v6833_v36 }
 0x539   :  { %3409 = vmatprep.subr.msk.bf16.mxu0 %vm87_vm2, %v3871_v60 }
 0x53c   :  { %v1843_v40 = vpop.f32.mrb[56].mxu1 }
 0x53d   :  { %v2089_v39 = vmax.f32 %v2088_v53, %v1843_v40  ;;  %v1845_v46 = vpop.f32.mrb[57].mxu1 }
 0x53e   :  { %v2098_v17 = vmax.f32 %v2097_v14, %v1845_v46  ;;  %v1847_v1 = vpop.f32.mrb[58].mxu1 }
 0x53f   :  { %v2090_v37 = vmax.f32 %v2089_v39, %v1847_v1  ;;  %v5454_v50 = vpop.f32.mrb[59].mxu1 }
 0x540   :  { %v2099_v63 = vmax.f32 %v2098_v17, %v5454_v50  ;;  %3352 = vmatpush3.bf16.xpose.msra.mxu0 %v6834_v57 }
 0x541   :  { %v2091_v11 = vrot.slane %v2090_v37, 4  ;;  %3410 = vmatprep.subr.msk.bf16.mxu0 %vm87_vm2, %v3872_v22 }
 0x542   :  { %v2100_v16 = vrot.slane %v2099_v63, 4 }
 0x543   :  { %v2092_v32 = vmax.f32 %v2090_v37, %v2091_v11  ;;  %v6837_v37 = vld [vmem:[#allocation62_spill] sm:$0xff] }
 0x544   :  { %v2101_v61 = vmax.f32 %v2099_v63, %v2100_v16  ;;  %v5462_v27 = vpop.f32.mrb[60].mxu1  ;;  %v3875_v63 = vld [vmem:[%s6518_s4 + $0x30] sm:$0xff]  }
 0x545   :  { %v2093_v55 = vrot.slane %v2092_v32, 2  ;;  %v5464_v59 = vpop.f32.mrb[61].mxu1 }
 0x546   :  { %v2102_v24 = vrot.slane %v2101_v61, 2  ;;  %v5466_v35 = vpop.f32.mrb[62].mxu1 }
 0x547   :  { %v2094_v45 = vmax.f32 %v2092_v32, %v2093_v55  ;;  %v2106_v5 = vmax.f32 %v5462_v27, %v5466_v35  ;;  %v5470_v19 = vpop.f32.mrb[63].mxu1 }
 0x548   :  { %v2103_v2 = vmax.f32 %v2101_v61, %v2102_v24  ;;  %v2115_v18 = vmax.f32 %v5464_v59, %v5470_v19  ;;  %3354 = vmatpush3.bf16.xpose.msra.mxu0 %v6835_v20 }
 0x549   :  { %v2095_v6 = vrot.slane %v2094_v45, 1  ;;  %3411 = vmatprep.subr.msk.bf16.mxu0 %vm87_vm2, %v3873_v25 }
 0x54a   :  { %v2104_v34 = vrot.slane %v2103_v2, 1 }
 0x54b   :  { %v2096_v38 = vmax.f32 %v2094_v45, %v2095_v6 }
 0x54c   :  { %v2105_v47 = vmax.f32 %v2103_v2, %v2104_v34  ;;  %v5479_v31 = vpop.f32.mrb[64].mxu1 }
 0x54d   :  { %v2160_v33 = vsub.f32 %v1833_v62, %v2096_v38  ;;  %v2162_v10 = vsub.f32 %v1837_v52, %v2096_v38  ;;  %v2164_v4 = vsub.f32 %v1843_v40, %v2096_v38  ;;  %v2166_v54 = vsub.f32 %v1847_v1, %v2096_v38  ;;  %v5481_v13 = vpop.f32.mrb[65].mxu1 }
 0x54e   :  { %v2161_v56 = vsub.f32 %v1835_v15, %v2105_v47  ;;  %v2163_v43 = vsub.f32 %v1839_v28, %v2105_v47  ;;  %v2165_v30 = vsub.f32 %v1845_v46, %v2105_v47  ;;  %v2167_v12 = vsub.f32 %v5454_v50, %v2105_v47  ;;  %v5484_v42 = vpop.f32.mrb[66].mxu1 }
 0x54f   :  { %v2192_v9 = vmul.f32 1.442695, %v2160_v33  ;;  %v2196_v58 = vmul.f32 1.442695, %v2162_v10  ;;  %v2200_v41 = vmul.f32 1.442695, %v2164_v4  ;;  %v2107_v48 = vmax.f32 %v2106_v5, %v5479_v31 }
 0x550   :  { %v2204_v51 = vmul.f32 1.442695, %v2166_v54  ;;  %v2116_v49 = vmax.f32 %v2115_v18, %v5481_v13  ;;  %3356 = vmatpush3.bf16.xpose.msra.mxu0 %v6836_v0  ;;  %v2194_v23 = vmul.f32 1.442695, %v2161_v56  ;;  %v5490_v3 = vpop.f32.mrb[67].mxu1 }
 0x551   :  { %3650 = vpow2.f32 %v2192_v9  ;;  %v2108_v29 = vmax.f32 %v2107_v48, %v5484_v42  ;;  %3412 = vmatprep.subr.msk.bf16.mxu0 %vm87_vm2, %v3874_v26  ;;  %v2198_v44 = vmul.f32 1.442695, %v2163_v43  ;;  %v2202_v62 = vmul.f32 1.442695, %v2165_v30  ;;  %v6838_v9 = vld [vmem:[#allocation29_spill] sm:$0xff] }
 0x552   :  { %3652 = vpow2.f32 %v2196_v58  ;;  %v2117_v7 = vmax.f32 %v2116_v49, %v5490_v3  ;;  %v2206_v14 = vmul.f32 1.442695, %v2167_v12 }
 0x553   :  { %3654 = vpow2.f32 %v2200_v41  ;;  %v2109_v21 = vrot.slane %v2108_v29, 4  ;;  %v3876_v41 = vld [vmem:[%s6518_s4 + $0x38] sm:$0xff]  }
 0x554   :  { %3656 = vpow2.f32 %v2204_v51  ;;  %v2118_v15 = vrot.slane %v2117_v7, 4  ;;  %v5497_v52 = vpop.f32.mrb[68].mxu1 }
 0x555   :  { %3658 = vpow2.f32 %v2194_v23  ;;  %v2110_v53 = vmax.f32 %v2108_v29, %v2109_v21  ;;  %v5499_v28 = vpop.f32.mrb[69].mxu1 }
 0x556   :  { %3660 = vpow2.f32 %v2198_v44  ;;  %v2119_v36 = vmax.f32 %v2117_v7, %v2118_v15  ;;  %v5501_v60 = vpop.f32.mrb[70].mxu1 }
 0x557   :  { %v2111_v40 = vrot.slane %v2110_v53, 2  ;;  %v2124_v39 = vmax.f32 %v5497_v52, %v5501_v60  ;;  %v5505_v46 = vpop.f32.mrb[71].mxu1  ;;  %3662 = vpow2.f32 %v2202_v62 }
 0x558   :  { %v2120_v17 = vrot.slane %v2119_v36, 2  ;;  %v2133_v1 = vmax.f32 %v5499_v28, %v5505_v46  ;;  %3358 = vmatpush3.bf16.xpose.msra.mxu0 %v6837_v37  ;;  %3664 = vpow2.f32 %v2206_v14 }
 0x559   :  { %v2112_v50 = vmax.f32 %v2110_v53, %v2111_v40  ;;  %3413 = vmatprep.subr.msk.bf16.mxu0 %vm87_vm2, %v3875_v63  ;;  %v6839_v63 = vld [vmem:[#allocation33_spill] sm:$0xff] }
 0x55a   :  { %v2121_v57 = vmax.f32 %v2119_v36, %v2120_v17 }
 0x55b   :  { %v5514_v11 = vpop.eup %3650  ;;  %v2113_v22 = vrot.slane %v2112_v50, 1 }
 0x55c   :  { %v5516_v16 = vpop.eup %3652  ;;  %v2122_v32 = vrot.slane %v2121_v57, 1  ;;  %v5518_v61 = vpop.f32.mrb[72].mxu1 }
 0x55d   :  { %v5520_v55 = vpop.eup %3654  ;;  %v2256_v24 = vadd.f32 %v5516_v16, %v5514_v11  ;;  %v2114_v45 = vmax.f32 %v2112_v50, %v2113_v22  ;;  %v2125_v5 = vmax.f32 %v2124_v39, %v5518_v61  ;;  %v5525_v2 = vpop.f32.mrb[73].mxu1 }
 0x55e   :  { %v5527_v18 = vpop.eup %3656  ;;  %v2123_v20 = vmax.f32 %v2121_v57, %v2122_v32  ;;  %v2134_v6 = vmax.f32 %v2133_v1, %v5525_v2  ;;  %v5530_v25 = vpop.f32.mrb[74].mxu1 }
 0x55f   :  { %v5532_v34 = vpop.eup %3658  ;;  %v2257_v38 = vadd.f32 %v5520_v55, %v2256_v24  ;;  %v2168_v47 = vsub.f32 %v5462_v27, %v2114_v45  ;;  %v2170_v33 = vsub.f32 %v5466_v35, %v2114_v45  ;;  %v2172_v10 = vsub.f32 %v5479_v31, %v2114_v45  ;;  %v5538_v4 = vpop.f32.mrb[75].mxu1 }
 0x560   :  { %v5540_v54 = vpop.eup %3660  ;;  %v2174_v56 = vsub.f32 %v5484_v42, %v2114_v45  ;;  %v2169_v43 = vsub.f32 %v5464_v59, %v2123_v20  ;;  %v2171_v30 = vsub.f32 %v5470_v19, %v2123_v20  ;;  %v2173_v12 = vsub.f32 %v5481_v13, %v2123_v20  ;;  %3360 = vmatpush3.bf16.xpose.msra.mxu0 %v6838_v9 }
 0x561   :  { %v2258_v27 = vadd.f32 %v5527_v18, %v2257_v38  ;;  %v2265_v35 = vadd.f32 %v5540_v54, %v5532_v34  ;;  %v2208_v31 = vmul.f32 1.442695, %v2168_v47  ;;  %v2212_v58 = vmul.f32 1.442695, %v2170_v33  ;;  %3414 = vmatprep.subr.msk.bf16.mxu0 %vm87_vm2, %v3876_v41  ;;  %v5554_v59 = vpop.eup %3662 }
 0x562   :  { %v2216_v19 = vmul.f32 1.442695, %v2172_v10  ;;  %v2220_v42 = vmul.f32 1.442695, %v2174_v56  ;;  %v2175_v13 = vsub.f32 %v5490_v3, %v2123_v20  ;;  %v2210_v49 = vmul.f32 1.442695, %v2169_v43  ;;  %v5558_v0 = vpop.eup %3664 }
 0x563   :  { %v2259_v48 = vrot.slane %v2258_v27, 4  ;;  %v2266_v51 = vadd.f32 %v5554_v59, %v2265_v35  ;;  %3666 = vpow2.f32 %v2208_v31  ;;  %v2214_v23 = vmul.f32 1.442695, %v2171_v30 }
 0x564   :  { %3668 = vpow2.f32 %v2212_v58  ;;  %v2126_v29 = vmax.f32 %v2125_v5, %v5530_v25  ;;  %v5561_v26 = vpop.f32.mrb[76].mxu1  ;;  %v2135_v21 = vmax.f32 %v2134_v6, %v5538_v4  ;;  %v2218_v62 = vmul.f32 1.442695, %v2173_v12 }
 0x565   :  { %v2260_v44 = vadd.f32 %v2259_v48, %v2258_v27  ;;  %v2267_v7 = vadd.f32 %v5558_v0, %v2266_v51  ;;  %3670 = vpow2.f32 %v2216_v19  ;;  %v5565_v3 = vpop.f32.mrb[77].mxu1  ;;  %v2222_v15 = vmul.f32 1.442695, %v2175_v13 }
 0x566   :  { %3672 = vpow2.f32 %v2220_v42  ;;  %v2127_v53 = vrot.slane %v2126_v29, 4  ;;  %v5567_v14 = vpop.f32.mrb[78].mxu1  ;;  %v2136_v39 = vrot.slane %v2135_v21, 4 }
 0x567   :  { %v2261_v36 = vrot.slane %v2260_v44, 2  ;;  %v2268_v40 = vrot.slane %v2267_v7, 4  ;;  %3674 = vpow2.f32 %v2210_v49  ;;  %v5569_v17 = vpop.f32.mrb[79].mxu1  ;;  %v2142_v37 = vmax.f32 %v5561_v26, %v5567_v14 }
 0x568   :  { %3676 = vpow2.f32 %v2214_v23  ;;  %v2128_v1 = vmax.f32 %v2126_v29, %v2127_v53  ;;  %v2151_v50 = vmax.f32 %v5565_v3, %v5569_v17  ;;  %3362 = vmatpush3.bf16.xpose.msra.mxu0 %v6839_v63  ;;  %v2137_v32 = vmax.f32 %v2135_v21, %v2136_v39 }
 0x569   :  { %v2262_v57 = vadd.f32 %v2261_v36, %v2260_v44  ;;  %v2269_v22 = vadd.f32 %v2268_v40, %v2267_v7  ;;  %3678 = vpow2.f32 %v2218_v62 }
 0x56a   :  { %v2129_v24 = vrot.slane %v2128_v1, 2  ;;  %v2138_v20 = vrot.slane %v2137_v32, 2  ;;  %3680 = vpow2.f32 %v2222_v15 }
 0x56b   :  { %v2263_v45 = vrot.slane %v2262_v57, 1  ;;  %v2270_v5 = vrot.slane %v2269_v22, 2 }
 0x56c   :  { %v2130_v6 = vmax.f32 %v2128_v1, %v2129_v24  ;;  %v5576_v38 = vpop.f32.mrb[80].mxu1  ;;  %v2139_v56 = vmax.f32 %v2137_v32, %v2138_v20 }
 0x56d   :  { %v5578_v47 = vpop.eup %3666  ;;  %v2264_v33 = vadd.f32 %v2263_v45, %v2262_v57  ;;  %v2271_v10 = vadd.f32 %v2270_v5, %v2269_v22  ;;  %v2143_v43 = vmax.f32 %v2142_v37, %v5576_v38  ;;  %v5581_v30 = vpop.f32.mrb[81].mxu1 }
 0x56e   :  { %v5583_v12 = vpop.eup %3668  ;;  %v2131_v9 = vrot.slane %v2130_v6, 1  ;;  %v2152_v27 = vmax.f32 %v2151_v50, %v5581_v30  ;;  %v5586_v35 = vpop.f32.mrb[82].mxu1  ;;  %v2140_v41 = vrot.slane %v2139_v56, 1 }
 0x56f   :  { %v5588_v31 = vpop.eup %3670  ;;  %v2274_v58 = vadd.f32 %v5583_v12, %v5578_v47  ;;  %v2144_v19 = vmax.f32 %v2143_v43, %v5586_v35  ;;  %v5593_v42 = vpop.f32.mrb[83].mxu1  ;;  %3682 = vrcp.f32 %v2264_v33  ;;  %v2272_v7 = vrot.slane %v2271_v10, 1 }
 0x570   :  { %v5595_v13 = vpop.eup %3672  ;;  %v2132_v48 = vmax.f32 %v2130_v6, %v2131_v9  ;;  %v2153_v51 = vmax.f32 %v2152_v27, %v5593_v42  ;;  %v2141_v29 = vmax.f32 %v2139_v56, %v2140_v41 }
 0x571   :  { %v5598_v49 = vpop.eup %3674  ;;  %v2275_v23 = vadd.f32 %v5588_v31, %v2274_v58  ;;  %v2145_v44 = vrot.slane %v2144_v19, 4  ;;  %v2273_v5 = vadd.f32 %v2272_v7, %v2271_v10 }
 0x572   :  { %v5601_v21 = vpop.eup %3676  ;;  %v2176_v62 = vsub.f32 %v5497_v52, %v2132_v48  ;;  %v2178_v15 = vsub.f32 %v5501_v60, %v2132_v48  ;;  %v2180_v53 = vsub.f32 %v5518_v61, %v2132_v48  ;;  %v2182_v36 = vsub.f32 %v5530_v25, %v2132_v48 }
 0x573   :  { %v2276_v40 = vadd.f32 %v5595_v13, %v2275_v23  ;;  %v2283_v39 = vadd.f32 %v5601_v21, %v5598_v49  ;;  %v2177_v1 = vsub.f32 %v5499_v28, %v2141_v29  ;;  %v2179_v37 = vsub.f32 %v5505_v46, %v2141_v29  ;;  %v5612_v50 = vpop.eup %3678 }
 0x574   :  { %v2224_v63 = vmul.f32 1.442695, %v2176_v62  ;;  %v2228_v57 = vmul.f32 1.442695, %v2178_v15  ;;  %v2232_v52 = vmul.f32 1.442695, %v2180_v53  ;;  %v2181_v60 = vsub.f32 %v5525_v2, %v2141_v29  ;;  %v5619_v45 = vpop.eup %3680 }
 0x575   :  { %v2277_v22 = vrot.slane %v2276_v40, 4  ;;  %v2284_v61 = vadd.f32 %v5612_v50, %v2283_v39  ;;  %v2236_v25 = vmul.f32 1.442695, %v2182_v36  ;;  %v2183_v32 = vsub.f32 %v5538_v4, %v2141_v29  ;;  %v5617_v24 = vpop.f32.mrb[84].mxu1 }
 0x576   :  { %3684 = vpow2.f32 %v2224_v63  ;;  %v2226_v28 = vmul.f32 1.442695, %v2177_v1  ;;  %v2230_v46 = vmul.f32 1.442695, %v2179_v37  ;;  %v2234_v33 = vmul.f32 1.442695, %v2181_v60 }
 0x577   :  { %v2278_v20 = vadd.f32 %v2277_v22, %v2276_v40  ;;  %v2285_v6 = vadd.f32 %v5619_v45, %v2284_v61  ;;  %3686 = vpow2.f32 %v2228_v57  ;;  %v5622_v2 = vpop.f32.mrb[85].mxu1  ;;  %v2146_v56 = vmax.f32 %v2144_v19, %v2145_v44 }
 0x578   :  { %3688 = vpow2.f32 %v2232_v52  ;;  %v2154_v43 = vrot.slane %v2153_v51, 4  ;;  %v5624_v9 = vpop.f32.mrb[86].mxu1  ;;  %v2392_v4 = vmax.f32 %v5617_v24, %v5622_v2  ;;  %v2238_v41 = vmul.f32 1.442695, %v2183_v32 }
 0x579   :  { %v2279_v27 = vrot.slane %v2278_v20, 2  ;;  %v2286_v58 = vrot.slane %v2285_v6, 4  ;;  %3690 = vpow2.f32 %v2236_v25  ;;  %v5628_v10 = vpop.f32.mrb[87].mxu1  ;;  %v3683_v48 = vpop.eup %3682  ;;  %v2147_v23 = vrot.slane %v2146_v56, 2 }
 0x57a   :  { %3692 = vpow2.f32 %v2226_v28  ;;  %v2155_v29 = vmax.f32 %v2153_v51, %v2154_v43  ;;  %2393 = vmax.xlane.f32.xlu1 %v2392_v4  ;;  %v2395_v19 = vmax.f32 %v5624_v9, %v5628_v10  ;;  %v2336_v62 = vmul.f32 0.17677669, %v3683_v48 }
 0x57b   :  { %v2280_v44 = vadd.f32 %v2279_v27, %v2278_v20  ;;  %v2287_v7 = vadd.f32 %v2286_v58, %v2285_v6  ;;  %3694 = vpow2.f32 %v2230_v46  ;;  %v2148_v15 = vmax.f32 %v2146_v56, %v2147_v23 }
 0x57c   :  { %3696 = vpow2.f32 %v2234_v33  ;;  %v2156_v53 = vrot.slane %v2155_v29, 2  ;;  %2396 = vmax.xlane.f32.xlu0 %v2395_v19  ;;  %v5632_v36 = vpop.f32.mrb[88].mxu1  ;;  %v5637_v51 = vmul.f32 %v5514_v11, %v2336_v62  ;;  %v5646_v25 = vmul.f32 %v5516_v16, %v2336_v62 }
 0x57d   :  { %v2281_v40 = vrot.slane %v2280_v44, 1  ;;  %v2288_v39 = vrot.slane %v2287_v7, 2  ;;  %3698 = vpow2.f32 %v2238_v41  ;;  %v5634_v1 = vpop.f32.mrb[89].mxu1  ;;  %v2149_v37 = vrot.slane %v2148_v15, 1 }
 0x57e   :  { %v2157_v63 = vmax.f32 %v2155_v29, %v2156_v53  ;;  %v2398_v57 = vmax.f32 %v5632_v36, %v5634_v1  ;;  %v5641_v52 = vpop.f32.mrb[90].mxu1  ;;  %3700 = vrcp.f32 %v2273_v5  ;;  %v5649_v32 = vmul.f32 %v5520_v55, %v2336_v62 }
 0x57f   :  { %v2282_v60 = vadd.f32 %v2281_v40, %v2280_v44  ;;  %v2289_v22 = vadd.f32 %v2288_v39, %v2287_v7  ;;  %v5643_v61 = vpop.f32.mrb[91].mxu1  ;;  %v2150_v28 = vmax.f32 %v2148_v15, %v2149_v37  ;;  %v5656_v5 = vmul.f32 %v5527_v18, %v2336_v62 }
 0x580   :  { %v5651_v11 = vpop.eup %3684  ;;  %v2158_v46 = vrot.slane %v2157_v63, 1  ;;  %2399 = vmax.xlane.f32.xlu1 %v2398_v57  ;;  %v2401_v20 = vmax.f32 %v5641_v52, %v5643_v61  ;;  %v2376_v16 = vpack.c.bf16 %v5646_v25, %v5637_v51 }
 0x581   :  { %v5658_v6 = vpop.eup %3686  ;;  %3702 = vrcp.f32 %v2282_v60  ;;  %v2184_v56 = vsub.f32 %v5561_v26, %v2150_v28  ;;  %v2186_v43 = vsub.f32 %v5567_v14, %v2150_v28  ;;  %v2188_v4 = vsub.f32 %v5576_v38, %v2150_v28 }
 0x582   :  { %v5662_v33 = vpop.eup %3688  ;;  %v2292_v55 = vadd.f32 %v5658_v6, %v5651_v11  ;;  %2402 = vmax.xlane.f32.xlu0 %v2401_v20  ;;  %v2190_v27 = vsub.f32 %v5586_v35, %v2150_v28  ;;  %v2159_v58 = vmax.f32 %v2157_v63, %v2158_v46  ;;  %v2378_v41 = vpack.c.bf16 %v5656_v5, %v5649_v32 }
 0x583   :  { %v5669_v18 = vpop.eup %3690  ;;  %v2290_v48 = vrot.slane %v2289_v22, 1  ;;  %v2240_v19 = vmul.f32 1.442695, %v2184_v56  ;;  %v2244_v26 = vmul.f32 1.442695, %v2186_v43 }
 0x584   :  { %v5674_v23 = vpop.eup %3692  ;;  %v2293_v29 = vadd.f32 %v5662_v33, %v2292_v55  ;;  %v2248_v44 = vmul.f32 1.442695, %v2188_v4  ;;  %v2252_v38 = vmul.f32 1.442695, %v2190_v27  ;;  %v2185_v7 = vsub.f32 %v5565_v3, %v2159_v58  ;;  %v5682_v15 = vpop.f32.mrb[92].mxu1 }
 0x585   :  { %v5677_v14 = vpop.eup %3694  ;;  %v2187_v62 = vsub.f32 %v5569_v17, %v2159_v58  ;;  %v2189_v35 = vsub.f32 %v5581_v30, %v2159_v58  ;;  %3704 = vpow2.f32 %v2240_v19  ;;  %v2191_v37 = vsub.f32 %v5593_v42, %v2159_v58  ;;  %v5690_v63 = vpop.f32.mrb[93].mxu1 }
 0x586   :  { %v5684_v53 = vpop.eup %3696  ;;  %v2294_v40 = vadd.f32 %v5669_v18, %v2293_v29  ;;  %v2301_v39 = vadd.f32 %v5677_v14, %v5674_v23  ;;  %3706 = vpow2.f32 %v2244_v26  ;;  %v2242_v3 = vmul.f32 1.442695, %v2185_v7  ;;  %v5695_v55 = vpop.f32.mrb[94].mxu1 }
 0x587   :  { %v5692_v57 = vpop.eup %3698  ;;  %v2246_v17 = vmul.f32 1.442695, %v2187_v62  ;;  %v2291_v30 = vadd.f32 %v2290_v48, %v2289_v22  ;;  %3708 = vpow2.f32 %v2248_v44  ;;  %v2250_v20 = vmul.f32 1.442695, %v2189_v35  ;;  %v5699_v4 = vpop.f32.mrb[95].mxu1 }
 0x588   :  { %v3701_v60 = vpop.eup %3700  ;;  %v2295_v28 = vrot.slane %v2294_v40, 4  ;;  %v2302_v46 = vadd.f32 %v5684_v53, %v2301_v39  ;;  %3710 = vpow2.f32 %v2252_v38  ;;  %v2254_v56 = vmul.f32 1.442695, %v2191_v37 }
 0x589   :  { %v2337_v43 = vmul.f32 0.17677669, %v3701_v60  ;;  %v2404_v42 = vmax.f32 %v5682_v15, %v5690_v63  ;;  %3712 = vpow2.f32 %v2242_v3  ;;  %v2407_v22 = vmax.f32 %v5695_v55, %v5699_v4 }
 0x58a   :  { %v2296_v27 = vadd.f32 %v2295_v28, %v2294_v40  ;;  %v2303_v58 = vadd.f32 %v5692_v57, %v2302_v46  ;;  %3714 = vpow2.f32 %v2246_v17 }
 0x58b   :  { %v3703_v48 = vpop.eup %3702  ;;  %v2345_v29 = vmul.f32 %v5532_v34, %v2337_v43  ;;  %v2347_v19 = vmul.f32 %v5540_v54, %v2337_v43  ;;  %v2349_v26 = vmul.f32 %v5554_v59, %v2337_v43  ;;  %2405 = vmax.xlane.f32.xlu1 %v2404_v42  ;;  %3716 = vpow2.f32 %v2250_v20  ;;  %2408 = vmax.xlane.f32.xlu0 %v2407_v22 }
 0x58c   :  { %v2297_v44 = vrot.slane %v2296_v27, 2  ;;  %v2304_v38 = vrot.slane %v2303_v58, 4  ;;  %v2351_v7 = vmul.f32 %v5558_v0, %v2337_v43  ;;  %v5708_v62 = vpop.f32.mrb[96].mxu1  ;;  %3718 = vpow2.f32 %v2254_v56 }
 0x58d   :  { %v2377_v35 = vpack.c.bf16 %v2347_v19, %v2345_v29  ;;  %v5710_v40 = vpop.f32.mrb[97].mxu1  ;;  %v2338_v39 = vmul.f32 0.17677669, %v3703_v48  ;;  %3720 = vrcp.f32 %v2291_v30 }
 0x58e   :  { %v2298_v37 = vadd.f32 %v2297_v44, %v2296_v27  ;;  %v2305_v34 = vadd.f32 %v2304_v38, %v2303_v58  ;;  %v2379_v3 = vpack.c.bf16 %v2351_v7, %v2349_v26  ;;  %v2410_v54 = vmax.f32 %v5708_v62, %v5710_v40  ;;  %v5714_v59 = vpop.f32.mrb[98].mxu1 }
 0x58f   :  { %3083 = vmatprep.subr.bf16.mxu1 %v2377_v35  ;;  %v5716_v17 = vpop.f32.mrb[99].mxu1  ;;  %v5719_v0 = vmul.f32 %v5578_v47, %v2338_v39  ;;  %v5722_v60 = vmul.f32 %v5583_v12, %v2338_v39  ;;  %v5725_v28 = vmul.f32 %v5588_v31, %v2338_v39  ;;  %v5727_v46 = vpop.eup %3704  ;;  %v5735_v47 = vmul.f32 %v5595_v13, %v2338_v39 }
 0x590   :  { %v2299_v20 = vrot.slane %v2298_v37, 1  ;;  %v2306_v56 = vrot.slane %v2305_v34, 2  ;;  %3084 = vmatpush1.bf16.msra.mxu1 %v2376_v16  ;;  %2411 = vmax.xlane.f32.xlu1 %v2410_v54  ;;  %v2413_v30 = vmax.f32 %v5714_v59, %v5716_v17  ;;  %v5737_v12 = vpop.eup %3706 }
 0x591   :  { %3085 = vmatprep.subr.bf16.mxu1 %v2379_v3  ;;  %v2380_v31 = vpack.c.bf16 %v5722_v60, %v5719_v0  ;;  %v5741_v43 = vpop.eup %3708  ;;  %v2310_v51 = vadd.f32 %v5737_v12, %v5727_v46  ;;  %v2382_v25 = vpack.c.bf16 %v5735_v47, %v5725_v28 }
 0x592   :  { %v2300_v42 = vadd.f32 %v2299_v20, %v2298_v37  ;;  %v2307_v27 = vadd.f32 %v2306_v56, %v2305_v34  ;;  %2414 = vmax.xlane.f32.xlu0 %v2413_v30  ;;  %v5747_v16 = vpop.eup %3710 }
 0x593   :  { %v5749_v13 = vpop.eup %3712  ;;  %v2311_v58 = vadd.f32 %v5741_v43, %v2310_v51 }
 0x594   :  { %3086 = vmatpush1.bf16.msra.mxu1 %v2378_v41  ;;  %v5755_v22 = vpop.f32.mrb[100].mxu1  ;;  %v2308_v48 = vrot.slane %v2307_v27, 1  ;;  %3722 = vrcp.f32 %v2300_v42  ;;  %v5757_v29 = vpop.eup %3714 }
 0x595   :  { %v5759_v19 = vpop.f32.mrb[101].mxu1  ;;  %v5761_v26 = vpop.eup %3716  ;;  %v2312_v44 = vadd.f32 %v5747_v16, %v2311_v58  ;;  %v2319_v38 = vadd.f32 %v5757_v29, %v5749_v13 }
 0x596   :  { %v2416_v7 = vmax.f32 %v5755_v22, %v5759_v19  ;;  %v5768_v32 = vpop.f32.mrb[102].mxu1  ;;  %v2309_v5 = vadd.f32 %v2308_v48, %v2307_v27  ;;  %v5770_v41 = vpop.eup %3718 }
 0x597   :  { %v5772_v35 = vpop.f32.mrb[103].mxu1  ;;  %v2313_v39 = vrot.slane %v2312_v44, 4  ;;  %v2320_v37 = vadd.f32 %v5761_v26, %v2319_v38  ;;  %v3721_v3 = vpop.eup %3720 }
 0x598   :  { %2417 = vmax.xlane.f32.xlu1 %v2416_v7  ;;  %v2419_v34 = vmax.f32 %v5768_v32, %v5772_v35  ;;  %3724 = vrcp.f32 %v2309_v5  ;;  %v2339_v60 = vmul.f32 0.17677669, %v3721_v3 }
 0x599   :  { %v2314_v54 = vadd.f32 %v2313_v39, %v2312_v44  ;;  %v2321_v0 = vadd.f32 %v5770_v41, %v2320_v37 }
 0x59a   :  { %2420 = vmax.xlane.f32.xlu0 %v2419_v34  ;;  %v2353_v30 = vmul.f32 %v5598_v49, %v2339_v60  ;;  %v2355_v42 = vmul.f32 %v5601_v21, %v2339_v60  ;;  %v2357_v51 = vmul.f32 %v5612_v50, %v2339_v60  ;;  %v2359_v58 = vmul.f32 %v5619_v45, %v2339_v60 }
 0x59b   :  { %v2315_v20 = vrot.slane %v2314_v54, 2  ;;  %v2322_v56 = vrot.slane %v2321_v0, 4 }
 0x59c   :  { %v5780_v27 = vpop.f32.mrb[104].mxu1  ;;  %v2381_v5 = vpack.c.bf16 %v2355_v42, %v2353_v30  ;;  %v2383_v49 = vpack.c.bf16 %v2359_v58, %v2357_v51 }
 0x59d   :  { %v5784_v48 = vpop.f32.mrb[105].mxu1  ;;  %v2316_v44 = vadd.f32 %v2315_v20, %v2314_v54  ;;  %v2323_v7 = vadd.f32 %v2322_v56, %v2321_v0 }
 0x59e   :  { %v3723_v38 = vpop.eup %3722  ;;  %v2422_v39 = vmax.f32 %v5780_v27, %v5784_v48  ;;  %v5788_v37 = vpop.f32.mrb[106].mxu1  ;;  %3087 = vmatprep.subr.bf16.mxu1 %v2381_v5 }
 0x59f   :  { %v5790_v34 = vpop.f32.mrb[107].mxu1  ;;  %v2340_v21 = vmul.f32 0.17677669, %v3723_v38  ;;  %v2317_v3 = vrot.slane %v2316_v44, 1  ;;  %v2324_v8 = vrot.slane %v2323_v7, 2  ;;  %3088 = vmatpush1.bf16.msra.mxu1 %v2380_v31 }
 0x5a0   :  { %2423 = vmax.xlane.f32.xlu1 %v2422_v39  ;;  %v2425_v50 = vmax.f32 %v5788_v37, %v5790_v34  ;;  %3089 = vmatprep.subr.bf16.mxu1 %v2383_v49 }
 0x5a1   :  { %v2360_v45 = vmul.f32 %v5651_v11, %v2340_v21  ;;  %v2362_v54 = vmul.f32 %v5658_v6, %v2340_v21  ;;  %v2364_v0 = vmul.f32 %v5662_v33, %v2340_v21  ;;  %v2366_v60 = vmul.f32 %v5669_v18, %v2340_v21 }
 0x5a2   :  { %v3725_v20 = vpop.eup %3724  ;;  %v2318_v56 = vadd.f32 %v2317_v3, %v2316_v44  ;;  %v2325_v30 = vadd.f32 %v2324_v8, %v2323_v7  ;;  %2426 = vmax.xlane.f32.xlu0 %v2425_v50 }
 0x5a3   :  { %v2341_v42 = vmul.f32 0.17677669, %v3725_v20  ;;  %v2384_v51 = vpack.c.bf16 %v2362_v54, %v2360_v45  ;;  %v2386_v58 = vpack.c.bf16 %v2366_v60, %v2364_v0  ;;  %3090 = vmatpush1.bf16.msra.mxu1 %v2382_v25 }
 0x5a4   :  { %v5798_v38 = vpop.f32.mrb[108].mxu1  ;;  %v2326_v5 = vrot.slane %v2325_v30, 1  ;;  %3726 = vrcp.f32 %v2318_v56 }
 0x5a5   :  { %v2361_v11 = vmul.f32 %v5674_v23, %v2341_v42  ;;  %v2363_v6 = vmul.f32 %v5677_v14, %v2341_v42  ;;  %v2365_v33 = vmul.f32 %v5684_v53, %v2341_v42  ;;  %v2367_v8 = vmul.f32 %v5692_v57, %v2341_v42  ;;  %v5807_v18 = vpop.f32.mrb[109].mxu1 }
 0x5a6   :  { %v2428_v31 = vmax.f32 %v5798_v38, %v5807_v18  ;;  %v5811_v44 = vpop.f32.mrb[110].mxu1  ;;  %v2327_v7 = vadd.f32 %v2326_v5, %v2325_v30 }
 0x5a7   :  { %v2385_v39 = vpack.c.bf16 %v2363_v6, %v2361_v11  ;;  %v2387_v49 = vpack.c.bf16 %v2367_v8, %v2365_v33  ;;  %v5813_v28 = vpop.f32.mrb[111].mxu1 }
 0x5a8   :  { %2429 = vmax.xlane.f32.xlu1 %v2428_v31  ;;  %v2431_v23 = vmax.f32 %v5811_v44, %v5813_v28  ;;  %3728 = vrcp.f32 %v2327_v7 }
 0x5a9   :  { %3091 = vmatprep.subr.bf16.mxu1 %v2385_v39 }
 0x5aa   :  { %3092 = vmatpush1.bf16.msra.mxu1 %v2384_v51  ;;  %2432 = vmax.xlane.f32.xlu0 %v2431_v23 }
 0x5ab   :  { %3093 = vmatprep.subr.bf16.mxu1 %v2387_v49 }
 0x5ac   :  { %v5817_v14 = vpop.f32.mrb[112].mxu1 }
 0x5ad   :  { %v5819_v53 = vpop.f32.mrb[113].mxu1 }
 0x5ae   :  { %v3727_v57 = vpop.eup %3726  ;;  %3094 = vmatpush1.bf16.msra.mxu1 %v2386_v58  ;;  %v2434_v47 = vmax.f32 %v5817_v14, %v5819_v53  ;;  %v5823_v25 = vpop.f32.mrb[114].mxu1 }
 0x5af   :  { %v5825_v21 = vpop.f32.mrb[115].mxu1  ;;  %v2342_v3 = vmul.f32 0.17677669, %v3727_v57 }
 0x5b0   :  { %2435 = vmax.xlane.f32.xlu1 %v2434_v47  ;;  %v2437_v50 = vmax.f32 %v5823_v25, %v5825_v21 }
 0x5b1   :  { %v2368_v45 = vmul.f32 %v5727_v46, %v2342_v3  ;;  %v2370_v54 = vmul.f32 %v5737_v12, %v2342_v3  ;;  %v2372_v0 = vmul.f32 %v5741_v43, %v2342_v3  ;;  %v2374_v60 = vmul.f32 %v5747_v16, %v2342_v3 }
 0x5b2   :  { %v3729_v20 = vpop.eup %3728  ;;  %2438 = vmax.xlane.f32.xlu0 %v2437_v50 }
 0x5b3   :  { %v2343_v56 = vmul.f32 0.17677669, %v3729_v20  ;;  %v2388_v30 = vpack.c.bf16 %v2370_v54, %v2368_v45  ;;  %v2390_v42 = vpack.c.bf16 %v2374_v60, %v2372_v0  ;;  %v3877_v60 = vld [vmem:[%s6517_s3] sm:$0xff] }
 0x5b4   :  { %v5833_v51 = vpop.f32.mrb[116].mxu1 }
 0x5b5   :  { %v2369_v58 = vmul.f32 %v5749_v13, %v2343_v56  ;;  %v2371_v5 = vmul.f32 %v5757_v29, %v2343_v56  ;;  %v2373_v11 = vmul.f32 %v5761_v26, %v2343_v56  ;;  %v2375_v46 = vmul.f32 %v5770_v41, %v2343_v56  ;;  %v1995_v12 = vpop.f32.mrb[117].mxu1 }
 0x5b6   :  { %v5839_v6 = vpop.f32.mrb[118].mxu1 }
 0x5b7   :  { %v2389_v43 = vpack.c.bf16 %v2371_v5, %v2369_v58  ;;  %v2391_v16 = vpack.c.bf16 %v2375_v46, %v2373_v11  ;;  %v1999_v8 = vpop.f32.mrb[119].mxu1 }
 0x5b8   :  { %v2073_v31 = vpack.c.bf16 %v1999_v8, %v1995_v12 }
 0x5b9   :  { %3095 = vmatprep.subr.bf16.mxu1 %v2389_v43 }
 0x5ba   :  { %3096 = vmatpush1.bf16.msra.mxu1 %v2388_v30  ;;  %2921 = vmatprep.subr.bf16.mxu0 %v2073_v31 }
 0x5bb   :  { %3097 = vmatprep.subr.bf16.mxu1 %v2391_v16 }
 0x5bc   :  { %v5843_v13 = vpop.f32.mrb[120].mxu1 }
 0x5bd   :  { %v5845_v29 = vpop.f32.mrb[121].mxu1 }
 0x5be   :  { %3098 = vmatpush1.bf16.msra.mxu1 %v2390_v42  ;;  %v5847_v26 = vpop.f32.mrb[122].mxu1 }
 0x5bf   :  { %v5851_v7 = vpop.f32.mrb[123].mxu1 }
 0x5c4   :  { %v5855_v49 = vpop.f32.mrb[124].mxu1 }
 0x5c5   :  { %v5857_v23 = vpop.f32.mrb[125].mxu1 }
 0x5c6   :  { %v5859_v57 = vpop.f32.mrb[126].mxu1 }
 0x5c7   :  { %v5863_v3 = vpop.f32.mrb[127].mxu1 }
 0x5cc   :  { %v5867_v45 = vpop.f32.mrb[128].mxu1 }
 0x5cd   :  { %6840 = vst [vmem:[#allocation39_spill] sm:$0xff] %v5867_v45  ;;  %v5869_v54 = vpop.f32.mrb[129].mxu1 }
 0x5ce   :  { %v5871_v0 = vpop.f32.mrb[130].mxu1 }
 0x5cf   :  { %6841 = vst [vmem:[#allocation32_spill] sm:$0xff] %v5871_v0  ;;  %v5875_v20 = vpop.f32.mrb[131].mxu1  ;;  %v6874_v0 = vld [vmem:[#allocation60_spill] sm:$0xff] }
 0x5d4   :  { %v5879_v30 = vpop.f32.mrb[132].mxu1 }
 0x5d5   :  { %6842 = vst [vmem:[#allocation31_spill] sm:$0xff] %v5879_v30  ;;  %v5881_v42 = vpop.f32.mrb[133].mxu1 }
 0x5d6   :  { %6843 = vst [vmem:[#allocation34_spill] sm:$0xff] %v5881_v42  ;;  %v5883_v58 = vpop.f32.mrb[134].mxu1 }
 0x5d7   :  { %6844 = vst [vmem:[#allocation35_spill] sm:$0xff] %v5883_v58  ;;  %v5887_v11 = vpop.f32.mrb[135].mxu1 }
 0x5d8   :  { %6845 = vst [vmem:[#allocation36_spill] sm:$0xff] %v5887_v11 }
 0x5dc   :  { %v5891_v12 = vpop.f32.mrb[136].mxu1 }
 0x5dd   :  { %6846 = vst [vmem:[#allocation64_spill] sm:$0xff] %v5891_v12  ;;  %v5893_v43 = vpop.f32.mrb[137].mxu1 }
 0x5de   :  { %6847 = vst [vmem:[#allocation63_spill] sm:$0xff] %v5893_v43  ;;  %v5895_v16 = vpop.f32.mrb[138].mxu1 }
 0x5df   :  { %6848 = vst [vmem:[#allocation40_spill] sm:$0xff] %v5895_v16  ;;  %v5899_v31 = vpop.f32.mrb[139].mxu1  ;;  %v6861_v16 = vld [vmem:[#allocation44_spill] sm:$0xff] }
 0x5e0   :  { %6849 = vst [vmem:[#allocation66_spill] sm:$0xff] %v5899_v31 }
 0x5e4   :  { %v5903_v5 = vpop.f32.mrb[140].mxu1 }
 0x5e5   :  { %6850 = vst [vmem:[#allocation71_spill] sm:$0xff] %v5903_v5  ;;  %v5905_v56 = vpop.f32.mrb[141].mxu1 }
 0x5e6   :  { %6851 = vst [vmem:[#allocation67_spill] sm:$0xff] %v5905_v56  ;;  %v5907_v47 = vpop.f32.mrb[142].mxu1 }
 0x5e7   :  { %6852 = vst [vmem:[#allocation68_spill] sm:$0xff] %v5907_v47  ;;  %v5911_v50 = vpop.f32.mrb[143].mxu1 }
 0x5e8   :  { %6853 = vst [vmem:[#allocation38_spill] sm:$0xff] %v5911_v50  ;;  %v6860_v50 = vld [vmem:[#allocation43_spill] sm:$0xff] }
 0x5ec   :  { %v5915_v8 = vpop.f32.mrb[144].mxu1 }
 0x5ed   :  { %6854 = vst [vmem:[#allocation37_spill] sm:$0xff] %v5915_v8  ;;  %v5917_v39 = vpop.f32.mrb[145].mxu1 }
 0x5ee   :  { %6855 = vst [vmem:[#allocation65_spill] sm:$0xff] %v5917_v39  ;;  %v5919_v33 = vpop.f32.mrb[146].mxu1 }
 0x5ef   :  { %6856 = vst [vmem:[#allocation73_spill] sm:$0xff] %v5919_v33  ;;  %v5923_v12 = vpop.f32.mrb[147].mxu1 }
 0x5f0   :  { %6857 = vst [vmem:[#allocation69_spill] sm:$0xff] %v5923_v12 }
 0x602   :  { %v5927_v46 = vpop.f32.mrb[96].mxu0 }
 0x603   :  { %6858 = vst [vmem:[#allocation72_spill] sm:$0xff] %v5927_v46  ;;  %v5929_v5 = vpop.f32.mrb[97].mxu0  ;;  %v6862_v46 = vld [vmem:[#allocation46_spill] sm:$0xff] }
 0x604   :  { %6859 = vst [vmem:[#allocation75_spill] sm:$0xff] %v5929_v5  ;;  %v1721_v47 = vpop.f32.mrb[98].mxu0 }
 0x605   :  { %v1722_v41 = vpop.f32.mrb[99].mxu0 }
 0x607   :  { %v2394_v56 = vpop.xlane.xlu1 %2393 }
 0x608   :  { %v2440_v43 = vmax.f32 %v2394_v56, %v6860_v50 }
 0x609   :  { %v2397_v31 = vpop.xlane.xlu0 %2396 }
 0x60a   :  { %v2456_v30 = vsub.f32 %v5617_v24, %v2440_v43  ;;  %v2457_v58 = vsub.f32 %v5622_v2, %v2440_v43  ;;  %v2552_v8 = vsub.f32 %v3877_v60, %v2440_v43  ;;  %v2441_v33 = vmax.f32 %v2397_v31, %v6861_v16  ;;  %v3878_v24 = vld [vmem:[%s6517_s3 + $0x8] sm:$0xff] }
 0x60c   :  { %v2488_v39 = vmul.f32 1.442695, %v2456_v30  ;;  %v2490_v12 = vmul.f32 1.442695, %v2457_v58  ;;  %v2568_v5 = vmul.f32 1.442695, %v2552_v8  ;;  %v2458_v41 = vsub.f32 %v5624_v9, %v2441_v33 }
 0x60d   :  { %v2459_v47 = vsub.f32 %v5628_v10, %v2441_v33  ;;  %v2553_v50 = vsub.f32 %v3878_v24, %v2441_v33  ;;  %v2400_v2 = vpop.xlane.xlu1 %2399  ;;  %v6863_v10 = vld [vmem:[#allocation47_spill] sm:$0xff] }
 0x60e   :  { %3730 = vpow2.f32 %v2488_v39  ;;  %v2492_v56 = vmul.f32 1.442695, %v2458_v41  ;;  %v2442_v42 = vmax.f32 %v2400_v2, %v6862_v46  ;;  %v3879_v39 = vld [vmem:[%s6517_s3 + $0x10] sm:$0xff]  ;;  %v3880_v41 = vld [vmem:[%s6517_s3 + $0x18] sm:$0xff] }
 0x60f   :  { %3732 = vpow2.f32 %v2490_v12  ;;  %v2494_v60 = vmul.f32 1.442695, %v2459_v47  ;;  %v2570_v43 = vmul.f32 1.442695, %v2553_v50  ;;  %v2403_v30 = vpop.xlane.xlu0 %2402 }
 0x610   :  { %3734 = vpow2.f32 %v2568_v5  ;;  %v2460_v58 = vsub.f32 %v5632_v36, %v2442_v42  ;;  %v2461_v9 = vsub.f32 %v5634_v1, %v2442_v42  ;;  %v2443_v16 = vmax.f32 %v2403_v30, %v6863_v10 }
 0x611   :  { %3736 = vpow2.f32 %v2492_v56  ;;  %v2554_v46 = vsub.f32 %v3879_v39, %v2442_v42 }
 0x612   :  { %3738 = vpow2.f32 %v2494_v60  ;;  %v2496_v8 = vmul.f32 1.442695, %v2460_v58  ;;  %v2498_v33 = vmul.f32 1.442695, %v2461_v9  ;;  %v2462_v12 = vsub.f32 %v5641_v52, %v2443_v16  ;;  %v6864_v52 = vld [vmem:[#allocation50_spill] sm:$0xff] }
 0x613   :  { %3740 = vpow2.f32 %v2570_v43  ;;  %v2463_v5 = vsub.f32 %v5643_v61, %v2443_v16  ;;  %v2572_v31 = vmul.f32 1.442695, %v2554_v46  ;;  %v2555_v47 = vsub.f32 %v3880_v41, %v2443_v16  ;;  %v6865_v43 = vld [vmem:[#allocation51_spill] sm:$0xff] }
 0x614   :  { %3742 = vpow2.f32 %v2496_v8  ;;  %v2500_v36 = vmul.f32 1.442695, %v2462_v12  ;;  %v3881_v16 = vld [vmem:[%s6517_s3 + $0x20] sm:$0xff] }
 0x615   :  { %3744 = vpow2.f32 %v2498_v33  ;;  %v2502_v1 = vmul.f32 1.442695, %v2463_v5  ;;  %v2574_v60 = vmul.f32 1.442695, %v2555_v47 }
 0x616   :  { %3746 = vpow2.f32 %v2500_v36 }
 0x617   :  { %3748 = vpow2.f32 %v2502_v1 }
 0x618   :  { %v5955_v24 = vpop.eup %3730  ;;  %v2406_v42 = vpop.xlane.xlu1 %2405  ;;  %3750 = vpow2.f32 %v2572_v31 }
 0x619   :  { %v5957_v50 = vpop.eup %3732  ;;  %v2444_v2 = vmax.f32 %v2406_v42, %v6864_v52  ;;  %v2409_v61 = vpop.xlane.xlu0 %2408  ;;  %3752 = vpow2.f32 %v2574_v60  ;;  %v6866_v42 = vld [vmem:[#allocation52_spill] sm:$0xff] }
 0x61a   :  { %v5960_v56 = vpop.eup %3734  ;;  %v2445_v30 = vmax.f32 %v2409_v61, %v6865_v43 }
 0x61b   :  { %v5963_v58 = vpop.eup %3736  ;;  %v2464_v9 = vsub.f32 %v5682_v15, %v2444_v2  ;;  %v2465_v10 = vsub.f32 %v5690_v63, %v2444_v2  ;;  %v2556_v8 = vsub.f32 %v3881_v16, %v2444_v2  ;;  %v2648_v33 = vsel %vm87_vm2, %v5960_v56, 0.0  ;;  %v3882_v15 = vld [vmem:[%s6517_s3 + $0x28] sm:$0xff] }
 0x61c   :  { %v5972_v39 = vpop.eup %3738  ;;  %v2466_v46 = vsub.f32 %v5695_v55, %v2445_v30  ;;  %v2467_v12 = vsub.f32 %v5699_v4, %v2445_v30  ;;  %v2557_v5 = vsub.f32 %v3882_v15, %v2445_v30  ;;  %2649 = vadd.xlane.f32.xlu1 %v2648_v33  ;;  %v2600_v55 = vadd.f32 %v5957_v50, %v5955_v24 }
 0x61d   :  { %v5979_v63 = vpop.eup %3740  ;;  %v2504_v36 = vmul.f32 1.442695, %v2464_v9  ;;  %v2576_v1 = vmul.f32 1.442695, %v2556_v8  ;;  %v2412_v31 = vpop.xlane.xlu1 %2411  ;;  %v2506_v47 = vmul.f32 1.442695, %v2465_v10 }
 0x61e   :  { %v5981_v41 = vpop.eup %3742  ;;  %v2446_v4 = vmax.f32 %v2412_v31, %v6866_v42  ;;  %v2508_v2 = vmul.f32 1.442695, %v2466_v46  ;;  %v2510_v61 = vmul.f32 1.442695, %v2467_v12  ;;  %v2651_v43 = vsel %vm87_vm2, %v5979_v63, 0.0  ;;  %v3883_v10 = vld [vmem:[%s6517_s3 + $0x30] sm:$0xff] }
 0x61f   :  { %v5986_v52 = vpop.eup %3744  ;;  %v2415_v30 = vpop.xlane.xlu0 %2414  ;;  %3754 = vpow2.f32 %v2504_v36  ;;  %v2578_v9 = vmul.f32 1.442695, %v2557_v5  ;;  %2652 = vadd.xlane.f32.xlu0 %v2651_v43  ;;  %v6867_v46 = vld [vmem:[#allocation53_spill] sm:$0xff]  ;;  %v3884_v31 = vld [vmem:[%s6517_s3 + $0x38] sm:$0xff] }
 0x620   :  { %2601 = vadd.xlane.f32.xlu1 %v2600_v55  ;;  %v2468_v60 = vsub.f32 %v5708_v62, %v2446_v4  ;;  %v2558_v16 = vsub.f32 %v3883_v10, %v2446_v4  ;;  %v5994_v8 = vpop.eup %3746  ;;  %3756 = vpow2.f32 %v2576_v1  ;;  %v2469_v33 = vsub.f32 %v5710_v40, %v2446_v4  ;;  %v6868_v10 = vld [vmem:[#allocation54_spill] sm:$0xff] }
 0x621   :  { %v2447_v12 = vmax.f32 %v2415_v30, %v6867_v46  ;;  %v2606_v15 = vadd.f32 %v5986_v52, %v5981_v41  ;;  %v6000_v5 = vpop.eup %3748  ;;  %3758 = vpow2.f32 %v2506_v47  ;;  %v2603_v62 = vadd.f32 %v5972_v39, %v5963_v58 }
 0x622   :  { %3760 = vpow2.f32 %v2508_v2  ;;  %v2580_v36 = vmul.f32 1.442695, %v2558_v16  ;;  %v6007_v55 = vpop.eup %3750  ;;  %v2512_v40 = vmul.f32 1.442695, %v2468_v60  ;;  %v2609_v47 = vadd.f32 %v6000_v5, %v5994_v8 }
 0x623   :  { %v2559_v1 = vsub.f32 %v3884_v31, %v2447_v12  ;;  %3762 = vpow2.f32 %v2578_v9  ;;  %2604 = vadd.xlane.f32.xlu0 %v2603_v62  ;;  %v2470_v42 = vsub.f32 %v5714_v59, %v2447_v12  ;;  %v2514_v4 = vmul.f32 1.442695, %v2469_v33  ;;  %v6016_v46 = vpop.eup %3752 }
 0x624   :  { %2607 = vadd.xlane.f32.xlu1 %v2606_v15  ;;  %3764 = vpow2.f32 %v2510_v61  ;;  %v2471_v2 = vsub.f32 %v5716_v17, %v2447_v12  ;;  %v2654_v9 = vsel %vm87_vm2, %v6007_v55, 0.0  ;;  %v3885_v17 = vld [vmem:[%s6517_s3 + $0x40] sm:$0xff] }
 0x625   :  { %v2418_v43 = vpop.xlane.xlu1 %2417  ;;  %v2582_v30 = vmul.f32 1.442695, %v2559_v1  ;;  %3766 = vpow2.f32 %v2580_v36  ;;  %v2516_v59 = vmul.f32 1.442695, %v2470_v42  ;;  %v6869_v12 = vld [vmem:[#allocation55_spill] sm:$0xff]  ;;  %v3886_v42 = vld [vmem:[%s6517_s3 + $0x48] sm:$0xff] }
 0x626   :  { %v2448_v16 = vmax.f32 %v2418_v43, %v6868_v10  ;;  %3768 = vpow2.f32 %v2512_v40  ;;  %v2518_v33 = vmul.f32 1.442695, %v2471_v2 }
 0x627   :  { %v2421_v60 = vpop.xlane.xlu0 %2420  ;;  %2610 = vadd.xlane.f32.xlu0 %v2609_v47  ;;  %3770 = vpow2.f32 %v2514_v4  ;;  %v2657_v4 = vsel %vm87_vm2, %v6016_v46, 0.0 }
 0x628   :  { %v2472_v15 = vsub.f32 %v5755_v22, %v2448_v16  ;;  %v2560_v61 = vsub.f32 %v3885_v17, %v2448_v16  ;;  %2655 = vadd.xlane.f32.xlu1 %v2654_v9  ;;  %v2449_v62 = vmax.f32 %v2421_v60, %v6869_v12  ;;  %3772 = vpow2.f32 %v2582_v30  ;;  %v6870_v17 = vld [vmem:[#allocation56_spill] sm:$0xff] }
 0x629   :  { %v6023_v36 = vpop.eup %3754  ;;  %v2473_v31 = vsub.f32 %v5759_v19, %v2448_v16  ;;  %3774 = vpow2.f32 %v2516_v59 }
 0x62a   :  { %v2584_v1 = vmul.f32 1.442695, %v2560_v61  ;;  %v6026_v40 = vpop.eup %3756  ;;  %v2474_v22 = vsub.f32 %v5768_v32, %v2449_v62  ;;  %v2561_v47 = vsub.f32 %v3886_v42, %v2449_v62  ;;  %v2520_v43 = vmul.f32 1.442695, %v2472_v15 }
 0x62b   :  { %v6034_v2 = vpop.eup %3758  ;;  %v2475_v30 = vsub.f32 %v5772_v35, %v2449_v62  ;;  %2658 = vadd.xlane.f32.xlu0 %v2657_v4  ;;  %v2660_v19 = vsel %vm87_vm2, %v6026_v40, 0.0  ;;  %3776 = vpow2.f32 %v2518_v33  ;;  %v2522_v60 = vmul.f32 1.442695, %v2473_v31  ;;  %v3887_v31 = vld [vmem:[%s6517_s3 + $0x50] sm:$0xff] }
 0x62c   :  { %v6039_v10 = vpop.eup %3760  ;;  %v2586_v32 = vmul.f32 1.442695, %v2561_v47  ;;  %2661 = vadd.xlane.f32.xlu1 %v2660_v19  ;;  %3778 = vpow2.f32 %v2584_v1  ;;  %v2524_v15 = vmul.f32 1.442695, %v2474_v22  ;;  %v2612_v12 = vadd.f32 %v6034_v2, %v6023_v36  ;;  %v6871_v22 = vld [vmem:[#allocation57_spill] sm:$0xff] }
 0x62d   :  { %v2424_v16 = vpop.xlane.xlu1 %2423  ;;  %v6041_v9 = vpop.eup %3762  ;;  %3780 = vpow2.f32 %v2520_v43  ;;  %v2526_v33 = vmul.f32 1.442695, %v2475_v30 }
 0x62e   :  { %v2450_v61 = vmax.f32 %v2424_v16, %v6870_v17  ;;  %v6044_v59 = vpop.eup %3764  ;;  %v2663_v35 = vsel %vm87_vm2, %v6041_v9, 0.0  ;;  %3782 = vpow2.f32 %v2586_v32  ;;  %v3888_v32 = vld [vmem:[%s6517_s3 + $0x58] sm:$0xff] }
 0x62f   :  { %v2427_v62 = vpop.xlane.xlu0 %2426  ;;  %2664 = vadd.xlane.f32.xlu0 %v2663_v35  ;;  %v6054_v47 = vpop.eup %3766  ;;  %3784 = vpow2.f32 %v2522_v60 }
 0x630   :  { %v2476_v42 = vsub.f32 %v5780_v27, %v2450_v61  ;;  %v2562_v1 = vsub.f32 %v3887_v31, %v2450_v61  ;;  %2613 = vadd.xlane.f32.xlu1 %v2612_v12  ;;  %v2451_v4 = vmax.f32 %v2427_v62, %v6871_v22  ;;  %v6057_v19 = vpop.eup %3768  ;;  %v2477_v43 = vsub.f32 %v5784_v48, %v2450_v61  ;;  %v6872_v22 = vld [vmem:[#allocation58_spill] sm:$0xff] }
 0x631   :  { %v2615_v27 = vadd.f32 %v6044_v59, %v6039_v10  ;;  %v6062_v16 = vpop.eup %3770  ;;  %3786 = vpow2.f32 %v2524_v15  ;;  %v2666_v12 = vsel %vm87_vm2, %v6054_v47, 0.0 }
 0x632   :  { %v2588_v30 = vmul.f32 1.442695, %v2562_v1  ;;  %v2528_v17 = vmul.f32 1.442695, %v2476_v42  ;;  %v2563_v35 = vsub.f32 %v3888_v32, %v2451_v4  ;;  %v6069_v62 = vpop.eup %3772  ;;  %3788 = vpow2.f32 %v2526_v33 }
 0x633   :  { %v2478_v48 = vsub.f32 %v5788_v37, %v2451_v4  ;;  %2616 = vadd.xlane.f32.xlu0 %v2615_v27  ;;  %v2479_v60 = vsub.f32 %v5790_v34, %v2451_v4  ;;  %v6073_v42 = vpop.eup %3774  ;;  %v2530_v31 = vmul.f32 1.442695, %v2477_v43  ;;  %v2669_v1 = vsel %vm87_vm2, %v6069_v62, 0.0 }
 0x634   :  { %v2590_v61 = vmul.f32 1.442695, %v2563_v35  ;;  %2667 = vadd.xlane.f32.xlu1 %v2666_v12  ;;  %3790 = vpow2.f32 %v2588_v30  ;;  %v2618_v37 = vadd.f32 %v6062_v16, %v6057_v19  ;;  %v3889_v30 = vld [vmem:[%s6517_s3 + $0x60] sm:$0xff] }
 0x635   :  { %v2430_v15 = vpop.xlane.xlu1 %2429  ;;  %v6078_v11 = vpop.eup %3776  ;;  %3792 = vpow2.f32 %v2528_v17  ;;  %v2532_v4 = vmul.f32 1.442695, %v2478_v48  ;;  %v2534_v12 = vmul.f32 1.442695, %v2479_v60  ;;  %v6873_v17 = vld [vmem:[#allocation59_spill] sm:$0xff] }
 0x636   :  { %v2452_v32 = vmax.f32 %v2430_v15, %v6872_v22  ;;  %v6082_v34 = vpop.eup %3778  ;;  %3794 = vpow2.f32 %v2590_v61  ;;  %v2621_v48 = vadd.f32 %v6078_v11, %v6073_v42  ;;  %v3890_v61 = vld [vmem:[%s6517_s3 + $0x68] sm:$0xff] }
 0x637   :  { %v2433_v33 = vpop.xlane.xlu0 %2432  ;;  %2670 = vadd.xlane.f32.xlu0 %v2669_v1  ;;  %v6090_v22 = vpop.eup %3780  ;;  %3796 = vpow2.f32 %v2530_v31 }
 0x638   :  { %v2480_v27 = vsub.f32 %v5798_v38, %v2452_v32  ;;  %v2481_v43 = vsub.f32 %v5807_v18, %v2452_v32  ;;  %v2564_v35 = vsub.f32 %v3889_v30, %v2452_v32  ;;  %2619 = vadd.xlane.f32.xlu1 %v2618_v37  ;;  %v2453_v15 = vmax.f32 %v2433_v33, %v6873_v17  ;;  %v6096_v18 = vpop.eup %3782 }
 0x639   :  { %v2672_v38 = vsel %vm87_vm2, %v6082_v34, 0.0  ;;  %v6103_v31 = vpop.eup %3784  ;;  %3798 = vpow2.f32 %v2532_v4 }
 0x63a   :  { %v2592_v45 = vmul.f32 1.442695, %v2564_v35  ;;  %v2536_v1 = vmul.f32 1.442695, %v2480_v27  ;;  %v2482_v32 = vsub.f32 %v5811_v44, %v2453_v15  ;;  %v2483_v60 = vsub.f32 %v5813_v28, %v2453_v15 }
 0x63b   :  { %v2565_v37 = vsub.f32 %v3890_v61, %v2453_v15  ;;  %v2538_v33 = vmul.f32 1.442695, %v2481_v43  ;;  %2622 = vadd.xlane.f32.xlu0 %v2621_v48  ;;  %v6105_v30 = vpop.eup %3786  ;;  %3800 = vpow2.f32 %v2534_v12  ;;  %v2675_v44 = vsel %vm87_vm2, %v6096_v18, 0.0 }
 0x63c   :  { %2673 = vadd.xlane.f32.xlu1 %v2672_v38  ;;  %v6109_v28 = vpop.eup %3788  ;;  %3802 = vpow2.f32 %v2592_v45  ;;  %v2540_v17 = vmul.f32 1.442695, %v2482_v32  ;;  %v2542_v61 = vmul.f32 1.442695, %v2483_v60  ;;  %v2624_v4 = vadd.f32 %v6103_v31, %v6090_v22 }
 0x63d   :  { %v2594_v35 = vmul.f32 1.442695, %v2565_v37  ;;  %v2436_v27 = vpop.xlane.xlu1 %2435  ;;  %3804 = vpow2.f32 %v2536_v1  ;;  %v2627_v45 = vadd.f32 %v6109_v28, %v6105_v30 }
 0x63e   :  { %v2454_v15 = vmax.f32 %v2436_v27, %v6874_v0  ;;  %v6114_v48 = vpop.eup %3790  ;;  %3806 = vpow2.f32 %v2538_v33  ;;  %v6875_v0 = vld [vmem:[#allocation61_spill] sm:$0xff] }
 0x63f   :  { %v2439_v43 = vpop.xlane.xlu0 %2438  ;;  %2676 = vadd.xlane.f32.xlu0 %v2675_v44  ;;  %v6118_v37 = vpop.eup %3792  ;;  %3808 = vpow2.f32 %v2594_v35  ;;  %v2678_v33 = vsel %vm87_vm2, %v6114_v48, 0.0 }
 0x640   :  { %v2484_v12 = vsub.f32 %v5817_v14, %v2454_v15  ;;  %v2485_v38 = vsub.f32 %v5819_v53, %v2454_v15  ;;  %2625 = vadd.xlane.f32.xlu1 %v2624_v4  ;;  %v2455_v1 = vmax.f32 %v2439_v43, %v6875_v0  ;;  %3810 = vpow2.f32 %v2540_v17  ;;  %v6125_v44 = vpop.eup %3794  ;;  %v3891_v14 = vld [vmem:[%s6517_s3 + $0x70] sm:$0xff] }
 0x641   :  { %3812 = vpow2.f32 %v2542_v61  ;;  %v2566_v53 = vsub.f32 %v3891_v14, %v2454_v15  ;;  %v6132_v4 = vpop.eup %3796  ;;  %v2681_v61 = vsel %vm87_vm2, %v6125_v44, 0.0  ;;  %v3892_v15 = vld [vmem:[%s6517_s3 + $0x78] sm:$0xff] }
 0x642   :  { %v2544_v32 = vmul.f32 1.442695, %v2484_v12  ;;  %v2546_v60 = vmul.f32 1.442695, %v2485_v38  ;;  %v2486_v35 = vsub.f32 %v5823_v25, %v2455_v1  ;;  %v2487_v27 = vsub.f32 %v5825_v21, %v2455_v1 }
 0x643   :  { %2628 = vadd.xlane.f32.xlu0 %v2627_v45  ;;  %v6136_v12 = vpop.eup %3798  ;;  %v2567_v25 = vsub.f32 %v3892_v15, %v2455_v1  ;;  %v2596_v21 = vmul.f32 1.442695, %v2566_v53  ;;  %v2630_v45 = vadd.f32 %v6132_v4, %v6118_v37 }
 0x644   :  { %3814 = vpow2.f32 %v2544_v32  ;;  %v2548_v17 = vmul.f32 1.442695, %v2486_v35  ;;  %v2550_v43 = vmul.f32 1.442695, %v2487_v27  ;;  %2679 = vadd.xlane.f32.xlu1 %v2678_v33  ;;  %6876 = vst [vmem:[#allocation74_spill] sm:$0xff] %v6136_v12 }
 0x645   :  { %3816 = vpow2.f32 %v2546_v60  ;;  %v6141_v38 = vpop.eup %3800  ;;  %v2598_v33 = vmul.f32 1.442695, %v2567_v25 }
 0x646   :  { %6877 = vst [vmem:[#allocation77_spill] sm:$0xff] %v6141_v38  ;;  %3818 = vpow2.f32 %v2548_v17  ;;  %v6145_v0 = vpop.eup %3802  ;;  %v2633_v1 = vadd.f32 %v6141_v38, %v6136_v12 }
 0x647   :  { %6878 = vst [vmem:[#allocation70_spill] sm:$0xff] %v6145_v0  ;;  %3820 = vpow2.f32 %v2550_v43  ;;  %2682 = vadd.xlane.f32.xlu0 %v2681_v61  ;;  %v6147_v32 = vpop.eup %3804  ;;  %v2684_v14 = vsel %vm87_vm2, %v6145_v0, 0.0 }
 0x648   :  { %6879 = vst [vmem:[#allocation76_spill] sm:$0xff] %v6147_v32  ;;  %2631 = vadd.xlane.f32.xlu1 %v2630_v45  ;;  %v6149_v60 = vpop.eup %3806  ;;  %3822 = vpow2.f32 %v2596_v21 }
 0x649   :  { %6880 = vst [vmem:[#allocation82_spill] sm:$0xff] %v6149_v60  ;;  %v6155_v53 = vpop.eup %3808  ;;  %3824 = vpow2.f32 %v2598_v33  ;;  %v2636_v15 = vadd.f32 %v6149_v60, %v6147_v32 }
 0x64a   :  { %6881 = vst [vmem:[#allocation79_spill] sm:$0xff] %v6155_v53  ;;  %v6157_v35 = vpop.eup %3810  ;;  %v2687_v17 = vsel %vm87_vm2, %v6155_v53, 0.0 }
 0x64b   :  { %6882 = vst [vmem:[#allocation83_spill] sm:$0xff] %v6157_v35  ;;  %2634 = vadd.xlane.f32.xlu0 %v2633_v1  ;;  %v6159_v27 = vpop.eup %3812 }
 0x64c   :  { %6883 = vst [vmem:[#allocation81_spill] sm:$0xff] %v6159_v27  ;;  %2685 = vadd.xlane.f32.xlu1 %v2684_v14  ;;  %v2639_v1 = vadd.f32 %v6159_v27, %v6157_v35 }
 0x64e   :  { %v6163_v43 = vpop.eup %3814 }
 0x64f   :  { %6884 = vst [vmem:[#allocation78_spill] sm:$0xff] %v6163_v43  ;;  %v6165_v61 = vpop.eup %3816  ;;  %2688 = vadd.xlane.f32.xlu0 %v2687_v17 }
 0x650   :  { %6885 = vst [vmem:[#allocation80_spill] sm:$0xff] %v6165_v61  ;;  %v6169_v25 = vpop.eup %3818  ;;  %2637 = vadd.xlane.f32.xlu1 %v2636_v15  ;;  %v2642_v21 = vadd.f32 %v6165_v61, %v6163_v43 }
 0x651   :  { %6886 = vst [vmem:[#allocation5_spill] sm:$0xff] %v6169_v25  ;;  %v6173_v45 = vpop.eup %3820 }
 0x652   :  { %6887 = vst [vmem:[#allocation6_spill] sm:$0xff] %v6173_v45  ;;  %v2645_v33 = vadd.f32 %v6173_v45, %v6169_v25  ;;  %v6179_v14 = vpop.eup %3822 }
 0x653   :  { %2640 = vadd.xlane.f32.xlu0 %v2639_v1  ;;  %6888 = vst [vmem:[#allocation7_spill] sm:$0xff] %v6179_v14  ;;  %v6181_v32 = vpop.eup %3824  ;;  %v2690_v17 = vsel %vm87_vm2, %v6179_v14, 0.0  ;;  %v38_v1 = vld [vmem:[%s6520_s6] sm:$0xf] }
 0x654   :  { %2643 = vadd.xlane.f32.xlu1 %v2642_v21  ;;  %6889 = vst [vmem:[#allocation8_spill] sm:$0xff] %v6181_v32  ;;  %v2693_v15 = vsel %vm87_vm2, %v6181_v32, 0.0  ;;  %v37_v21 = vld [vmem:[%s6521_s7] sm:$0xf] }
 0x657   :  { %2646 = vadd.xlane.f32.xlu0 %v2645_v33 }
 0x658   :  { %2691 = vadd.xlane.f32.xlu1 %v2690_v17 }
 0x65b   :  { %2694 = vadd.xlane.f32.xlu0 %v2693_v15 }
 0x669   :  { %1680 = vperm.xlu1 %3424, %v38_v1  }
 0x671   :  { %1748 = vperm.xlu0 %3423, %v37_v21  }
 0x6a9   :  { %v2650_v25 = vpop.xlane.xlu1 %2649 }
 0x6ac   :  { %v2653_v33 = vpop.xlane.xlu0 %2652 }
 0x6ad   :  { %v2602_v43 = vpop.xlane.xlu1 %2601 }
 0x6ae   :  { %v2696_v45 = vadd.f32 %v2650_v25, %v2602_v43 }
 0x6b0   :  { %3826 = vrcp.f32 %v2696_v45  ;;  %v2605_v17 = vpop.xlane.xlu0 %2604 }
 0x6b1   :  { %v2608_v61 = vpop.xlane.xlu1 %2607  ;;  %v2697_v14 = vadd.f32 %v2653_v33, %v2605_v17 }
 0x6b3   :  { %3828 = vrcp.f32 %v2697_v14 }
 0x6b4   :  { %v2611_v15 = vpop.xlane.xlu0 %2610 }
 0x6b5   :  { %v2656_v32 = vpop.xlane.xlu1 %2655 }
 0x6b6   :  { %v2698_v35 = vadd.f32 %v2656_v32, %v2608_v61 }
 0x6b8   :  { %3830 = vrcp.f32 %v2698_v35  ;;  %v2659_v27 = vpop.xlane.xlu0 %2658 }
 0x6b9   :  { %v2699_v1 = vadd.f32 %v2659_v27, %v2611_v15  ;;  %v2662_v53 = vpop.xlane.xlu1 %2661 }
 0x6ba   :  { %v3827_v60 = vpop.eup %3826 }
 0x6bb   :  { %3832 = vrcp.f32 %v2699_v1  ;;  %v2776_v38 = vmul.f32 %v3827_v60, %v5960_v56  ;;  %v6195_v43 = vmul.f32 %v3827_v60, %v5957_v50  ;;  %v6198_v25 = vmul.f32 %v3827_v60, %v5955_v24 }
 0x6bc   :  { %v2665_v0 = vpop.xlane.xlu0 %2664 }
 0x6bd   :  { %v3829_v21 = vpop.eup %3828  ;;  %v2614_v12 = vpop.xlane.xlu1 %2613 }
 0x6be   :  { %v2700_v45 = vadd.f32 %v2662_v53, %v2614_v12  ;;  %v2777_v32 = vmul.f32 %v3829_v21, %v5979_v63  ;;  %v6202_v35 = vmul.f32 %v3829_v21, %v5972_v39  ;;  %v6205_v27 = vmul.f32 %v3829_v21, %v5963_v58 }
 0x6c0   :  { %3834 = vrcp.f32 %v2700_v45  ;;  %v2617_v61 = vpop.xlane.xlu0 %2616  ;;  %v2792_v14 = vpack.c.bf16 %v2777_v32, %v2776_v38  ;;  %v2761_v56 = vpack.c.bf16 %v6202_v35, %v6195_v43  ;;  %v2760_v50 = vpack.c.bf16 %v6205_v27, %v6198_v25 }
 0x6c1   :  { %v2701_v24 = vadd.f32 %v2665_v0, %v2617_v61  ;;  %v2668_v60 = vpop.xlane.xlu1 %2667 }
 0x6c2   :  { %v3831_v12 = vpop.eup %3830  ;;  %3363 = vmatprep.mubr.msk.bf16.mxu0 %vm87_vm2, %v2792_v14 }
 0x6c3   :  { %3836 = vrcp.f32 %v2701_v24  ;;  %v2778_v58 = vmul.f32 %v3831_v12, %v6007_v55  ;;  %v6214_v33 = vmul.f32 %v3831_v12, %v5986_v52  ;;  %v6217_v38 = vmul.f32 %v3831_v12, %v5981_v41 }
 0x6c4   :  { %v2671_v39 = vpop.xlane.xlu0 %2670 }
 0x6c5   :  { %v3833_v63 = vpop.eup %3832  ;;  %v2620_v53 = vpop.xlane.xlu1 %2619 }
 0x6c6   :  { %v2702_v17 = vadd.f32 %v2668_v60, %v2620_v53  ;;  %v2779_v15 = vmul.f32 %v3833_v63, %v6016_v46  ;;  %v6221_v0 = vmul.f32 %v3833_v63, %v6000_v5  ;;  %v6224_v1 = vmul.f32 %v3833_v63, %v5994_v8 }
 0x6c7   :  { %v6890_v5 = vpack.c.bf16 %v5839_v6, %v5833_v51  ;;  %v6891_v8 = vpack.c.bf16 %v5851_v7, %v5845_v29 }
 0x6c8   :  { %3838 = vrcp.f32 %v2702_v17  ;;  %v2623_v21 = vpop.xlane.xlu0 %2622  ;;  %v2793_v45 = vpack.c.bf16 %v2779_v15, %v2778_v58  ;;  %v2763_v55 = vpack.c.bf16 %v6221_v0, %v6214_v33  ;;  %v2762_v52 = vpack.c.bf16 %v6224_v1, %v6217_v38 }
 0x6c9   :  { %v2703_v41 = vadd.f32 %v2671_v39, %v2623_v21  ;;  %v2674_v32 = vpop.xlane.xlu1 %2673 }
 0x6ca   :  { %v3835_v61 = vpop.eup %3834  ;;  %3364 = vmatmul.mubr.msk.bf16.vlgmr.msra.gmra.mrb[100].mxu0 %vm87_vm2, %v2793_v45 }
 0x6cb   :  { %3840 = vrcp.f32 %v2703_v41  ;;  %2922 = vmatpush1.bf16.xpose.msra.mxu0 %v6890_v5  ;;  %v2780_v60 = vmul.f32 %v3835_v61, %v6026_v40  ;;  %v6239_v12 = vmul.f32 %v3835_v61, %v6034_v2  ;;  %v6242_v39 = vmul.f32 %v3835_v61, %v6023_v36 }
 0x6cc   :  { %2923 = vmatprep.subr.bf16.mxu0 %v6891_v8  ;;  %v2677_v46 = vpop.xlane.xlu0 %2676 }
 0x6cd   :  { %v3837_v14 = vpop.eup %3836  ;;  %v2626_v24 = vpop.xlane.xlu1 %2625 }
 0x6ce   :  { %v2704_v63 = vadd.f32 %v2674_v32, %v2626_v24  ;;  %v2781_v53 = vmul.f32 %v3837_v14, %v6041_v9  ;;  %v6246_v51 = vmul.f32 %v3837_v14, %v6044_v59  ;;  %v6249_v6 = vmul.f32 %v3837_v14, %v6039_v10 }
 0x6cf   :  { %v6892_v9 = vpack.c.bf16 %v5847_v26, %v5843_v13  ;;  %v6893_v10 = vpack.c.bf16 %v5863_v3, %v5857_v23 }
 0x6d0   :  { %3842 = vrcp.f32 %v2704_v63  ;;  %v2629_v29 = vpop.xlane.xlu0 %2628  ;;  %v2794_v7 = vpack.c.bf16 %v2781_v53, %v2780_v60  ;;  %v2765_v40 = vpack.c.bf16 %v6246_v51, %v6239_v12  ;;  %v2764_v2 = vpack.c.bf16 %v6249_v6, %v6242_v39 }
 0x6d1   :  { %v2705_v36 = vadd.f32 %v2677_v46, %v2629_v29  ;;  %v2680_v58 = vpop.xlane.xlu1 %2679 }
 0x6d2   :  { %v3839_v17 = vpop.eup %3838  ;;  %3367 = vmatprep.mubr.msk.bf16.mxu0 %vm87_vm2, %v2794_v7 }
 0x6d3   :  { %3844 = vrcp.f32 %v2705_v36  ;;  %2924 = vmatpush1.bf16.xpose.msra.mxu0 %v6892_v9  ;;  %v2782_v45 = vmul.f32 %v3839_v17, %v6054_v47  ;;  %v6264_v41 = vmul.f32 %v3839_v17, %v6062_v16  ;;  %v6267_v32 = vmul.f32 %v3839_v17, %v6057_v19  ;;  %v6900_v9 = vld [vmem:[#allocation34_spill] sm:$0xff] }
 0x6d4   :  { %2925 = vmatprep.subr.bf16.mxu0 %v6893_v10  ;;  %v2683_v59 = vpop.xlane.xlu0 %2682 }
 0x6d5   :  { %v3841_v15 = vpop.eup %3840  ;;  %v2632_v21 = vpop.xlane.xlu1 %2631 }
 0x6d6   :  { %v2706_v61 = vadd.f32 %v2680_v58, %v2632_v21  ;;  %v2783_v5 = vmul.f32 %v3841_v15, %v6069_v62  ;;  %v6271_v13 = vmul.f32 %v3841_v15, %v6078_v11  ;;  %v6274_v26 = vmul.f32 %v3841_v15, %v6073_v42 }
 0x6d7   :  { %v6894_v11 = vpack.c.bf16 %v5859_v57, %v5855_v49  ;;  %v6895_v62 = vpack.c.bf16 %v5875_v20, %v5869_v54 }
 0x6d8   :  { %3846 = vrcp.f32 %v2706_v61  ;;  %v2635_v23 = vpop.xlane.xlu0 %2634  ;;  %v2795_v3 = vpack.c.bf16 %v2783_v5, %v2782_v45  ;;  %v2767_v47 = vpack.c.bf16 %v6271_v13, %v6264_v41  ;;  %v2766_v16 = vpack.c.bf16 %v6274_v26, %v6267_v32 }
 0x6d9   :  { %v2707_v19 = vadd.f32 %v2683_v59, %v2635_v23  ;;  %v2686_v8 = vpop.xlane.xlu1 %2685 }
 0x6da   :  { %v3843_v46 = vpop.eup %3842  ;;  %3368 = vmatmul.mubr.msk.bf16.gmra.mrb[104].mxu0 %vm87_vm2, %v2795_v3 }
 0x6db   :  { %3848 = vrcp.f32 %v2707_v19  ;;  %2926 = vmatpush1.bf16.xpose.msra.mxu0 %v6894_v11  ;;  %v2784_v60 = vmul.f32 %v3843_v46, %v6082_v34  ;;  %v6289_v63 = vmul.f32 %v3843_v46, %v6103_v31  ;;  %v6292_v53 = vmul.f32 %v3843_v46, %v6090_v22  ;;  %v6902_v19 = vld [vmem:[#allocation77_spill] sm:$0xff]  ;;  %v6903_v46 = vld [vmem:[#allocation74_spill] sm:$0xff] }
 0x6dc   :  { %2927 = vmatprep.subr.bf16.mxu0 %v6895_v62  ;;  %v2689_v42 = vpop.xlane.xlu0 %2688 }
 0x6dd   :  { %v3845_v14 = vpop.eup %3844  ;;  %v2638_v24 = vpop.xlane.xlu1 %2637 }
 0x6de   :  { %v2708_v29 = vadd.f32 %v2686_v8, %v2638_v24  ;;  %v2785_v7 = vmul.f32 %v3845_v14, %v6096_v18  ;;  %v6296_v49 = vmul.f32 %v3845_v14, %v6109_v28  ;;  %v6299_v57 = vmul.f32 %v3845_v14, %v6105_v30  ;;  %v6896_v18 = vld [vmem:[#allocation32_spill] sm:$0xff]  ;;  %v6897_v28 = vld [vmem:[#allocation39_spill] sm:$0xff] }
 0x6df   :  { %v6898_v17 = vpack.c.bf16 %v6896_v18, %v6897_v28  ;;  %v6899_v30 = vld [vmem:[#allocation36_spill] sm:$0xff]  ;;  %v6909_v18 = vld [vmem:[#allocation66_spill] sm:$0xff]  ;;  %v6910_v28 = vld [vmem:[#allocation63_spill] sm:$0xff] }
 0x6e0   :  { %3850 = vrcp.f32 %v2708_v29  ;;  %v2641_v54 = vpop.xlane.xlu0 %2640  ;;  %v2796_v20 = vpack.c.bf16 %v2785_v7, %v2784_v60  ;;  %v2769_v34 = vpack.c.bf16 %v6296_v49, %v6289_v63  ;;  %v6901_v10 = vpack.c.bf16 %v6899_v30, %v6900_v9  ;;  %v6905_v29 = vld [vmem:[#allocation75_spill] sm:$0xff]  ;;  %v6912_v9 = vld [vmem:[#allocation70_spill] sm:$0xff] }
 0x6e1   :  { %v2709_v22 = vadd.f32 %v2689_v42, %v2641_v54  ;;  %v2644_v36 = vpop.xlane.xlu1 %2643  ;;  %v6906_v54 = vld [vmem:[#allocation35_spill] sm:$0xff]  ;;  %v6940_v25 = vpack.c.bf16 %v6299_v57, %v6292_v53 }
 0x6e2   :  { %v3847_v58 = vpop.eup %3846  ;;  %3371 = vmatprep.mubr.msk.bf16.mxu0 %vm87_vm2, %v2796_v20  ;;  %v6907_v20 = vld [vmem:[#allocation31_spill] sm:$0xff] }
 0x6e3   :  { %3852 = vrcp.f32 %v2709_v22  ;;  %2928 = vmatpush1.bf16.xpose.msra.mxu0 %v6898_v17  ;;  %v2786_v45 = vmul.f32 %v3847_v58, %v6114_v48  ;;  %v6314_v61 = vmul.f32 %v3847_v58, %v6132_v4  ;;  %v6317_v5 = vmul.f32 %v3847_v58, %v6118_v37  ;;  %v6921_v4 = vld [vmem:[#allocation38_spill] sm:$0xff]  ;;  %v6922_v48 = vld [vmem:[#allocation67_spill] sm:$0xff] }
 0x6e4   :  { %2929 = vmatprep.subr.bf16.mxu0 %v6901_v10  ;;  %v2647_v59 = vpop.xlane.xlu0 %2646  ;;  %v6908_v22 = vpack.c.bf16 %v6906_v54, %v6907_v20  ;;  %v6911_v17 = vpack.c.bf16 %v6909_v18, %v6910_v28 }
 0x6e5   :  { %v3849_v15 = vpop.eup %3848  ;;  %v2692_v21 = vpop.xlane.xlu1 %2691 }
 0x6e6   :  { %v2710_v23 = vadd.f32 %v2692_v21, %v2644_v36  ;;  %v2787_v3 = vmul.f32 %v3849_v15, %v6125_v44  ;;  %v6321_v8 = vmul.f32 %v3849_v15, %v6902_v19  ;;  %v6324_v11 = vmul.f32 %v3849_v15, %v6903_v46  ;;  %v6904_v44 = vld [vmem:[#allocation72_spill] sm:$0xff]  ;;  %v6915_v19 = vld [vmem:[#allocation81_spill] sm:$0xff] }
 0x6e8   :  { %3854 = vrcp.f32 %v2710_v23  ;;  %v2695_v62 = vpop.xlane.xlu0 %2694  ;;  %v2797_v42 = vpack.c.bf16 %v2787_v3, %v2786_v45  ;;  %v6914_v23 = vld [vmem:[#allocation79_spill] sm:$0xff]  ;;  %v6941_v27 = vpack.c.bf16 %v6321_v8, %v6314_v61 }
 0x6e9   :  { %v2711_v37 = vadd.f32 %v2695_v62, %v2647_v59  ;;  %v6330_v14 = vpop.permute.xlu1 %1680  ;;  %v6913_v59 = vld [vmem:[#allocation82_spill] sm:$0xff] }
 0x6ea   :  { %v3851_v24 = vpop.eup %3850  ;;  %v1718_v60 = vadd.f32 %v6904_v44, %v6330_v14  ;;  %v1720_v7 = vadd.f32 %v6905_v29, %v6330_v14  ;;  %3372 = vmatmul.mubr.msk.bf16.gmra.mrb[108].mxu0 %vm87_vm2, %v2797_v42  ;;  %v6917_v29 = vld [vmem:[#allocation83_spill] sm:$0xff] }
 0x6eb   :  { %3856 = vrcp.f32 %v2711_v37  ;;  %2930 = vmatpush1.bf16.xpose.msra.mxu0 %v6908_v22  ;;  %v2788_v10 = vmul.f32 %v3851_v24, %v6912_v9  ;;  %v6345_v15 = vmul.f32 %v3851_v24, %v6913_v59  ;;  %v6916_v37 = vld [vmem:[#allocation76_spill] sm:$0xff] }
 0x6ec   :  { %v1724_v36 = vmul.f32 %v1718_v60, %v1718_v60  ;;  %v1725_v58 = vmul.f32 %v1720_v7, %v1720_v7  ;;  %2931 = vmatprep.subr.bf16.mxu0 %v6911_v17  ;;  %v2752_v44 = vmul.f32 %v3851_v24, %v6916_v37  ;;  %v6918_v59 = vld [vmem:[#allocation40_spill] sm:$0xff]  ;;  %v6923_v24 = vpack.c.bf16 %v6921_v4, %v6922_v48  ;;  %v6927_v37 = vld [vmem:[#allocation6_spill] sm:$0xff] }
 0x6ed   :  { %v3853_v30 = vpop.eup %3852 }
 0x6ee   :  { %v1726_v21 = vsel %vm141_vm0, %v1724_v36, 0.0  ;;  %v1733_v45 = vsel %vm141_vm0, %v1725_v58, 0.0  ;;  %v2789_v3 = vmul.f32 %v3853_v30, %v6914_v23  ;;  %v2755_v46 = vmul.f32 %v3853_v30, %v6915_v19  ;;  %v6919_v23 = vld [vmem:[#allocation64_spill] sm:$0xff] }
 0x6ef   :  { %v1727_v62 = vrot.slane %v1726_v21, 4  ;;  %v1734_v42 = vrot.slane %v1733_v45, 4  ;;  %v2754_v54 = vmul.f32 %v3853_v30, %v6917_v29  ;;  %v6920_v19 = vpack.c.bf16 %v6918_v59, %v6919_v23  ;;  %v6928_v29 = vld [vmem:[#allocation78_spill] sm:$0xff] }
 0x6f0   :  { %v2798_v20 = vpack.c.bf16 %v2789_v3, %v2788_v10  ;;  %v2773_v22 = vpack.c.bf16 %v2755_v46, %v6345_v15  ;;  %v6924_v15 = vld [vmem:[#allocation7_spill] sm:$0xff] }
 0x6f1   :  { %v1728_v18 = vadd.f32 %v1727_v62, %v1726_v21  ;;  %v1735_v28 = vadd.f32 %v1734_v42, %v1733_v45  ;;  %v2772_v17 = vpack.c.bf16 %v2754_v54, %v2752_v44  ;;  %v6925_v45 = vld [vmem:[#allocation80_spill] sm:$0xff] }
 0x6f2   :  { %v3855_v9 = vpop.eup %3854  ;;  %3375 = vmatprep.mubr.msk.bf16.mxu0 %vm87_vm2, %v2798_v20  ;;  %v6926_v62 = vld [vmem:[#allocation8_spill] sm:$0xff]  ;;  %v6929_v20 = vld [vmem:[#allocation5_spill] sm:$0xff] }
 0x6f3   :  { %v1729_v36 = vrot.slane %v1728_v18, 2  ;;  %v1736_v58 = vrot.slane %v1735_v28, 2  ;;  %2932 = vmatpush1.bf16.xpose.msra.mxu0 %v6920_v19  ;;  %v2790_v21 = vmul.f32 %v3855_v9, %v6924_v15  ;;  %v2757_v46 = vmul.f32 %v3855_v9, %v6925_v45  ;;  %v6931_v15 = vld [vmem:[#allocation71_spill] sm:$0xff] }
 0x6f4   :  { %2933 = vmatprep.subr.bf16.mxu0 %v6923_v24  ;;  %v2756_v54 = vmul.f32 %v3855_v9, %v6928_v29  ;;  %v6933_v9 = vld [vmem:[#allocation69_spill] sm:$0xff]  ;;  %v6381_v29 = vpop.permute.xlu0 %1748 }
 0x6f5   :  { %v3857_v30 = vpop.eup %3856  ;;  %v1730_v10 = vadd.f32 %v1729_v36, %v1728_v18  ;;  %v1737_v3 = vadd.f32 %v1736_v58, %v1735_v28  ;;  %v6930_v58 = vld [vmem:[#allocation68_spill] sm:$0xff] }
 0x6f6   :  { %v2791_v42 = vmul.f32 %v3857_v30, %v6926_v62  ;;  %v2759_v44 = vmul.f32 %v3857_v30, %v6927_v37  ;;  %v2758_v59 = vmul.f32 %v3857_v30, %v6929_v20  ;;  %v6932_v45 = vpack.c.bf16 %v6930_v58, %v6931_v15  ;;  %v6934_v30 = vld [vmem:[#allocation65_spill] sm:$0xff] }
 0x6f7   :  { %v1731_v23 = vrot.slane %v1730_v10, 1  ;;  %v1738_v19 = vrot.slane %v1737_v3, 1  ;;  %v6935_v62 = vpack.c.bf16 %v6933_v9, %v6934_v30  ;;  %v3898_v30 = vld [vmem:[%s6522_s8 + $0x28] sm:$0xff] }
 0x6f8   :  { %v2799_v31 = vpack.c.bf16 %v2791_v42, %v2790_v21  ;;  %v2775_v48 = vpack.c.bf16 %v2759_v44, %v2757_v46  ;;  %v2774_v4 = vpack.c.bf16 %v2758_v59, %v2756_v54  ;;  %v3895_v59 = vld [vmem:[%s6522_s8 + $0x10] sm:$0xff] }
 0x6f9   :  { %v1732_v24 = vadd.f32 %v1731_v23, %v1730_v10  ;;  %v1739_v18 = vadd.f32 %v1738_v19, %v1737_v3  ;;  %v6936_v10 = vld [vmem:[#allocation73_spill] sm:$0xff]  ;;  %v3896_v19 = vld [vmem:[%s6522_s8 + $0x18] sm:$0xff] }
 0x6fa   :  { %3376 = vmatmul.mubr.msk.bf16.gmra.mrb[112].mxu0 %vm87_vm2, %v2799_v31  ;;  %v6937_v3 = vld [vmem:[#allocation37_spill] sm:$0xff]  ;;  %v6939_v31 = vmov 0.0  }
 0x6fb   :  { %v1740_v28 = vmax.f32 %v1732_v24, 1e-24  ;;  %v1741_v36 = vmax.f32 %v1739_v18, 1e-24  ;;  %2934 = vmatpush1.bf16.xpose.msra.mxu0 %v6932_v45  ;;  %2953 = vmatprep.mubr.bf16.mxu0 %v2761_v56  ;;  %v6938_v21 = vpack.c.bf16 %v6936_v10, %v6937_v3  ;;  %v3897_v45 = vld [vmem:[%s6522_s8 + $0x20] sm:$0xff] }
 0x6fc   :  { %2935 = vmatprep.subr.bf16.mxu0 %v6935_v62 }
 0x6fd   :  { %3858 = vrsqrt.f32 %v1740_v28 }
 0x6fe   :  { %3860 = vrsqrt.f32 %v1741_v36 }
 0x703   :  { %2936 = vmatpush1.bf16.xpose.msra.mxu0 %v6938_v21 }
 0x704   :  { %3379 = vmatprep.subr.bf16.mxu0 %v6939_v31 }
 0x707   :  { %v3859_v46 = vpop.eup %3858 }
 0x708   :  { %v3861_v42 = vpop.eup %3860  ;;  %v1744_v37 = vmul.f32 %v3859_v46, %v1718_v60 }
 0x709   :  { %v1745_v44 = vmul.f32 %v3861_v42, %v1720_v7 }
 0x70a   :  { %v1751_v43 = vmul.f32 %v6381_v29, %v1744_v37  ;;  %2954 = vmatmul.mubr.bf16.vlgmr.msra.gmra.mrb[116].mxu0 %v2760_v50  ;;  %v6942_v50 = vpack.c.bf16 %v6324_v11, %v6317_v5  ;;  %v3894_v5 = vld [vmem:[%s6522_s8 + $0x8] sm:$0xff] }
 0x70b   :  { %v1752_v35 = vmul.f32 %v6381_v29, %v1745_v44  ;;  %2961 = vmatprep.mubr.bf16.mxu0 %v2763_v55 }
 0x70d   :  { %v1755_v56 = vcombine.low %v1751_v43, %v1752_v35  ;;  %v3899_v43 = vld [vmem:[%s6522_s8 + $0x30] sm:$0xff] }
 0x70f   :  { %1757 = vst [vmem:[#allocation2] sm:$0xff] %v1755_v56  ;;  %v3900_v56 = vld [vmem:[%s6522_s8 + $0x38] sm:$0xff] }
 0x712   :  { %2962 = vmatmul.mubr.bf16.gmra.mrb[120].mxu0 %v2762_v52 }
 0x713   :  { %2969 = vmatprep.mubr.bf16.mxu0 %v2765_v40 }
 0x71a   :  { %2970 = vmatmul.mubr.bf16.gmra.mrb[124].mxu0 %v2764_v2 }
 0x71b   :  { %2977 = vmatprep.mubr.bf16.mxu0 %v2767_v47 }
 0x722   :  { %2978 = vmatmul.mubr.bf16.gmra.mrb[128].mxu0 %v2766_v16 }
 0x723   :  { %2985 = vmatprep.mubr.bf16.mxu0 %v2769_v34  ;;  %v3893_v34 = vld [vmem:[%s6522_s8] sm:$0xff] }
 0x72a   :  { %2986 = vmatmul.mubr.bf16.gmra.mrb[132].mxu0 %v6940_v25 }
 0x72b   :  { %2993 = vmatprep.mubr.bf16.mxu0 %v6941_v27 }
 0x732   :  { %2994 = vmatmul.mubr.bf16.gmra.mrb[136].mxu0 %v6942_v50 }
 0x733   :  { %3001 = vmatprep.mubr.bf16.mxu0 %v2773_v22 }
 0x73a   :  { %3002 = vmatmul.mubr.bf16.gmra.mrb[140].mxu0 %v2772_v17 }
 0x73b   :  { %3009 = vmatprep.mubr.bf16.mxu0 %v2775_v48 }
 0x742   :  { %3010 = vmatmul.mubr.bf16.gmra.mrb[144].mxu0 %v2774_v4 }
 0x743   :  { %3395 = vmatprep.mubr.msk.bf16.mxu0 %vm3938_vm3, %v6939_v31 }
 0x79d   :  { %v3365_v33 = vpop.f32.mrb[100].mxu0 }
 0x79e   :  { %v2858_v38 = vpop.f32.mrb[101].mxu0 }
 0x79f   :  { %v3366_v0 = vpop.f32.mrb[102].mxu0 }
 0x7a0   :  { %v2861_v1 = vpop.f32.mrb[103].mxu0 }
 0x7ad   :  { %v3369_v55 = vpop.f32.mrb[104].mxu0 }
 0x7ae   :  { %v2874_v52 = vpop.f32.mrb[105].mxu0 }
 0x7af   :  { %v3370_v12 = vpop.f32.mrb[106].mxu0 }
 0x7b0   :  { %v2877_v39 = vpop.f32.mrb[107].mxu0 }
 0x7bd   :  { %v6420_v51 = vpop.f32.mrb[108].mxu0 }
 0x7be   :  { %v2890_v6 = vpop.f32.mrb[109].mxu0 }
 0x7bf   :  { %v6422_v40 = vpop.f32.mrb[110].mxu0 }
 0x7c0   :  { %v2893_v2 = vpop.f32.mrb[111].mxu0 }
 0x7cd   :  { %v6424_v41 = vpop.f32.mrb[112].mxu0 }
 0x7ce   :  { %v6426_v32 = vpop.f32.mrb[113].mxu0 }
 0x7cf   :  { %v6428_v13 = vpop.f32.mrb[114].mxu0 }
 0x7d0   :  { %v6430_v26 = vpop.f32.mrb[115].mxu0 }
 0x7dd   :  { %v2955_v47 = vpop.f32.mrb[116].mxu0 }
 0x7de   :  { %v2956_v16 = vadd.f32 %v2955_v47, %v2858_v38  ;;  %v2957_v63 = vpop.f32.mrb[117].mxu0 }
 0x7df   :  { %v2958_v53 = vpop.f32.mrb[118].mxu0 }
 0x7e0   :  { %v2959_v49 = vadd.f32 %v2958_v53, %v2861_v1  ;;  %v2960_v57 = vpop.f32.mrb[119].mxu0  ;;  %v3018_v61 = vmul.f32 %v3893_v34, %v2956_v16  ;;  %v3903_v34 = vld [vmem:[%s6522_s8 + $0x50] sm:$0xff] }
 0x7e2   :  { %v3019_v8 = vmul.f32 %v3894_v5, %v2959_v49  ;;  %v3904_v5 = vld [vmem:[%s6522_s8 + $0x58] sm:$0xff] }
 0x7e4   :  { %v3034_v11 = vpack.c.bf16 %v3019_v8, %v3018_v61 }
 0x7e5   :  { %v2963_v60 = vpop.f32.mrb[120].mxu0 }
 0x7e6   :  { %v2964_v7 = vadd.f32 %v3365_v33, %v2963_v60  ;;  %v2965_v22 = vpop.f32.mrb[121].mxu0  ;;  %3380 = vmatpush3.bf16.xpose.msra.mxu0 %v3034_v11 }
 0x7e7   :  { %v2966_v17 = vpop.f32.mrb[122].mxu0  ;;  %3381 = vmatprep.subr.bf16.mxu0 %v6939_v31 }
 0x7e8   :  { %v2967_v54 = vadd.f32 %v3366_v0, %v2966_v17  ;;  %v2968_v20 = vpop.f32.mrb[123].mxu0  ;;  %v3020_v23 = vmul.f32 %v3895_v59, %v2964_v7  ;;  %v3906_v59 = vld [vmem:[%s6522_s8 + $0x68] sm:$0xff] }
 0x7ea   :  { %v3021_v48 = vmul.f32 %v3896_v19, %v2967_v54  ;;  %v3905_v54 = vld [vmem:[%s6522_s8 + $0x60] sm:$0xff] }
 0x7ec   :  { %v3035_v4 = vpack.c.bf16 %v3021_v48, %v3020_v23 }
 0x7ed   :  { %v2971_v24 = vpop.f32.mrb[124].mxu0 }
 0x7ee   :  { %v2972_v18 = vadd.f32 %v2971_v24, %v2874_v52  ;;  %v2973_v28 = vpop.f32.mrb[125].mxu0  ;;  %3382 = vmatpush3.bf16.xpose.msra.mxu0 %v3035_v4  ;;  %v3901_v52 = vld [vmem:[%s6522_s8 + $0x40] sm:$0xff] }
 0x7ef   :  { %v2974_v36 = vpop.f32.mrb[126].mxu0  ;;  %3383 = vmatprep.subr.bf16.mxu0 %v6939_v31  ;;  %v3907_v28 = vld [vmem:[%s6522_s8 + $0x70] sm:$0xff] }
 0x7f0   :  { %v2975_v58 = vadd.f32 %v2974_v36, %v2877_v39  ;;  %v2976_v15 = vpop.f32.mrb[127].mxu0  ;;  %v3022_v9 = vmul.f32 %v3897_v45, %v2972_v18  ;;  %v3902_v39 = vld [vmem:[%s6522_s8 + $0x48] sm:$0xff] }
 0x7f2   :  { %v3023_v62 = vmul.f32 %v3898_v30, %v2975_v58  ;;  %v3908_v58 = vld [vmem:[%s6522_s8 + $0x78] sm:$0xff] }
 0x7f4   :  { %v3036_v10 = vpack.c.bf16 %v3023_v62, %v3022_v9 }
 0x7f5   :  { %v2979_v3 = vpop.f32.mrb[128].mxu0 }
 0x7f6   :  { %v2980_v21 = vadd.f32 %v3369_v55, %v2979_v3  ;;  %v2981_v46 = vpop.f32.mrb[129].mxu0  ;;  %3384 = vmatpush3.bf16.xpose.msra.mxu0 %v3036_v10 }
 0x7f7   :  { %v2982_v42 = vpop.f32.mrb[130].mxu0  ;;  %3385 = vmatprep.subr.bf16.mxu0 %v6939_v31 }
 0x7f8   :  { %v2983_v37 = vadd.f32 %v3370_v12, %v2982_v42  ;;  %v2984_v44 = vpop.f32.mrb[131].mxu0  ;;  %v3024_v35 = vmul.f32 %v3899_v43, %v2980_v21 }
 0x7fa   :  { %v3025_v25 = vmul.f32 %v3900_v56, %v2983_v37 }
 0x7fc   :  { %v3037_v27 = vpack.c.bf16 %v3025_v25, %v3024_v35 }
 0x7fd   :  { %v2987_v50 = vpop.f32.mrb[132].mxu0 }
 0x7fe   :  { %v2988_v33 = vadd.f32 %v2987_v50, %v2890_v6  ;;  %v2989_v38 = vpop.f32.mrb[133].mxu0  ;;  %3386 = vmatpush3.bf16.xpose.msra.mxu0 %v3037_v27 }
 0x7ff   :  { %v2990_v0 = vpop.f32.mrb[134].mxu0  ;;  %3387 = vmatprep.subr.bf16.mxu0 %v6939_v31 }
 0x800   :  { %v2991_v1 = vadd.f32 %v2990_v0, %v2893_v2  ;;  %v2992_v55 = vpop.f32.mrb[135].mxu0  ;;  %v3026_v12 = vmul.f32 %v3901_v52, %v2988_v33 }
 0x802   :  { %v3027_v47 = vmul.f32 %v3902_v39, %v2991_v1 }
 0x804   :  { %v3038_v16 = vpack.c.bf16 %v3027_v47, %v3026_v12 }
 0x805   :  { %v2995_v63 = vpop.f32.mrb[136].mxu0 }
 0x806   :  { %v2996_v6 = vadd.f32 %v6420_v51, %v2995_v63  ;;  %v2997_v53 = vpop.f32.mrb[137].mxu0  ;;  %3388 = vmatpush3.bf16.xpose.msra.mxu0 %v3038_v16 }
 0x807   :  { %v2998_v49 = vpop.f32.mrb[138].mxu0  ;;  %3389 = vmatprep.subr.bf16.mxu0 %v6939_v31 }
 0x808   :  { %v2999_v2 = vadd.f32 %v6422_v40, %v2998_v49  ;;  %v3000_v57 = vpop.f32.mrb[139].mxu0  ;;  %v3028_v61 = vmul.f32 %v3903_v34, %v2996_v6 }
 0x80a   :  { %v3029_v8 = vmul.f32 %v3904_v5, %v2999_v2 }
 0x80c   :  { %v3039_v11 = vpack.c.bf16 %v3029_v8, %v3028_v61 }
 0x80d   :  { %v3003_v51 = vpop.f32.mrb[140].mxu0 }
 0x80e   :  { %v3004_v60 = vadd.f32 %v3003_v51, %v6426_v32  ;;  %v3005_v7 = vpop.f32.mrb[141].mxu0  ;;  %3390 = vmatpush3.bf16.xpose.msra.mxu0 %v3039_v11 }
 0x80f   :  { %v3006_v22 = vpop.f32.mrb[142].mxu0  ;;  %3391 = vmatprep.subr.bf16.mxu0 %v6939_v31 }
 0x810   :  { %v3007_v40 = vadd.f32 %v3006_v22, %v6430_v26  ;;  %v3008_v17 = vpop.f32.mrb[143].mxu0  ;;  %v3030_v20 = vmul.f32 %v3905_v54, %v3004_v60 }
 0x812   :  { %v3031_v23 = vmul.f32 %v3906_v59, %v3007_v40 }
 0x814   :  { %v3040_v19 = vpack.c.bf16 %v3031_v23, %v3030_v20 }
 0x815   :  { %v3011_v32 = vpop.f32.mrb[144].mxu0 }
 0x816   :  { %v3012_v48 = vadd.f32 %v6424_v41, %v3011_v32  ;;  %v3013_v4 = vpop.f32.mrb[145].mxu0  ;;  %3392 = vmatpush3.bf16.xpose.msra.mxu0 %v3040_v19  ;;  %v3909_v41 = vld [vmem:[%s6519_s5] sm:$0x3]  ;;  %s3939_s5 = smov [#allocation2]  }
 0x817   :  { %v3014_v24 = vpop.f32.mrb[146].mxu0  ;;  %3393 = vmatprep.subr.bf16.mxu0 %v6939_v31  ;;  %s3159_s8 = sshll.u32 %s3939_s5, 4  ;;  %s3160_s8 = int_to_ptr.vmem [resolvable:$true] %s3159_s8 }
 0x818   :  { %v3015_v26 = vadd.f32 %v6428_v13, %v3014_v24  ;;  %v3016_v18 = vpop.f32.mrb[147].mxu0  ;;  %v3032_v36 = vmul.f32 %v3907_v28, %v3012_v48  ;;  %s3910_s14 = scalar_lea.vmem %s3160_s8, 256  ;;  %p3915_p1 = scmp.lt.s32.totalorder %s3160_s8, %s3160_s8 }
 0x819   :  { %p3911_p0 = scmp.ne.s32.totalorder %s3160_s8, %s3910_s14  ;;  %p3916_p2 = scmp.lt.s32.totalorder %s3910_s14, %s3910_s14 }
 0x81a   :  { %v3033_v15 = vmul.f32 %v3908_v58, %v3015_v26 }
 0x81b   :  { %p3917_p3 = por %p3916_p2, %p3915_p1 }
 0x81c   :  { %v3041_v45 = vpack.c.bf16 %v3033_v15, %v3032_v36 }
 0x81d   :  { %p3918_p4 = pnand %p3917_p3, %p3911_p0 }
 0x81e   :  { %3394 = vmatpush3.bf16.xpose.msra.mxu0 %v3041_v45 }
 0x825   :  { %3396 = vmatmul.mubr.bf16.vlgmr.msra.gmra.mrb[148].mxu0 %v3909_v41 }
 0x8f8   :  { %v3076_v31 = vpop.f32.mrb[148].mxu0 }
 0x8f9   :  { %v3082_v13 = vpack.c.bf16 %v3076_v31, %v3076_v31  ;;  %v3397_v9 = vpop.f32.mrb[149].mxu0 }
 0x8fa   :  { %v3079_v30 = vpop.f32.mrb[150].mxu0 }
 0x8fb   :  { %v3398_v62 = vpop.f32.mrb[151].mxu0  ;;  %3116 = vmatmul.mubr.bf16.vlgmr.msra.gmra.mrb[148].mxu1 %v3082_v13 }
 0x9ce   :  { %v3117_v10 = vpop.f32.mrb[148].mxu1 }
 0x9cf   :  { %v3118_v3 = vadd.f32 %v3117_v10, %v6330_v14  ;;  %v3119_v21 = vpop.f32.mrb[149].mxu1 }
 0x9d0   :  { %v3120_v46 = vadd.f32 %v3119_v21, %v6330_v14  ;;  %v3121_v42 = vpop.f32.mrb[150].mxu1 }
 0x9d1   :  { %v3124_v37 = vmul.f32 %v3118_v3, %v3118_v3  ;;  %v3122_v44 = vpop.f32.mrb[151].mxu1 }
 0x9d2   :  { %v3125_v43 = vmul.f32 %v3120_v46, %v3120_v46 }
 0x9d3   :  { %v3126_v35 = vsel %vm141_vm0, %v3124_v37, 0.0 }
 0x9d4   :  { %v3127_v56 = vrot.slane %v3126_v35, 4  ;;  %v3133_v25 = vsel %vm141_vm0, %v3125_v43, 0.0 }
 0x9d5   :  { %v3134_v27 = vrot.slane %v3133_v25, 4 }
 0x9d6   :  { %v3128_v50 = vadd.f32 %v3127_v56, %v3126_v35 }
 0x9d7   :  { %v3135_v33 = vadd.f32 %v3134_v27, %v3133_v25 }
 0x9d8   :  { %v3129_v38 = vrot.slane %v3128_v50, 2 }
 0x9d9   :  { %v3136_v0 = vrot.slane %v3135_v33, 2 }
 0x9da   :  { %v3130_v1 = vadd.f32 %v3129_v38, %v3128_v50 }
 0x9db   :  { %v3137_v55 = vadd.f32 %v3136_v0, %v3135_v33 }
 0x9dc   :  { %v3131_v52 = vrot.slane %v3130_v1, 1 }
 0x9dd   :  { %v3138_v12 = vrot.slane %v3137_v55, 1 }
 0x9de   :  { %v3132_v39 = vadd.f32 %v3131_v52, %v3130_v1 }
 0x9df   :  { %v3139_v14 = vadd.f32 %v3138_v12, %v3137_v55 }
 0x9e0   :  { %v3140_v47 = vmax.f32 %v3132_v39, 1e-24 }
 0x9e1   :  { %v3141_v16 = vmax.f32 %v3139_v14, 1e-24 }
 0x9e2   :  { %3862 = vrsqrt.f32 %v3140_v47 }
 0x9e3   :  { %3864 = vrsqrt.f32 %v3141_v16 }
 0x9ec   :  { %v3863_v63 = vpop.eup %3862 }
 0x9ed   :  { %v3865_v6 = vpop.eup %3864  ;;  %v3144_v53 = vmul.f32 %v3863_v63, %v3118_v3 }
 0x9ee   :  { %v3145_v49 = vmul.f32 %v3865_v6, %v3120_v46 }
 0x9ef   :  { %v3146_v2 = vmul.f32 %v3144_v53, %v6381_v29 }
 0x9f0   :  { %v3147_v57 = vmul.f32 %v3145_v49, %v6381_v29 }
 0x9f2   :  { %v3150_v34 = vcombine.low %v3146_v2, %v3147_v57 }
 0x9f4   :  { %3153 = vst [vmem:[#allocation2 + $0x8] sm:$0xff] %v3150_v34 }
 0x9f5   :  { %3921 = shalt.err (!%p3918_p4)
}
 0x9f6   :  { %s3922_s17 = scalar_lea.hbm %s6523_s9, 256 }
 0x9f7   :  { %p3923_p5 = scmp.ne.s32.totalorder %s6523_s9, %s3922_s17  ;;  %p3926_p6 = scmp.lt.u32.totalorder %s3922_s17, %s6523_s9 }
 0x9f9   :  { %p3928_p7 = pnand %p3926_p6, %p3923_p5 }
 0x9fb   :  { %3931 = shalt.err (!%p3928_p7)
}
 0x9fc   :  { %s3940_s22 = smov 128   ;;  %s3941_s23 = smov 8  }
 0x9fd   :  { %3165 = dma.vmem_to_hbm [thread:$0]  %s3160_s8, 256, %s6523_s9, [#allocation3], %s3940_s22, %s3940_s22, %s3941_s23  }
 0x9fe   :  { %3932 = dma.done.wait [#allocation3], 256  }
 0x9ff   :  { %3933 = vsyncadd [#allocation3], 4294967040 }
 0xa00   :  { %3169 = vsyncpa [#allocation3], 1 }

</bundles_post_ra>
